<compile_context>
chip_gen: v7x
topology: tpu7x:2x2x1
jax: 0.10.0
libtpu: 0.0.40
codegen_flags: <defaults>
</compile_context>

<pallas_src>
from functools import partial

import jax
import jax.numpy as jnp
from jax.experimental import pallas as pl
from jax.experimental.pallas import tpu as pltpu


# ----------------------------------------------------------------------------- kernel
def _self_attn_kernel(x_ref, wqkv_ref, wu_ref, bias_ref, o_ref, slab_ref, *,
                      heads, seq, feat, compute_dtype, approx_recip):
    # x_ref:    (bt, t*k) or (bt, t, k)   batch-row tile (layout chosen by wrapper)
    # wqkv_ref: (k, 3*heads*k)            fused q/k/v projection weights (resident)
    # wu_ref:   (heads*k, k)              unifyheads weight (resident)
    # bias_ref: (1, k)                    unifyheads bias
    # o_ref:    same layout as x_ref      output tile, written exactly once
    # slab_ref: (bt*t, heads*k)           VMEM scratch slab for per-head outputs
    t, k = seq, feat
    hk = heads * k
    bt = x_ref.shape[0]
    m = bt * t

    x = x_ref[...].reshape(m, k).astype(compute_dtype)

    # One fused MXU pass for q, k, v of ALL heads (lane-dense N = 3*heads*k).
    # The 1/k**0.25 scaling of q and k is pre-folded into the weights.
    qkv = jnp.dot(x, wqkv_ref[...], preferred_element_type=jnp.float32)
    qkv = qkv.astype(compute_dtype)
    q = qkv[:, 0 * hk:1 * hk].reshape(bt, t, hk)
    kk = qkv[:, 1 * hk:2 * hk].reshape(bt, t, hk)
    v = qkv[:, 2 * hk:3 * hk].reshape(bt, t, hk)

    # Per-head attention.  Heads are contiguous k-wide lane slices, so all
    # slicing stays on the lane axis (no sublane transposes).  Each head's PV
    # result is written directly into its lane slice of the preallocated slab.
    # TODO(synk): for long sequences replace the materialized (bt, t, t) f32
    # logits with flash-style online-softmax KV tiling (O(t*k) VMEM) before
    # scaling t — mandatory on v7x's 64 MiB VMEM.
    for h in range(heads):
        sl = slice(h * k, (h + 1) * k)
        qh, kh, vh = q[:, :, sl], kk[:, :, sl], v[:, :, sl]
        # logits = q @ k^T, contraction over the feature axis of both operands.
        logits = jnp.einsum('bqd,bkd->bqk', qh, kh,
                            preferred_element_type=jnp.float32)     # (bt, t, t)
        mx = jnp.max(logits, axis=-1, keepdims=True)
        e = jnp.exp(logits - mx)
        # EUP reciprocal instead of a VALU divide (softmax math stays f32).
        p = e * pl.reciprocal(jnp.sum(e, axis=-1, keepdims=True),
                              approx=approx_recip)
        oh = jnp.einsum('bqk,bkd->bqd', p.astype(compute_dtype), vh,
                        preferred_element_type=jnp.float32)         # (bt, t, k)
        slab_ref[:, sl] = oh.reshape(m, k).astype(slab_ref.dtype)

    # ONE unifyheads matmul from the lane-dense (m, heads*k) slab.
    out = jnp.dot(slab_ref[...], wu_ref[...], preferred_element_type=jnp.float32)
    out = out + bias_ref[...]                         # (1, k) broadcasts over rows
    o_ref[...] = out.reshape(o_ref.shape).astype(o_ref.dtype)


# ----------------------------------------------------------------------------- sizing
def _tpu_generation():
    """Best-effort TPU generation probe: 'v5' | 'v6' | 'v7' | None."""
    try:
        kind = jax.devices()[0].device_kind.lower()
    except Exception:
        return None
    for digit, gen in (("7", "v7"), ("6", "v6"), ("5", "v5")):
        if digit in kind:
            return gen
    return None


def _vmem_estimate_bytes(batch_tile, t, k, heads, compute_dtype):
    """Rough VMEM footprint of one grid step (tiles, weights, intermediates)."""
    m = batch_tile * t
    hk = heads * k
    cdb = int(jnp.dtype(compute_dtype).itemsize)
    io = 2 * 2 * batch_tile * t * k * 4              # x/out tiles, double-buffered
    weights = 2 * (k * 3 * hk + hk * k + k) * cdb    # fused Wqkv + Wu + bias
    proj = m * 3 * hk * (4 + cdb)                    # qkv f32 result + cast copy
    slab = m * hk * max(cdb, 4)
    attn = 3 * batch_tile * t * t * 4 + 2 * batch_tile * t * k * 4
    return io + weights + proj + slab + attn


def _pick_batch_tile(b, t, k, heads, compute_dtype, gen, override=None):
    # Divisors of b whose lane-dense (d, t*k) block keeps the sublane dim either
    # full (== b) or a multiple of 8 (TPU (8, 128) tiling rule).
    cands = [d for d in range(1, b + 1) if b % d == 0 and (d == b or d % 8 == 0)]
    if override is not None:
        target = max(1, min(int(override), b))
    else:
        # MXU M-dim target: 128 on v5e (4x128^2 MXU), 256 on v6e/v7x (2x256^2).
        m_target = 128 if gen == "v5" else 256
        target = max(1, min(b, max(1, m_target // t)))
        # v7x has 2 TensorCores per chip: keep >= 2 parallel grid blocks.
        if gen == "v7" and b >= 2:
            target = min(target, max(1, b // 2))
    # VMEM budget: v7x has only 64 MiB physical (32 MiB scoped default).
    budget = (40 if gen == "v7" else 80) * 1024 * 1024
    fits = [d for d in cands
            if _vmem_estimate_bytes(d, t, k, heads, compute_dtype) <= budget]
    pool = fits if fits else cands
    ok = [d for d in pool if d <= target]
    return max(ok) if ok else min(pool)


# ----------------------------------------------------------------------------- wrapper
def self_attention_pallas(x, wq, wk, wv, wu, bu, heads, *,
                          compute_dtype=jnp.float32, batch_tile=None):
    """Fused multi-head self-attention forward.

    x: (b, t, k).  wq/wk/wv: (k*heads, k) PyTorch-layout Linear weights
    (out_features, in_features).  wu: (k, heads*k), bu: (k,).

    compute_dtype: dtype fed to the MXU.  float32 gives exact parity with the
    PyTorch module; bfloat16 halves weight DMA bytes and doubles MXU throughput
    (accumulation, softmax math and I/O stay float32).  Note v5e has no bf16
    VPU/EUP, so benchmark the bf16 path there before adopting it.
    """
    b, t, k = x.shape
    hk = heads * k
    scale = float(k) ** (-0.25)
    cd = compute_dtype
    approx_recip = bool(cd != jnp.float32)

    # One-time weight prep (amortized under jit): (in, out) layout, q/k scaling
    # folded in, q/k/v fused into ONE (k, 3*heads*k) matrix, cast to MXU dtype.
    wqkv = jnp.concatenate([wq.T * scale, wk.T * scale, wv.T], axis=1).astype(cd)
    wu_t = wu.T.astype(cd)                        # (heads*k, k)
    bias2d = bu.reshape(1, k).astype(jnp.float32)

    gen = _tpu_generation()
    bt = _pick_batch_tile(b, t, k, heads, cd, gen, override=batch_tile)
    grid = (b // bt,)

    kernel = partial(_self_attn_kernel, heads=heads, seq=t, feat=k,
                     compute_dtype=cd, approx_recip=approx_recip)

    # Only raise the scoped VMEM window when the estimate actually needs it
    # (and never past ~3/4 of v7x's 64 MiB physical VMEM).
    est = _vmem_estimate_bytes(bt, t, k, heads, cd)
    cp_kwargs = dict(dimension_semantics=("parallel",))
    if est > 16 * 1024 * 1024:
        cap = (48 if gen == "v7" else 100) * 1024 * 1024
        cp_kwargs["vmem_limit_bytes"] = int(min(max(est * 1.3, 32 * 1024 * 1024), cap))
    compiler_params = pltpu.CompilerParams(**cp_kwargs)

    def run(dense_io, single_buffer_weights):
        def const_spec(shape):
            zeros = (0,) * len(shape)
            if single_buffer_weights:
                # Constant index_map -> no need to double-buffer these blocks.
                return pl.BlockSpec(shape, lambda i, _z=zeros: _z,
                                    pipeline_mode=pl.Buffered(1))
            return pl.BlockSpec(shape, lambda i, _z=zeros: _z)

        if dense_io:
            # Lane-dense I/O: last dim t*k (>= 128-wide stores when t*k % 128 == 0).
            x_in = x.reshape(b, t * k)
            io_block = (bt, t * k)
            io_map = lambda i: (i, 0)
            out_shape = jax.ShapeDtypeStruct((b, t * k), x.dtype)
        else:
            x_in = x
            io_block = (bt, t, k)
            io_map = lambda i: (i, 0, 0)
            out_shape = jax.ShapeDtypeStruct((b, t, k), x.dtype)

        out = pl.pallas_call(
            kernel,
            out_shape=out_shape,
            grid_spec=pltpu.PrefetchScalarGridSpec(
                num_scalar_prefetch=0,
                grid=grid,
                in_specs=[
                    pl.BlockSpec(io_block, io_map),      # x tile
                    const_spec((k, 3 * hk)),             # fused Wqkv (resident)
                    const_spec((hk, k)),                 # Wu (resident)
                    const_spec((1, k)),                  # bias
                ],
                out_specs=pl.BlockSpec(io_block, io_map),
                scratch_shapes=[pltpu.VMEM((bt * t, hk), cd)],
            ),
            compiler_params=compiler_params,
        )(x_in, wqkv, wu_t, bias2d)
        return out.reshape(b, t, k)

    # Capability ladder (works when called eagerly): try lane-dense I/O and
    # single-buffered weights first; fall back if this JAX/Mosaic version does
    # not support the required shape-cast / pipeline_mode.  Semantics are
    # identical across configs — only layout/buffering differ.
    last_err = None
    for cfg in ((True, True), (True, False), (False, True), (False, False)):
        try:
            return run(*cfg)
        except Exception as err:  # noqa: BLE001 - fall through to safer config
            last_err = err
    raise last_err


# ----------------------------------------------------------------------------- reference
def self_attention_ref(x, wq, wk, wv, wu, bu, heads):
    """Pure-JAX reference mirroring the PyTorch forward (softmax over keys)."""
    b, t, k = x.shape
    h = heads
    q = (x @ wq.T).reshape(b, t, h, k).transpose(0, 2, 1, 3)   # (b,h,t,k)
    kk = (x @ wk.T).reshape(b, t, h, k).transpose(0, 2, 1, 3)
    v = (x @ wv.T).reshape(b, t, h, k).transpose(0, 2, 1, 3)
    scale = float(k) ** (-0.25)
    q = q * scale
    kk = kk * scale
    dot = jnp.einsum('bhtk,bhsk->bhts', q, kk)
    dot = jax.nn.softmax(dot, axis=-1)
    out = jnp.einsum('bhts,bhsk->bhtk', dot, v)                # (b,h,t,k)
    out = out.transpose(0, 2, 1, 3).reshape(b, t, h * k)
    return out @ wu.T + bu


if __name__ == "__main__":
    B, T, K, HEADS = 2, 8, 32, 8

    key = jax.random.PRNGKey(0)
    kx, kq, kk_, kv, ku, kb = jax.random.split(key, 6)

    x = jax.random.normal(kx, (B, T, K), dtype=jnp.float32)

    # PyTorch-default-ish uniform init: U(-1/sqrt(fan_in), 1/sqrt(fan_in)).
    bnd_k = 1.0 / (K ** 0.5)
    bnd_hk = 1.0 / ((HEADS * K) ** 0.5)
    wq = jax.random.uniform(kq, (K * HEADS, K), jnp.float32, -bnd_k, bnd_k)
    wk = jax.random.uniform(kk_, (K * HEADS, K), jnp.float32, -bnd_k, bnd_k)
    wv = jax.random.uniform(kv, (K * HEADS, K), jnp.float32, -bnd_k, bnd_k)
    wu = jax.random.uniform(ku, (K, HEADS * K), jnp.float32, -bnd_hk, bnd_hk)
    bu = jax.random.uniform(kb, (K,), jnp.float32, -bnd_hk, bnd_hk)

    ref = self_attention_ref(x, wq, wk, wv, wu, bu, HEADS)

    # f32 MXU path: exact parity with the PyTorch module (tight tolerance).
    out = self_attention_pallas(x, wq, wk, wv, wu, bu, HEADS)
    out = jax.block_until_ready(out)
    assert out.shape == (B, T, K)
    assert jnp.allclose(out, ref, atol=1e-4, rtol=1e-4), \
        f"f32 max err {jnp.max(jnp.abs(out - ref))}"

    # bf16 MXU path: native MXU input format on v5e/v6e/v7x (looser tolerance).
    out_bf16 = self_attention_pallas(x, wq, wk, wv, wu, bu, HEADS,
                                     compute_dtype=jnp.bfloat16)
    out_bf16 = jax.block_until_ready(out_bf16)
    assert jnp.allclose(out_bf16, ref, atol=5e-2, rtol=5e-2), \
        f"bf16 max err {jnp.max(jnp.abs(out_bf16 - ref))}"

    print("KERNEL_OK")
</pallas_src>

<mosaic_0001>
module attributes {stable_mosaic.version = 11 : i64} {
  func.func @_self_attn_kernel(%arg0: i32, %arg1: memref<2x256xf32, #tpu.memory_space<vmem>>, %arg2: memref<32x768xf32, #tpu.memory_space<vmem>>, %arg3: memref<256x32xf32, #tpu.memory_space<vmem>>, %arg4: memref<1x32xf32, #tpu.memory_space<vmem>>, %arg5: memref<2x256xf32, #tpu.memory_space<vmem>>, %arg6: memref<16x256xf32, #tpu.memory_space<vmem>>) attributes {dimension_semantics = [#tpu.dimension_semantics<parallel>], iteration_bounds = array<i64: 1>, scalar_prefetch = 0 : i64, scratch_operands = 1 : i64, tpu.core_type = #tpu.core_type<tc>, window_params = [{transform_indices = @transform_0, window_bounds = array<i64: 2, 256>}, {pipeline_mode = #tpu.pipeline_mode<synchronous>, transform_indices = @transform_1, window_bounds = array<i64: 32, 768>}, {pipeline_mode = #tpu.pipeline_mode<synchronous>, transform_indices = @transform_2, window_bounds = array<i64: 256, 32>}, {pipeline_mode = #tpu.pipeline_mode<synchronous>, transform_indices = @transform_3, window_bounds = array<i64: 1, 32>}, {transform_indices = @transform_4, window_bounds = array<i64: 2, 256>}]} {
    %c0 = arith.constant 0 : index
    %c0_0 = arith.constant 0 : index
    %0 = vector.load %arg1[%c0, %c0_0] : memref<2x256xf32, #tpu.memory_space<vmem>>, vector<2x256xf32>
    %1 = vector.shape_cast %0 : vector<2x256xf32> to vector<16x32xf32>
    %c0_1 = arith.constant 0 : index
    %c0_2 = arith.constant 0 : index
    %2 = vector.load %arg2[%c0_1, %c0_2] : memref<32x768xf32, #tpu.memory_space<vmem>>, vector<32x768xf32>
    %cst = arith.constant dense<0.000000e+00> : vector<16x768xf32>
    %3 = tpu.matmul %1, %2, %cst {dimension_numbers = #tpu.dot_dimension_numbers<[1], [0], [0], [1], [0, 0, 1, 1], [], []>} : vector<16x32xf32>, vector<32x768xf32>, vector<16x768xf32> -> vector<16x768xf32>
    %4 = vector.extract_strided_slice %3 {offsets = [0, 0], sizes = [16, 256], strides = [1, 1]} : vector<16x768xf32> to vector<16x256xf32>
    %5 = vector.shape_cast %4 : vector<16x256xf32> to vector<2x8x256xf32>
    %6 = vector.extract_strided_slice %3 {offsets = [0, 256], sizes = [16, 256], strides = [1, 1]} : vector<16x768xf32> to vector<16x256xf32>
    %7 = vector.shape_cast %6 : vector<16x256xf32> to vector<2x8x256xf32>
    %8 = vector.extract_strided_slice %3 {offsets = [0, 512], sizes = [16, 256], strides = [1, 1]} : vector<16x768xf32> to vector<16x256xf32>
    %9 = vector.shape_cast %8 : vector<16x256xf32> to vector<2x8x256xf32>
    %10 = vector.extract_strided_slice %5 {offsets = [0, 0, 0], sizes = [2, 8, 32], strides = [1, 1, 1]} : vector<2x8x256xf32> to vector<2x8x32xf32>
    %11 = vector.extract_strided_slice %7 {offsets = [0, 0, 0], sizes = [2, 8, 32], strides = [1, 1, 1]} : vector<2x8x256xf32> to vector<2x8x32xf32>
    %12 = vector.extract_strided_slice %9 {offsets = [0, 0, 0], sizes = [2, 8, 32], strides = [1, 1, 1]} : vector<2x8x256xf32> to vector<2x8x32xf32>
    "tpu.trace_start"() <{level = 10 : i32, message = "bqd,bkd->bqk"}> : () -> ()
    %cst_3 = arith.constant dense<0.000000e+00> : vector<2x8x8xf32>
    %13 = tpu.matmul %10, %11, %cst_3 {dimension_numbers = #tpu.dot_dimension_numbers<[2], [2], [1], [1], [0, 0, 0, 1, 1, 1], [0], [0]>} : vector<2x8x32xf32>, vector<2x8x32xf32>, vector<2x8x8xf32> -> vector<2x8x8xf32>
    "tpu.trace_stop"() : () -> ()
    %cst_4 = arith.constant dense<0xFF800000> : vector<2x8xf32>
    %14 = vector.multi_reduction <maximumf>, %13, %cst_4 [2] : vector<2x8x8xf32> to vector<2x8xf32>
    %15 = vector.shape_cast %14 : vector<2x8xf32> to vector<2x8x1xf32>
    %16 = vector.broadcast %15 : vector<2x8x1xf32> to vector<2x8x8xf32>
    %17 = arith.subf %13, %16 : vector<2x8x8xf32>
    %18 = math.exp %17 : vector<2x8x8xf32>
    %cst_5 = arith.constant dense<0.000000e+00> : vector<2x8xf32>
    %19 = vector.multi_reduction <add>, %18, %cst_5 [2] : vector<2x8x8xf32> to vector<2x8xf32>
    %20 = vector.shape_cast %19 : vector<2x8xf32> to vector<2x8x1xf32>
    %21 = tpu.reciprocal %20 : vector<2x8x1xf32> -> vector<2x8x1xf32>
    %22 = vector.broadcast %21 : vector<2x8x1xf32> to vector<2x8x8xf32>
    %23 = arith.mulf %18, %22 : vector<2x8x8xf32>
    "tpu.trace_start"() <{level = 10 : i32, message = "bqk,bkd->bqd"}> : () -> ()
    %cst_6 = arith.constant dense<0.000000e+00> : vector<2x8x32xf32>
    %24 = tpu.matmul %23, %12, %cst_6 {dimension_numbers = #tpu.dot_dimension_numbers<[2], [1], [1], [2], [0, 0, 0, 1, 1, 2], [0], [0]>} : vector<2x8x8xf32>, vector<2x8x32xf32>, vector<2x8x32xf32> -> vector<2x8x32xf32>
    "tpu.trace_stop"() : () -> ()
    %25 = vector.shape_cast %24 : vector<2x8x32xf32> to vector<16x32xf32>
    %c0_7 = arith.constant 0 : index
    %c0_8 = arith.constant 0 : index
    %26 = vector.load %arg6[%c0_7, %c0_8] : memref<16x256xf32, #tpu.memory_space<vmem>>, vector<16x32xf32>
    tpu.vector_store %arg6[%c0_7, %c0_8], %25 {strides = array<i32>} : memref<16x256xf32, #tpu.memory_space<vmem>>, vector<16x32xf32>,
    %27 = vector.extract_strided_slice %5 {offsets = [0, 0, 32], sizes = [2, 8, 32], strides = [1, 1, 1]} : vector<2x8x256xf32> to vector<2x8x32xf32>
    %28 = vector.extract_strided_slice %7 {offsets = [0, 0, 32], sizes = [2, 8, 32], strides = [1, 1, 1]} : vector<2x8x256xf32> to vector<2x8x32xf32>
    %29 = vector.extract_strided_slice %9 {offsets = [0, 0, 32], sizes = [2, 8, 32], strides = [1, 1, 1]} : vector<2x8x256xf32> to vector<2x8x32xf32>
    "tpu.trace_start"() <{level = 10 : i32, message = "bqd,bkd->bqk"}> : () -> ()
    %cst_9 = arith.constant dense<0.000000e+00> : vector<2x8x8xf32>
    %30 = tpu.matmul %27, %28, %cst_9 {dimension_numbers = #tpu.dot_dimension_numbers<[2], [2], [1], [1], [0, 0, 0, 1, 1, 1], [0], [0]>} : vector<2x8x32xf32>, vector<2x8x32xf32>, vector<2x8x8xf32> -> vector<2x8x8xf32>
    "tpu.trace_stop"() : () -> ()
    %cst_10 = arith.constant dense<0xFF800000> : vector<2x8xf32>
    %31 = vector.multi_reduction <maximumf>, %30, %cst_10 [2] : vector<2x8x8xf32> to vector<2x8xf32>
    %32 = vector.shape_cast %31 : vector<2x8xf32> to vector<2x8x1xf32>
    %33 = vector.broadcast %32 : vector<2x8x1xf32> to vector<2x8x8xf32>
    %34 = arith.subf %30, %33 : vector<2x8x8xf32>
    %35 = math.exp %34 : vector<2x8x8xf32>
    %cst_11 = arith.constant dense<0.000000e+00> : vector<2x8xf32>
    %36 = vector.multi_reduction <add>, %35, %cst_11 [2] : vector<2x8x8xf32> to vector<2x8xf32>
    %37 = vector.shape_cast %36 : vector<2x8xf32> to vector<2x8x1xf32>
    %38 = tpu.reciprocal %37 : vector<2x8x1xf32> -> vector<2x8x1xf32>
    %39 = vector.broadcast %38 : vector<2x8x1xf32> to vector<2x8x8xf32>
    %40 = arith.mulf %35, %39 : vector<2x8x8xf32>
    "tpu.trace_start"() <{level = 10 : i32, message = "bqk,bkd->bqd"}> : () -> ()
    %cst_12 = arith.constant dense<0.000000e+00> : vector<2x8x32xf32>
    %41 = tpu.matmul %40, %29, %cst_12 {dimension_numbers = #tpu.dot_dimension_numbers<[2], [1], [1], [2], [0, 0, 0, 1, 1, 2], [0], [0]>} : vector<2x8x8xf32>, vector<2x8x32xf32>, vector<2x8x32xf32> -> vector<2x8x32xf32>
    "tpu.trace_stop"() : () -> ()
    %42 = vector.shape_cast %41 : vector<2x8x32xf32> to vector<16x32xf32>
    %c0_13 = arith.constant 0 : index
    %c32 = arith.constant 32 : index
    %43 = vector.load %arg6[%c0_13, %c32] : memref<16x256xf32, #tpu.memory_space<vmem>>, vector<16x32xf32>
    tpu.vector_store %arg6[%c0_13, %c32], %42 {strides = array<i32>} : memref<16x256xf32, #tpu.memory_space<vmem>>, vector<16x32xf32>,
    %44 = vector.extract_strided_slice %5 {offsets = [0, 0, 64], sizes = [2, 8, 32], strides = [1, 1, 1]} : vector<2x8x256xf32> to vector<2x8x32xf32>
    %45 = vector.extract_strided_slice %7 {offsets = [0, 0, 64], sizes = [2, 8, 32], strides = [1, 1, 1]} : vector<2x8x256xf32> to vector<2x8x32xf32>
    %46 = vector.extract_strided_slice %9 {offsets = [0, 0, 64], sizes = [2, 8, 32], strides = [1, 1, 1]} : vector<2x8x256xf32> to vector<2x8x32xf32>
    "tpu.trace_start"() <{level = 10 : i32, message = "bqd,bkd->bqk"}> : () -> ()
    %cst_14 = arith.constant dense<0.000000e+00> : vector<2x8x8xf32>
    %47 = tpu.matmul %44, %45, %cst_14 {dimension_numbers = #tpu.dot_dimension_numbers<[2], [2], [1], [1], [0, 0, 0, 1, 1, 1], [0], [0]>} : vector<2x8x32xf32>, vector<2x8x32xf32>, vector<2x8x8xf32> -> vector<2x8x8xf32>
    "tpu.trace_stop"() : () -> ()
    %cst_15 = arith.constant dense<0xFF800000> : vector<2x8xf32>
    %48 = vector.multi_reduction <maximumf>, %47, %cst_15 [2] : vector<2x8x8xf32> to vector<2x8xf32>
    %49 = vector.shape_cast %48 : vector<2x8xf32> to vector<2x8x1xf32>
    %50 = vector.broadcast %49 : vector<2x8x1xf32> to vector<2x8x8xf32>
    %51 = arith.subf %47, %50 : vector<2x8x8xf32>
    %52 = math.exp %51 : vector<2x8x8xf32>
    %cst_16 = arith.constant dense<0.000000e+00> : vector<2x8xf32>
    %53 = vector.multi_reduction <add>, %52, %cst_16 [2] : vector<2x8x8xf32> to vector<2x8xf32>
    %54 = vector.shape_cast %53 : vector<2x8xf32> to vector<2x8x1xf32>
    %55 = tpu.reciprocal %54 : vector<2x8x1xf32> -> vector<2x8x1xf32>
    %56 = vector.broadcast %55 : vector<2x8x1xf32> to vector<2x8x8xf32>
    %57 = arith.mulf %52, %56 : vector<2x8x8xf32>
    "tpu.trace_start"() <{level = 10 : i32, message = "bqk,bkd->bqd"}> : () -> ()
    %cst_17 = arith.constant dense<0.000000e+00> : vector<2x8x32xf32>
    %58 = tpu.matmul %57, %46, %cst_17 {dimension_numbers = #tpu.dot_dimension_numbers<[2], [1], [1], [2], [0, 0, 0, 1, 1, 2], [0], [0]>} : vector<2x8x8xf32>, vector<2x8x32xf32>, vector<2x8x32xf32> -> vector<2x8x32xf32>
    "tpu.trace_stop"() : () -> ()
    %59 = vector.shape_cast %58 : vector<2x8x32xf32> to vector<16x32xf32>
    %c0_18 = arith.constant 0 : index
    %c64 = arith.constant 64 : index
    %60 = vector.load %arg6[%c0_18, %c64] : memref<16x256xf32, #tpu.memory_space<vmem>>, vector<16x32xf32>
    tpu.vector_store %arg6[%c0_18, %c64], %59 {strides = array<i32>} : memref<16x256xf32, #tpu.memory_space<vmem>>, vector<16x32xf32>,
    %61 = vector.extract_strided_slice %5 {offsets = [0, 0, 96], sizes = [2, 8, 32], strides = [1, 1, 1]} : vector<2x8x256xf32> to vector<2x8x32xf32>
    %62 = vector.extract_strided_slice %7 {offsets = [0, 0, 96], sizes = [2, 8, 32], strides = [1, 1, 1]} : vector<2x8x256xf32> to vector<2x8x32xf32>
    %63 = vector.extract_strided_slice %9 {offsets = [0, 0, 96], sizes = [2, 8, 32], strides = [1, 1, 1]} : vector<2x8x256xf32> to vector<2x8x32xf32>
    "tpu.trace_start"() <{level = 10 : i32, message = "bqd,bkd->bqk"}> : () -> ()
    %cst_19 = arith.constant dense<0.000000e+00> : vector<2x8x8xf32>
    %64 = tpu.matmul %61, %62, %cst_19 {dimension_numbers = #tpu.dot_dimension_numbers<[2], [2], [1], [1], [0, 0, 0, 1, 1, 1], [0], [0]>} : vector<2x8x32xf32>, vector<2x8x32xf32>, vector<2x8x8xf32> -> vector<2x8x8xf32>
    "tpu.trace_stop"() : () -> ()
    %cst_20 = arith.constant dense<0xFF800000> : vector<2x8xf32>
    %65 = vector.multi_reduction <maximumf>, %64, %cst_20 [2] : vector<2x8x8xf32> to vector<2x8xf32>
    %66 = vector.shape_cast %65 : vector<2x8xf32> to vector<2x8x1xf32>
    %67 = vector.broadcast %66 : vector<2x8x1xf32> to vector<2x8x8xf32>
    %68 = arith.subf %64, %67 : vector<2x8x8xf32>
    %69 = math.exp %68 : vector<2x8x8xf32>
    %cst_21 = arith.constant dense<0.000000e+00> : vector<2x8xf32>
    %70 = vector.multi_reduction <add>, %69, %cst_21 [2] : vector<2x8x8xf32> to vector<2x8xf32>
    %71 = vector.shape_cast %70 : vector<2x8xf32> to vector<2x8x1xf32>
    %72 = tpu.reciprocal %71 : vector<2x8x1xf32> -> vector<2x8x1xf32>
    %73 = vector.broadcast %72 : vector<2x8x1xf32> to vector<2x8x8xf32>
    %74 = arith.mulf %69, %73 : vector<2x8x8xf32>
    "tpu.trace_start"() <{level = 10 : i32, message = "bqk,bkd->bqd"}> : () -> ()
    %cst_22 = arith.constant dense<0.000000e+00> : vector<2x8x32xf32>
    %75 = tpu.matmul %74, %63, %cst_22 {dimension_numbers = #tpu.dot_dimension_numbers<[2], [1], [1], [2], [0, 0, 0, 1, 1, 2], [0], [0]>} : vector<2x8x8xf32>, vector<2x8x32xf32>, vector<2x8x32xf32> -> vector<2x8x32xf32>
    "tpu.trace_stop"() : () -> ()
    %76 = vector.shape_cast %75 : vector<2x8x32xf32> to vector<16x32xf32>
    %c0_23 = arith.constant 0 : index
    %c96 = arith.constant 96 : index
    %77 = vector.load %arg6[%c0_23, %c96] : memref<16x256xf32, #tpu.memory_space<vmem>>, vector<16x32xf32>
    tpu.vector_store %arg6[%c0_23, %c96], %76 {strides = array<i32>} : memref<16x256xf32, #tpu.memory_space<vmem>>, vector<16x32xf32>,
    %78 = vector.extract_strided_slice %5 {offsets = [0, 0, 128], sizes = [2, 8, 32], strides = [1, 1, 1]} : vector<2x8x256xf32> to vector<2x8x32xf32>
    %79 = vector.extract_strided_slice %7 {offsets = [0, 0, 128], sizes = [2, 8, 32], strides = [1, 1, 1]} : vector<2x8x256xf32> to vector<2x8x32xf32>
    %80 = vector.extract_strided_slice %9 {offsets = [0, 0, 128], sizes = [2, 8, 32], strides = [1, 1, 1]} : vector<2x8x256xf32> to vector<2x8x32xf32>
    "tpu.trace_start"() <{level = 10 : i32, message = "bqd,bkd->bqk"}> : () -> ()
    %cst_24 = arith.constant dense<0.000000e+00> : vector<2x8x8xf32>
    %81 = tpu.matmul %78, %79, %cst_24 {dimension_numbers = #tpu.dot_dimension_numbers<[2], [2], [1], [1], [0, 0, 0, 1, 1, 1], [0], [0]>} : vector<2x8x32xf32>, vector<2x8x32xf32>, vector<2x8x8xf32> -> vector<2x8x8xf32>
    "tpu.trace_stop"() : () -> ()
    %cst_25 = arith.constant dense<0xFF800000> : vector<2x8xf32>
    %82 = vector.multi_reduction <maximumf>, %81, %cst_25 [2] : vector<2x8x8xf32> to vector<2x8xf32>
    %83 = vector.shape_cast %82 : vector<2x8xf32> to vector<2x8x1xf32>
    %84 = vector.broadcast %83 : vector<2x8x1xf32> to vector<2x8x8xf32>
    %85 = arith.subf %81, %84 : vector<2x8x8xf32>
    %86 = math.exp %85 : vector<2x8x8xf32>
    %cst_26 = arith.constant dense<0.000000e+00> : vector<2x8xf32>
    %87 = vector.multi_reduction <add>, %86, %cst_26 [2] : vector<2x8x8xf32> to vector<2x8xf32>
    %88 = vector.shape_cast %87 : vector<2x8xf32> to vector<2x8x1xf32>
    %89 = tpu.reciprocal %88 : vector<2x8x1xf32> -> vector<2x8x1xf32>
    %90 = vector.broadcast %89 : vector<2x8x1xf32> to vector<2x8x8xf32>
    %91 = arith.mulf %86, %90 : vector<2x8x8xf32>
    "tpu.trace_start"() <{level = 10 : i32, message = "bqk,bkd->bqd"}> : () -> ()
    %cst_27 = arith.constant dense<0.000000e+00> : vector<2x8x32xf32>
    %92 = tpu.matmul %91, %80, %cst_27 {dimension_numbers = #tpu.dot_dimension_numbers<[2], [1], [1], [2], [0, 0, 0, 1, 1, 2], [0], [0]>} : vector<2x8x8xf32>, vector<2x8x32xf32>, vector<2x8x32xf32> -> vector<2x8x32xf32>
    "tpu.trace_stop"() : () -> ()
    %93 = vector.shape_cast %92 : vector<2x8x32xf32> to vector<16x32xf32>
    %c0_28 = arith.constant 0 : index
    %c128 = arith.constant 128 : index
    %94 = vector.load %arg6[%c0_28, %c128] : memref<16x256xf32, #tpu.memory_space<vmem>>, vector<16x32xf32>
    tpu.vector_store %arg6[%c0_28, %c128], %93 {strides = array<i32>} : memref<16x256xf32, #tpu.memory_space<vmem>>, vector<16x32xf32>,
    %95 = vector.extract_strided_slice %5 {offsets = [0, 0, 160], sizes = [2, 8, 32], strides = [1, 1, 1]} : vector<2x8x256xf32> to vector<2x8x32xf32>
    %96 = vector.extract_strided_slice %7 {offsets = [0, 0, 160], sizes = [2, 8, 32], strides = [1, 1, 1]} : vector<2x8x256xf32> to vector<2x8x32xf32>
    %97 = vector.extract_strided_slice %9 {offsets = [0, 0, 160], sizes = [2, 8, 32], strides = [1, 1, 1]} : vector<2x8x256xf32> to vector<2x8x32xf32>
    "tpu.trace_start"() <{level = 10 : i32, message = "bqd,bkd->bqk"}> : () -> ()
    %cst_29 = arith.constant dense<0.000000e+00> : vector<2x8x8xf32>
    %98 = tpu.matmul %95, %96, %cst_29 {dimension_numbers = #tpu.dot_dimension_numbers<[2], [2], [1], [1], [0, 0, 0, 1, 1, 1], [0], [0]>} : vector<2x8x32xf32>, vector<2x8x32xf32>, vector<2x8x8xf32> -> vector<2x8x8xf32>
    "tpu.trace_stop"() : () -> ()
    %cst_30 = arith.constant dense<0xFF800000> : vector<2x8xf32>
    %99 = vector.multi_reduction <maximumf>, %98, %cst_30 [2] : vector<2x8x8xf32> to vector<2x8xf32>
    %100 = vector.shape_cast %99 : vector<2x8xf32> to vector<2x8x1xf32>
    %101 = vector.broadcast %100 : vector<2x8x1xf32> to vector<2x8x8xf32>
    %102 = arith.subf %98, %101 : vector<2x8x8xf32>
    %103 = math.exp %102 : vector<2x8x8xf32>
    %cst_31 = arith.constant dense<0.000000e+00> : vector<2x8xf32>
    %104 = vector.multi_reduction <add>, %103, %cst_31 [2] : vector<2x8x8xf32> to vector<2x8xf32>
    %105 = vector.shape_cast %104 : vector<2x8xf32> to vector<2x8x1xf32>
    %106 = tpu.reciprocal %105 : vector<2x8x1xf32> -> vector<2x8x1xf32>
    %107 = vector.broadcast %106 : vector<2x8x1xf32> to vector<2x8x8xf32>
    %108 = arith.mulf %103, %107 : vector<2x8x8xf32>
    "tpu.trace_start"() <{level = 10 : i32, message = "bqk,bkd->bqd"}> : () -> ()
    %cst_32 = arith.constant dense<0.000000e+00> : vector<2x8x32xf32>
    %109 = tpu.matmul %108, %97, %cst_32 {dimension_numbers = #tpu.dot_dimension_numbers<[2], [1], [1], [2], [0, 0, 0, 1, 1, 2], [0], [0]>} : vector<2x8x8xf32>, vector<2x8x32xf32>, vector<2x8x32xf32> -> vector<2x8x32xf32>
    "tpu.trace_stop"() : () -> ()
    %110 = vector.shape_cast %109 : vector<2x8x32xf32> to vector<16x32xf32>
    %c0_33 = arith.constant 0 : index
    %c160 = arith.constant 160 : index
    %111 = vector.load %arg6[%c0_33, %c160] : memref<16x256xf32, #tpu.memory_space<vmem>>, vector<16x32xf32>
    tpu.vector_store %arg6[%c0_33, %c160], %110 {strides = array<i32>} : memref<16x256xf32, #tpu.memory_space<vmem>>, vector<16x32xf32>,
    %112 = vector.extract_strided_slice %5 {offsets = [0, 0, 192], sizes = [2, 8, 32], strides = [1, 1, 1]} : vector<2x8x256xf32> to vector<2x8x32xf32>
    %113 = vector.extract_strided_slice %7 {offsets = [0, 0, 192], sizes = [2, 8, 32], strides = [1, 1, 1]} : vector<2x8x256xf32> to vector<2x8x32xf32>
    %114 = vector.extract_strided_slice %9 {offsets = [0, 0, 192], sizes = [2, 8, 32], strides = [1, 1, 1]} : vector<2x8x256xf32> to vector<2x8x32xf32>
    "tpu.trace_start"() <{level = 10 : i32, message = "bqd,bkd->bqk"}> : () -> ()
    %cst_34 = arith.constant dense<0.000000e+00> : vector<2x8x8xf32>
    %115 = tpu.matmul %112, %113, %cst_34 {dimension_numbers = #tpu.dot_dimension_numbers<[2], [2], [1], [1], [0, 0, 0, 1, 1, 1], [0], [0]>} : vector<2x8x32xf32>, vector<2x8x32xf32>, vector<2x8x8xf32> -> vector<2x8x8xf32>
    "tpu.trace_stop"() : () -> ()
    %cst_35 = arith.constant dense<0xFF800000> : vector<2x8xf32>
    %116 = vector.multi_reduction <maximumf>, %115, %cst_35 [2] : vector<2x8x8xf32> to vector<2x8xf32>
    %117 = vector.shape_cast %116 : vector<2x8xf32> to vector<2x8x1xf32>
    %118 = vector.broadcast %117 : vector<2x8x1xf32> to vector<2x8x8xf32>
    %119 = arith.subf %115, %118 : vector<2x8x8xf32>
    %120 = math.exp %119 : vector<2x8x8xf32>
    %cst_36 = arith.constant dense<0.000000e+00> : vector<2x8xf32>
    %121 = vector.multi_reduction <add>, %120, %cst_36 [2] : vector<2x8x8xf32> to vector<2x8xf32>
    %122 = vector.shape_cast %121 : vector<2x8xf32> to vector<2x8x1xf32>
    %123 = tpu.reciprocal %122 : vector<2x8x1xf32> -> vector<2x8x1xf32>
    %124 = vector.broadcast %123 : vector<2x8x1xf32> to vector<2x8x8xf32>
    %125 = arith.mulf %120, %124 : vector<2x8x8xf32>
    "tpu.trace_start"() <{level = 10 : i32, message = "bqk,bkd->bqd"}> : () -> ()
    %cst_37 = arith.constant dense<0.000000e+00> : vector<2x8x32xf32>
    %126 = tpu.matmul %125, %114, %cst_37 {dimension_numbers = #tpu.dot_dimension_numbers<[2], [1], [1], [2], [0, 0, 0, 1, 1, 2], [0], [0]>} : vector<2x8x8xf32>, vector<2x8x32xf32>, vector<2x8x32xf32> -> vector<2x8x32xf32>
    "tpu.trace_stop"() : () -> ()
    %127 = vector.shape_cast %126 : vector<2x8x32xf32> to vector<16x32xf32>
    %c0_38 = arith.constant 0 : index
    %c192 = arith.constant 192 : index
    %128 = vector.load %arg6[%c0_38, %c192] : memref<16x256xf32, #tpu.memory_space<vmem>>, vector<16x32xf32>
    tpu.vector_store %arg6[%c0_38, %c192], %127 {strides = array<i32>} : memref<16x256xf32, #tpu.memory_space<vmem>>, vector<16x32xf32>,
    %129 = vector.extract_strided_slice %5 {offsets = [0, 0, 224], sizes = [2, 8, 32], strides = [1, 1, 1]} : vector<2x8x256xf32> to vector<2x8x32xf32>
    %130 = vector.extract_strided_slice %7 {offsets = [0, 0, 224], sizes = [2, 8, 32], strides = [1, 1, 1]} : vector<2x8x256xf32> to vector<2x8x32xf32>
    %131 = vector.extract_strided_slice %9 {offsets = [0, 0, 224], sizes = [2, 8, 32], strides = [1, 1, 1]} : vector<2x8x256xf32> to vector<2x8x32xf32>
    "tpu.trace_start"() <{level = 10 : i32, message = "bqd,bkd->bqk"}> : () -> ()
    %cst_39 = arith.constant dense<0.000000e+00> : vector<2x8x8xf32>
    %132 = tpu.matmul %129, %130, %cst_39 {dimension_numbers = #tpu.dot_dimension_numbers<[2], [2], [1], [1], [0, 0, 0, 1, 1, 1], [0], [0]>} : vector<2x8x32xf32>, vector<2x8x32xf32>, vector<2x8x8xf32> -> vector<2x8x8xf32>
    "tpu.trace_stop"() : () -> ()
    %cst_40 = arith.constant dense<0xFF800000> : vector<2x8xf32>
    %133 = vector.multi_reduction <maximumf>, %132, %cst_40 [2] : vector<2x8x8xf32> to vector<2x8xf32>
    %134 = vector.shape_cast %133 : vector<2x8xf32> to vector<2x8x1xf32>
    %135 = vector.broadcast %134 : vector<2x8x1xf32> to vector<2x8x8xf32>
    %136 = arith.subf %132, %135 : vector<2x8x8xf32>
    %137 = math.exp %136 : vector<2x8x8xf32>
    %cst_41 = arith.constant dense<0.000000e+00> : vector<2x8xf32>
    %138 = vector.multi_reduction <add>, %137, %cst_41 [2] : vector<2x8x8xf32> to vector<2x8xf32>
    %139 = vector.shape_cast %138 : vector<2x8xf32> to vector<2x8x1xf32>
    %140 = tpu.reciprocal %139 : vector<2x8x1xf32> -> vector<2x8x1xf32>
    %141 = vector.broadcast %140 : vector<2x8x1xf32> to vector<2x8x8xf32>
    %142 = arith.mulf %137, %141 : vector<2x8x8xf32>
    "tpu.trace_start"() <{level = 10 : i32, message = "bqk,bkd->bqd"}> : () -> ()
    %cst_42 = arith.constant dense<0.000000e+00> : vector<2x8x32xf32>
    %143 = tpu.matmul %142, %131, %cst_42 {dimension_numbers = #tpu.dot_dimension_numbers<[2], [1], [1], [2], [0, 0, 0, 1, 1, 2], [0], [0]>} : vector<2x8x8xf32>, vector<2x8x32xf32>, vector<2x8x32xf32> -> vector<2x8x32xf32>
    "tpu.trace_stop"() : () -> ()
    %144 = vector.shape_cast %143 : vector<2x8x32xf32> to vector<16x32xf32>
    %c0_43 = arith.constant 0 : index
    %c224 = arith.constant 224 : index
    %145 = vector.load %arg6[%c0_43, %c224] : memref<16x256xf32, #tpu.memory_space<vmem>>, vector<16x32xf32>
    tpu.vector_store %arg6[%c0_43, %c224], %144 {strides = array<i32>} : memref<16x256xf32, #tpu.memory_space<vmem>>, vector<16x32xf32>,
    %c0_44 = arith.constant 0 : index
    %c0_45 = arith.constant 0 : index
    %146 = vector.load %arg6[%c0_44, %c0_45] : memref<16x256xf32, #tpu.memory_space<vmem>>, vector<16x256xf32>
    %c0_46 = arith.constant 0 : index
    %c0_47 = arith.constant 0 : index
    %147 = vector.load %arg3[%c0_46, %c0_47] : memref<256x32xf32, #tpu.memory_space<vmem>>, vector<256x32xf32>
    %cst_48 = arith.constant dense<0.000000e+00> : vector<16x32xf32>
    %148 = tpu.matmul %146, %147, %cst_48 {dimension_numbers = #tpu.dot_dimension_numbers<[1], [0], [0], [1], [0, 0, 1, 1], [], []>} : vector<16x256xf32>, vector<256x32xf32>, vector<16x32xf32> -> vector<16x32xf32>
    %c0_49 = arith.constant 0 : index
    %c0_50 = arith.constant 0 : index
    %149 = vector.load %arg4[%c0_49, %c0_50] : memref<1x32xf32, #tpu.memory_space<vmem>>, vector<1x32xf32>
    %150 = vector.broadcast %149 : vector<1x32xf32> to vector<16x32xf32>
    %151 = arith.addf %148, %150 : vector<16x32xf32>
    %152 = vector.shape_cast %151 : vector<16x32xf32> to vector<2x256xf32>
    %c0_51 = arith.constant 0 : index
    %c0_52 = arith.constant 0 : index
    %153 = vector.load %arg5[%c0_51, %c0_52] : memref<2x256xf32, #tpu.memory_space<vmem>>, vector<2x256xf32>
    tpu.vector_store %arg5[%c0_51, %c0_52], %152 {strides = array<i32>} : memref<2x256xf32, #tpu.memory_space<vmem>>, vector<2x256xf32>,
    return
  }
  func.func @transform_0(%arg0: i32) -> (i32, i32) {
    %c0_i32 = arith.constant 0 : i32
    %c0_i32_0 = arith.constant 0 : i32
    return %arg0, %c0_i32 : i32, i32
  }
  func.func @transform_1(%arg0: i32) -> (i32, i32) {
    %c0_i32 = arith.constant 0 : i32
    %c0_i32_0 = arith.constant 0 : i32
    %c0_i32_1 = arith.constant 0 : i32
    return %c0_i32, %c0_i32_0 : i32, i32
  }
  func.func @transform_2(%arg0: i32) -> (i32, i32) {
    %c0_i32 = arith.constant 0 : i32
    %c0_i32_0 = arith.constant 0 : i32
    %c0_i32_1 = arith.constant 0 : i32
    return %c0_i32, %c0_i32_0 : i32, i32
  }
  func.func @transform_3(%arg0: i32) -> (i32, i32) {
    %c0_i32 = arith.constant 0 : i32
    %c0_i32_0 = arith.constant 0 : i32
    %c0_i32_1 = arith.constant 0 : i32
    return %c0_i32, %c0_i32_0 : i32, i32
  }
  func.func @transform_4(%arg0: i32) -> (i32, i32) {
    %c0_i32 = arith.constant 0 : i32
    %c0_i32_0 = arith.constant 0 : i32
    return %arg0, %c0_i32 : i32, i32
  }
}

module attributes {stable_mosaic.version = 11 : i64} {
  func.func @_self_attn_kernel(%arg0: i32, %arg1: memref<2x256xf32, #tpu.memory_space<vmem>>, %arg2: memref<32x768xf32, #tpu.memory_space<vmem>>, %arg3: memref<256x32xf32, #tpu.memory_space<vmem>>, %arg4: memref<1x32xf32, #tpu.memory_space<vmem>>, %arg5: memref<2x256xf32, #tpu.memory_space<vmem>>, %arg6: memref<16x256xf32, #tpu.memory_space<vmem>>) attributes {dimension_semantics = [#tpu.dimension_semantics<parallel>], iteration_bounds = array<i64: 1>, scalar_prefetch = 0 : i64, scratch_operands = 1 : i64, tpu.core_type = #tpu.core_type<tc>, window_params = [{transform_indices = @transform_0, window_bounds = array<i64: 2, 256>}, {pipeline_mode = #tpu.pipeline_mode<synchronous>, transform_indices = @transform_1, window_bounds = array<i64: 32, 768>}, {pipeline_mode = #tpu.pipeline_mode<synchronous>, transform_indices = @transform_2, window_bounds = array<i64: 256, 32>}, {pipeline_mode = #tpu.pipeline_mode<synchronous>, transform_indices = @transform_3, window_bounds = array<i64: 1, 32>}, {transform_indices = @transform_4, window_bounds = array<i64: 2, 256>}]} {
    %c0 = arith.constant 0 : index
    %c0_0 = arith.constant 0 : index
    %0 = vector.load %arg1[%c0, %c0_0] : memref<2x256xf32, #tpu.memory_space<vmem>>, vector<2x256xf32>
    %1 = vector.shape_cast %0 : vector<2x256xf32> to vector<16x32xf32>
    %c0_1 = arith.constant 0 : index
    %c0_2 = arith.constant 0 : index
    %2 = vector.load %arg2[%c0_1, %c0_2] : memref<32x768xf32, #tpu.memory_space<vmem>>, vector<32x768xf32>
    %cst = arith.constant dense<0.000000e+00> : vector<16x768xf32>
    %3 = tpu.matmul %1, %2, %cst {dimension_numbers = #tpu.dot_dimension_numbers<[1], [0], [0], [1], [0, 0, 1, 1], [], []>} : vector<16x32xf32>, vector<32x768xf32>, vector<16x768xf32> -> vector<16x768xf32>
    %4 = vector.extract_strided_slice %3 {offsets = [0, 0], sizes = [16, 256], strides = [1, 1]} : vector<16x768xf32> to vector<16x256xf32>
    %5 = vector.shape_cast %4 : vector<16x256xf32> to vector<2x8x256xf32>
    %6 = vector.extract_strided_slice %3 {offsets = [0, 256], sizes = [16, 256], strides = [1, 1]} : vector<16x768xf32> to vector<16x256xf32>
    %7 = vector.shape_cast %6 : vector<16x256xf32> to vector<2x8x256xf32>
    %8 = vector.extract_strided_slice %3 {offsets = [0, 512], sizes = [16, 256], strides = [1, 1]} : vector<16x768xf32> to vector<16x256xf32>
    %9 = vector.shape_cast %8 : vector<16x256xf32> to vector<2x8x256xf32>
    %10 = vector.extract_strided_slice %5 {offsets = [0, 0, 0], sizes = [2, 8, 32], strides = [1, 1, 1]} : vector<2x8x256xf32> to vector<2x8x32xf32>
    %11 = vector.extract_strided_slice %7 {offsets = [0, 0, 0], sizes = [2, 8, 32], strides = [1, 1, 1]} : vector<2x8x256xf32> to vector<2x8x32xf32>
    %12 = vector.extract_strided_slice %9 {offsets = [0, 0, 0], sizes = [2, 8, 32], strides = [1, 1, 1]} : vector<2x8x256xf32> to vector<2x8x32xf32>
    "tpu.trace_start"() <{level = 10 : i32, message = "bqd,bkd->bqk"}> : () -> ()
    %cst_3 = arith.constant dense<0.000000e+00> : vector<2x8x8xf32>
    %13 = tpu.matmul %10, %11, %cst_3 {dimension_numbers = #tpu.dot_dimension_numbers<[2], [2], [1], [1], [0, 0, 0, 1, 1, 1], [0], [0]>} : vector<2x8x32xf32>, vector<2x8x32xf32>, vector<2x8x8xf32> -> vector<2x8x8xf32>
    "tpu.trace_stop"() : () -> ()
    %cst_4 = arith.constant dense<0xFF800000> : vector<2x8xf32>
    %14 = vector.multi_reduction <maximumf>, %13, %cst_4 [2] : vector<2x8x8xf32> to vector<2x8xf32>
    %15 = vector.shape_cast %14 : vector<2x8xf32> to vector<2x8x1xf32>
    %16 = vector.broadcast %15 : vector<2x8x1xf32> to vector<2x8x8xf32>
    %17 = arith.subf %13, %16 : vector<2x8x8xf32>
    %18 = math.exp %17 : vector<2x8x8xf32>
    %cst_5 = arith.constant dense<0.000000e+00> : vector<2x8xf32>
    %19 = vector.multi_reduction <add>, %18, %cst_5 [2] : vector<2x8x8xf32> to vector<2x8xf32>
    %20 = vector.shape_cast %19 : vector<2x8xf32> to vector<2x8x1xf32>
    %21 = tpu.reciprocal %20 : vector<2x8x1xf32> -> vector<2x8x1xf32>
    %22 = vector.broadcast %21 : vector<2x8x1xf32> to vector<2x8x8xf32>
    %23 = arith.mulf %18, %22 : vector<2x8x8xf32>
    "tpu.trace_start"() <{level = 10 : i32, message = "bqk,bkd->bqd"}> : () -> ()
    %cst_6 = arith.constant dense<0.000000e+00> : vector<2x8x32xf32>
    %24 = tpu.matmul %23, %12, %cst_6 {dimension_numbers = #tpu.dot_dimension_numbers<[2], [1], [1], [2], [0, 0, 0, 1, 1, 2], [0], [0]>} : vector<2x8x8xf32>, vector<2x8x32xf32>, vector<2x8x32xf32> -> vector<2x8x32xf32>
    "tpu.trace_stop"() : () -> ()
    %25 = vector.shape_cast %24 : vector<2x8x32xf32> to vector<16x32xf32>
    %c0_7 = arith.constant 0 : index
    %c0_8 = arith.constant 0 : index
    %26 = vector.load %arg6[%c0_7, %c0_8] : memref<16x256xf32, #tpu.memory_space<vmem>>, vector<16x32xf32>
    tpu.vector_store %arg6[%c0_7, %c0_8], %25 {strides = array<i32>} : memref<16x256xf32, #tpu.memory_space<vmem>>, vector<16x32xf32>,
    %27 = vector.extract_strided_slice %5 {offsets = [0, 0, 32], sizes = [2, 8, 32], strides = [1, 1, 1]} : vector<2x8x256xf32> to vector<2x8x32xf32>
    %28 = vector.extract_strided_slice %7 {offsets = [0, 0, 32], sizes = [2, 8, 32], strides = [1, 1, 1]} : vector<2x8x256xf32> to vector<2x8x32xf32>
    %29 = vector.extract_strided_slice %9 {offsets = [0, 0, 32], sizes = [2, 8, 32], strides = [1, 1, 1]} : vector<2x8x256xf32> to vector<2x8x32xf32>
    "tpu.trace_start"() <{level = 10 : i32, message = "bqd,bkd->bqk"}> : () -> ()
    %cst_9 = arith.constant dense<0.000000e+00> : vector<2x8x8xf32>
    %30 = tpu.matmul %27, %28, %cst_9 {dimension_numbers = #tpu.dot_dimension_numbers<[2], [2], [1], [1], [0, 0, 0, 1, 1, 1], [0], [0]>} : vector<2x8x32xf32>, vector<2x8x32xf32>, vector<2x8x8xf32> -> vector<2x8x8xf32>
    "tpu.trace_stop"() : () -> ()
    %cst_10 = arith.constant dense<0xFF800000> : vector<2x8xf32>
    %31 = vector.multi_reduction <maximumf>, %30, %cst_10 [2] : vector<2x8x8xf32> to vector<2x8xf32>
    %32 = vector.shape_cast %31 : vector<2x8xf32> to vector<2x8x1xf32>
    %33 = vector.broadcast %32 : vector<2x8x1xf32> to vector<2x8x8xf32>
    %34 = arith.subf %30, %33 : vector<2x8x8xf32>
    %35 = math.exp %34 : vector<2x8x8xf32>
    %cst_11 = arith.constant dense<0.000000e+00> : vector<2x8xf32>
    %36 = vector.multi_reduction <add>, %35, %cst_11 [2] : vector<2x8x8xf32> to vector<2x8xf32>
    %37 = vector.shape_cast %36 : vector<2x8xf32> to vector<2x8x1xf32>
    %38 = tpu.reciprocal %37 : vector<2x8x1xf32> -> vector<2x8x1xf32>
    %39 = vector.broadcast %38 : vector<2x8x1xf32> to vector<2x8x8xf32>
    %40 = arith.mulf %35, %39 : vector<2x8x8xf32>
    "tpu.trace_start"() <{level = 10 : i32, message = "bqk,bkd->bqd"}> : () -> ()
    %cst_12 = arith.constant dense<0.000000e+00> : vector<2x8x32xf32>
    %41 = tpu.matmul %40, %29, %cst_12 {dimension_numbers = #tpu.dot_dimension_numbers<[2], [1], [1], [2], [0, 0, 0, 1, 1, 2], [0], [0]>} : vector<2x8x8xf32>, vector<2x8x32xf32>, vector<2x8x32xf32> -> vector<2x8x32xf32>
    "tpu.trace_stop"() : () -> ()
    %42 = vector.shape_cast %41 : vector<2x8x32xf32> to vector<16x32xf32>
    %c0_13 = arith.constant 0 : index
    %c32 = arith.constant 32 : index
    %43 = vector.load %arg6[%c0_13, %c32] : memref<16x256xf32, #tpu.memory_space<vmem>>, vector<16x32xf32>
    tpu.vector_store %arg6[%c0_13, %c32], %42 {strides = array<i32>} : memref<16x256xf32, #tpu.memory_space<vmem>>, vector<16x32xf32>,
    %44 = vector.extract_strided_slice %5 {offsets = [0, 0, 64], sizes = [2, 8, 32], strides = [1, 1, 1]} : vector<2x8x256xf32> to vector<2x8x32xf32>
    %45 = vector.extract_strided_slice %7 {offsets = [0, 0, 64], sizes = [2, 8, 32], strides = [1, 1, 1]} : vector<2x8x256xf32> to vector<2x8x32xf32>
    %46 = vector.extract_strided_slice %9 {offsets = [0, 0, 64], sizes = [2, 8, 32], strides = [1, 1, 1]} : vector<2x8x256xf32> to vector<2x8x32xf32>
    "tpu.trace_start"() <{level = 10 : i32, message = "bqd,bkd->bqk"}> : () -> ()
    %cst_14 = arith.constant dense<0.000000e+00> : vector<2x8x8xf32>
    %47 = tpu.matmul %44, %45, %cst_14 {dimension_numbers = #tpu.dot_dimension_numbers<[2], [2], [1], [1], [0, 0, 0, 1, 1, 1], [0], [0]>} : vector<2x8x32xf32>, vector<2x8x32xf32>, vector<2x8x8xf32> -> vector<2x8x8xf32>
    "tpu.trace_stop"() : () -> ()
    %cst_15 = arith.constant dense<0xFF800000> : vector<2x8xf32>
    %48 = vector.multi_reduction <maximumf>, %47, %cst_15 [2] : vector<2x8x8xf32> to vector<2x8xf32>
    %49 = vector.shape_cast %48 : vector<2x8xf32> to vector<2x8x1xf32>
    %50 = vector.broadcast %49 : vector<2x8x1xf32> to vector<2x8x8xf32>
    %51 = arith.subf %47, %50 : vector<2x8x8xf32>
    %52 = math.exp %51 : vector<2x8x8xf32>
    %cst_16 = arith.constant dense<0.000000e+00> : vector<2x8xf32>
    %53 = vector.multi_reduction <add>, %52, %cst_16 [2] : vector<2x8x8xf32> to vector<2x8xf32>
    %54 = vector.shape_cast %53 : vector<2x8xf32> to vector<2x8x1xf32>
    %55 = tpu.reciprocal %54 : vector<2x8x1xf32> -> vector<2x8x1xf32>
    %56 = vector.broadcast %55 : vector<2x8x1xf32> to vector<2x8x8xf32>
    %57 = arith.mulf %52, %56 : vector<2x8x8xf32>
    "tpu.trace_start"() <{level = 10 : i32, message = "bqk,bkd->bqd"}> : () -> ()
    %cst_17 = arith.constant dense<0.000000e+00> : vector<2x8x32xf32>
    %58 = tpu.matmul %57, %46, %cst_17 {dimension_numbers = #tpu.dot_dimension_numbers<[2], [1], [1], [2], [0, 0, 0, 1, 1, 2], [0], [0]>} : vector<2x8x8xf32>, vector<2x8x32xf32>, vector<2x8x32xf32> -> vector<2x8x32xf32>
    "tpu.trace_stop"() : () -> ()
    %59 = vector.shape_cast %58 : vector<2x8x32xf32> to vector<16x32xf32>
    %c0_18 = arith.constant 0 : index
    %c64 = arith.constant 64 : index
    %60 = vector.load %arg6[%c0_18, %c64] : memref<16x256xf32, #tpu.memory_space<vmem>>, vector<16x32xf32>
    tpu.vector_store %arg6[%c0_18, %c64], %59 {strides = array<i32>} : memref<16x256xf32, #tpu.memory_space<vmem>>, vector<16x32xf32>,
    %61 = vector.extract_strided_slice %5 {offsets = [0, 0, 96], sizes = [2, 8, 32], strides = [1, 1, 1]} : vector<2x8x256xf32> to vector<2x8x32xf32>
    %62 = vector.extract_strided_slice %7 {offsets = [0, 0, 96], sizes = [2, 8, 32], strides = [1, 1, 1]} : vector<2x8x256xf32> to vector<2x8x32xf32>
    %63 = vector.extract_strided_slice %9 {offsets = [0, 0, 96], sizes = [2, 8, 32], strides = [1, 1, 1]} : vector<2x8x256xf32> to vector<2x8x32xf32>
    "tpu.trace_start"() <{level = 10 : i32, message = "bqd,bkd->bqk"}> : () -> ()
    %cst_19 = arith.constant dense<0.000000e+00> : vector<2x8x8xf32>
    %64 = tpu.matmul %61, %62, %cst_19 {dimension_numbers = #tpu.dot_dimension_numbers<[2], [2], [1], [1], [0, 0, 0, 1, 1, 1], [0], [0]>} : vector<2x8x32xf32>, vector<2x8x32xf32>, vector<2x8x8xf32> -> vector<2x8x8xf32>
    "tpu.trace_stop"() : () -> ()
    %cst_20 = arith.constant dense<0xFF800000> : vector<2x8xf32>
    %65 = vector.multi_reduction <maximumf>, %64, %cst_20 [2] : vector<2x8x8xf32> to vector<2x8xf32>
    %66 = vector.shape_cast %65 : vector<2x8xf32> to vector<2x8x1xf32>
    %67 = vector.broadcast %66 : vector<2x8x1xf32> to vector<2x8x8xf32>
    %68 = arith.subf %64, %67 : vector<2x8x8xf32>
    %69 = math.exp %68 : vector<2x8x8xf32>
    %cst_21 = arith.constant dense<0.000000e+00> : vector<2x8xf32>
    %70 = vector.multi_reduction <add>, %69, %cst_21 [2] : vector<2x8x8xf32> to vector<2x8xf32>
    %71 = vector.shape_cast %70 : vector<2x8xf32> to vector<2x8x1xf32>
    %72 = tpu.reciprocal %71 : vector<2x8x1xf32> -> vector<2x8x1xf32>
    %73 = vector.broadcast %72 : vector<2x8x1xf32> to vector<2x8x8xf32>
    %74 = arith.mulf %69, %73 : vector<2x8x8xf32>
    "tpu.trace_start"() <{level = 10 : i32, message = "bqk,bkd->bqd"}> : () -> ()
    %cst_22 = arith.constant dense<0.000000e+00> : vector<2x8x32xf32>
    %75 = tpu.matmul %74, %63, %cst_22 {dimension_numbers = #tpu.dot_dimension_numbers<[2], [1], [1], [2], [0, 0, 0, 1, 1, 2], [0], [0]>} : vector<2x8x8xf32>, vector<2x8x32xf32>, vector<2x8x32xf32> -> vector<2x8x32xf32>
    "tpu.trace_stop"() : () -> ()
    %76 = vector.shape_cast %75 : vector<2x8x32xf32> to vector<16x32xf32>
    %c0_23 = arith.constant 0 : index
    %c96 = arith.constant 96 : index
    %77 = vector.load %arg6[%c0_23, %c96] : memref<16x256xf32, #tpu.memory_space<vmem>>, vector<16x32xf32>
    tpu.vector_store %arg6[%c0_23, %c96], %76 {strides = array<i32>} : memref<16x256xf32, #tpu.memory_space<vmem>>, vector<16x32xf32>,
    %78 = vector.extract_strided_slice %5 {offsets = [0, 0, 128], sizes = [2, 8, 32], strides = [1, 1, 1]} : vector<2x8x256xf32> to vector<2x8x32xf32>
    %79 = vector.extract_strided_slice %7 {offsets = [0, 0, 128], sizes = [2, 8, 32], strides = [1, 1, 1]} : vector<2x8x256xf32> to vector<2x8x32xf32>
    %80 = vector.extract_strided_slice %9 {offsets = [0, 0, 128], sizes = [2, 8, 32], strides = [1, 1, 1]} : vector<2x8x256xf32> to vector<2x8x32xf32>
    "tpu.trace_start"() <{level = 10 : i32, message = "bqd,bkd->bqk"}> : () -> ()
    %cst_24 = arith.constant dense<0.000000e+00> : vector<2x8x8xf32>
    %81 = tpu.matmul %78, %79, %cst_24 {dimension_numbers = #tpu.dot_dimension_numbers<[2], [2], [1], [1], [0, 0, 0, 1, 1, 1], [0], [0]>} : vector<2x8x32xf32>, vector<2x8x32xf32>, vector<2x8x8xf32> -> vector<2x8x8xf32>
    "tpu.trace_stop"() : () -> ()
    %cst_25 = arith.constant dense<0xFF800000> : vector<2x8xf32>
    %82 = vector.multi_reduction <maximumf>, %81, %cst_25 [2] : vector<2x8x8xf32> to vector<2x8xf32>
    %83 = vector.shape_cast %82 : vector<2x8xf32> to vector<2x8x1xf32>
    %84 = vector.broadcast %83 : vector<2x8x1xf32> to vector<2x8x8xf32>
    %85 = arith.subf %81, %84 : vector<2x8x8xf32>
    %86 = math.exp %85 : vector<2x8x8xf32>
    %cst_26 = arith.constant dense<0.000000e+00> : vector<2x8xf32>
    %87 = vector.multi_reduction <add>, %86, %cst_26 [2] : vector<2x8x8xf32> to vector<2x8xf32>
    %88 = vector.shape_cast %87 : vector<2x8xf32> to vector<2x8x1xf32>
    %89 = tpu.reciprocal %88 : vector<2x8x1xf32> -> vector<2x8x1xf32>
    %90 = vector.broadcast %89 : vector<2x8x1xf32> to vector<2x8x8xf32>
    %91 = arith.mulf %86, %90 : vector<2x8x8xf32>
    "tpu.trace_start"() <{level = 10 : i32, message = "bqk,bkd->bqd"}> : () -> ()
    %cst_27 = arith.constant dense<0.000000e+00> : vector<2x8x32xf32>
    %92 = tpu.matmul %91, %80, %cst_27 {dimension_numbers = #tpu.dot_dimension_numbers<[2], [1], [1], [2], [0, 0, 0, 1, 1, 2], [0], [0]>} : vector<2x8x8xf32>, vector<2x8x32xf32>, vector<2x8x32xf32> -> vector<2x8x32xf32>
    "tpu.trace_stop"() : () -> ()
    %93 = vector.shape_cast %92 : vector<2x8x32xf32> to vector<16x32xf32>
    %c0_28 = arith.constant 0 : index
    %c128 = arith.constant 128 : index
    %94 = vector.load %arg6[%c0_28, %c128] : memref<16x256xf32, #tpu.memory_space<vmem>>, vector<16x32xf32>
    tpu.vector_store %arg6[%c0_28, %c128], %93 {strides = array<i32>} : memref<16x256xf32, #tpu.memory_space<vmem>>, vector<16x32xf32>,
    %95 = vector.extract_strided_slice %5 {offsets = [0, 0, 160], sizes = [2, 8, 32], strides = [1, 1, 1]} : vector<2x8x256xf32> to vector<2x8x32xf32>
    %96 = vector.extract_strided_slice %7 {offsets = [0, 0, 160], sizes = [2, 8, 32], strides = [1, 1, 1]} : vector<2x8x256xf32> to vector<2x8x32xf32>
    %97 = vector.extract_strided_slice %9 {offsets = [0, 0, 160], sizes = [2, 8, 32], strides = [1, 1, 1]} : vector<2x8x256xf32> to vector<2x8x32xf32>
    "tpu.trace_start"() <{level = 10 : i32, message = "bqd,bkd->bqk"}> : () -> ()
    %cst_29 = arith.constant dense<0.000000e+00> : vector<2x8x8xf32>
    %98 = tpu.matmul %95, %96, %cst_29 {dimension_numbers = #tpu.dot_dimension_numbers<[2], [2], [1], [1], [0, 0, 0, 1, 1, 1], [0], [0]>} : vector<2x8x32xf32>, vector<2x8x32xf32>, vector<2x8x8xf32> -> vector<2x8x8xf32>
    "tpu.trace_stop"() : () -> ()
    %cst_30 = arith.constant dense<0xFF800000> : vector<2x8xf32>
    %99 = vector.multi_reduction <maximumf>, %98, %cst_30 [2] : vector<2x8x8xf32> to vector<2x8xf32>
    %100 = vector.shape_cast %99 : vector<2x8xf32> to vector<2x8x1xf32>
    %101 = vector.broadcast %100 : vector<2x8x1xf32> to vector<2x8x8xf32>
    %102 = arith.subf %98, %101 : vector<2x8x8xf32>
    %103 = math.exp %102 : vector<2x8x8xf32>
    %cst_31 = arith.constant dense<0.000000e+00> : vector<2x8xf32>
    %104 = vector.multi_reduction <add>, %103, %cst_31 [2] : vector<2x8x8xf32> to vector<2x8xf32>
    %105 = vector.shape_cast %104 : vector<2x8xf32> to vector<2x8x1xf32>
    %106 = tpu.reciprocal %105 : vector<2x8x1xf32> -> vector<2x8x1xf32>
    %107 = vector.broadcast %106 : vector<2x8x1xf32> to vector<2x8x8xf32>
    %108 = arith.mulf %103, %107 : vector<2x8x8xf32>
    "tpu.trace_start"() <{level = 10 : i32, message = "bqk,bkd->bqd"}> : () -> ()
    %cst_32 = arith.constant dense<0.000000e+00> : vector<2x8x32xf32>
    %109 = tpu.matmul %108, %97, %cst_32 {dimension_numbers = #tpu.dot_dimension_numbers<[2], [1], [1], [2], [0, 0, 0, 1, 1, 2], [0], [0]>} : vector<2x8x8xf32>, vector<2x8x32xf32>, vector<2x8x32xf32> -> vector<2x8x32xf32>
    "tpu.trace_stop"() : () -> ()
    %110 = vector.shape_cast %109 : vector<2x8x32xf32> to vector<16x32xf32>
    %c0_33 = arith.constant 0 : index
    %c160 = arith.constant 160 : index
    %111 = vector.load %arg6[%c0_33, %c160] : memref<16x256xf32, #tpu.memory_space<vmem>>, vector<16x32xf32>
    tpu.vector_store %arg6[%c0_33, %c160], %110 {strides = array<i32>} : memref<16x256xf32, #tpu.memory_space<vmem>>, vector<16x32xf32>,
    %112 = vector.extract_strided_slice %5 {offsets = [0, 0, 192], sizes = [2, 8, 32], strides = [1, 1, 1]} : vector<2x8x256xf32> to vector<2x8x32xf32>
    %113 = vector.extract_strided_slice %7 {offsets = [0, 0, 192], sizes = [2, 8, 32], strides = [1, 1, 1]} : vector<2x8x256xf32> to vector<2x8x32xf32>
    %114 = vector.extract_strided_slice %9 {offsets = [0, 0, 192], sizes = [2, 8, 32], strides = [1, 1, 1]} : vector<2x8x256xf32> to vector<2x8x32xf32>
    "tpu.trace_start"() <{level = 10 : i32, message = "bqd,bkd->bqk"}> : () -> ()
    %cst_34 = arith.constant dense<0.000000e+00> : vector<2x8x8xf32>
    %115 = tpu.matmul %112, %113, %cst_34 {dimension_numbers = #tpu.dot_dimension_numbers<[2], [2], [1], [1], [0, 0, 0, 1, 1, 1], [0], [0]>} : vector<2x8x32xf32>, vector<2x8x32xf32>, vector<2x8x8xf32> -> vector<2x8x8xf32>
    "tpu.trace_stop"() : () -> ()
    %cst_35 = arith.constant dense<0xFF800000> : vector<2x8xf32>
    %116 = vector.multi_reduction <maximumf>, %115, %cst_35 [2] : vector<2x8x8xf32> to vector<2x8xf32>
    %117 = vector.shape_cast %116 : vector<2x8xf32> to vector<2x8x1xf32>
    %118 = vector.broadcast %117 : vector<2x8x1xf32> to vector<2x8x8xf32>
    %119 = arith.subf %115, %118 : vector<2x8x8xf32>
    %120 = math.exp %119 : vector<2x8x8xf32>
    %cst_36 = arith.constant dense<0.000000e+00> : vector<2x8xf32>
    %121 = vector.multi_reduction <add>, %120, %cst_36 [2] : vector<2x8x8xf32> to vector<2x8xf32>
    %122 = vector.shape_cast %121 : vector<2x8xf32> to vector<2x8x1xf32>
    %123 = tpu.reciprocal %122 : vector<2x8x1xf32> -> vector<2x8x1xf32>
    %124 = vector.broadcast %123 : vector<2x8x1xf32> to vector<2x8x8xf32>
    %125 = arith.mulf %120, %124 : vector<2x8x8xf32>
    "tpu.trace_start"() <{level = 10 : i32, message = "bqk,bkd->bqd"}> : () -> ()
    %cst_37 = arith.constant dense<0.000000e+00> : vector<2x8x32xf32>
    %126 = tpu.matmul %125, %114, %cst_37 {dimension_numbers = #tpu.dot_dimension_numbers<[2], [1], [1], [2], [0, 0, 0, 1, 1, 2], [0], [0]>} : vector<2x8x8xf32>, vector<2x8x32xf32>, vector<2x8x32xf32> -> vector<2x8x32xf32>
    "tpu.trace_stop"() : () -> ()
    %127 = vector.shape_cast %126 : vector<2x8x32xf32> to vector<16x32xf32>
    %c0_38 = arith.constant 0 : index
    %c192 = arith.constant 192 : index
    %128 = vector.load %arg6[%c0_38, %c192] : memref<16x256xf32, #tpu.memory_space<vmem>>, vector<16x32xf32>
    tpu.vector_store %arg6[%c0_38, %c192], %127 {strides = array<i32>} : memref<16x256xf32, #tpu.memory_space<vmem>>, vector<16x32xf32>,
    %129 = vector.extract_strided_slice %5 {offsets = [0, 0, 224], sizes = [2, 8, 32], strides = [1, 1, 1]} : vector<2x8x256xf32> to vector<2x8x32xf32>
    %130 = vector.extract_strided_slice %7 {offsets = [0, 0, 224], sizes = [2, 8, 32], strides = [1, 1, 1]} : vector<2x8x256xf32> to vector<2x8x32xf32>
    %131 = vector.extract_strided_slice %9 {offsets = [0, 0, 224], sizes = [2, 8, 32], strides = [1, 1, 1]} : vector<2x8x256xf32> to vector<2x8x32xf32>
    "tpu.trace_start"() <{level = 10 : i32, message = "bqd,bkd->bqk"}> : () -> ()
    %cst_39 = arith.constant dense<0.000000e+00> : vector<2x8x8xf32>
    %132 = tpu.matmul %129, %130, %cst_39 {dimension_numbers = #tpu.dot_dimension_numbers<[2], [2], [1], [1], [0, 0, 0, 1, 1, 1], [0], [0]>} : vector<2x8x32xf32>, vector<2x8x32xf32>, vector<2x8x8xf32> -> vector<2x8x8xf32>
    "tpu.trace_stop"() : () -> ()
    %cst_40 = arith.constant dense<0xFF800000> : vector<2x8xf32>
    %133 = vector.multi_reduction <maximumf>, %132, %cst_40 [2] : vector<2x8x8xf32> to vector<2x8xf32>
    %134 = vector.shape_cast %133 : vector<2x8xf32> to vector<2x8x1xf32>
    %135 = vector.broadcast %134 : vector<2x8x1xf32> to vector<2x8x8xf32>
    %136 = arith.subf %132, %135 : vector<2x8x8xf32>
    %137 = math.exp %136 : vector<2x8x8xf32>
    %cst_41 = arith.constant dense<0.000000e+00> : vector<2x8xf32>
    %138 = vector.multi_reduction <add>, %137, %cst_41 [2] : vector<2x8x8xf32> to vector<2x8xf32>
    %139 = vector.shape_cast %138 : vector<2x8xf32> to vector<2x8x1xf32>
    %140 = tpu.reciprocal %139 : vector<2x8x1xf32> -> vector<2x8x1xf32>
    %141 = vector.broadcast %140 : vector<2x8x1xf32> to vector<2x8x8xf32>
    %142 = arith.mulf %137, %141 : vector<2x8x8xf32>
    "tpu.trace_start"() <{level = 10 : i32, message = "bqk,bkd->bqd"}> : () -> ()
    %cst_42 = arith.constant dense<0.000000e+00> : vector<2x8x32xf32>
    %143 = tpu.matmul %142, %131, %cst_42 {dimension_numbers = #tpu.dot_dimension_numbers<[2], [1], [1], [2], [0, 0, 0, 1, 1, 2], [0], [0]>} : vector<2x8x8xf32>, vector<2x8x32xf32>, vector<2x8x32xf32> -> vector<2x8x32xf32>
    "tpu.trace_stop"() : () -> ()
    %144 = vector.shape_cast %143 : vector<2x8x32xf32> to vector<16x32xf32>
    %c0_43 = arith.constant 0 : index
    %c224 = arith.constant 224 : index
    %145 = vector.load %arg6[%c0_43, %c224] : memref<16x256xf32, #tpu.memory_space<vmem>>, vector<16x32xf32>
    tpu.vector_store %arg6[%c0_43, %c224], %144 {strides = array<i32>} : memref<16x256xf32, #tpu.memory_space<vmem>>, vector<16x32xf32>,
    %c0_44 = arith.constant 0 : index
    %c0_45 = arith.constant 0 : index
    %146 = vector.load %arg6[%c0_44, %c0_45] : memref<16x256xf32, #tpu.memory_space<vmem>>, vector<16x256xf32>
    %c0_46 = arith.constant 0 : index
    %c0_47 = arith.constant 0 : index
    %147 = vector.load %arg3[%c0_46, %c0_47] : memref<256x32xf32, #tpu.memory_space<vmem>>, vector<256x32xf32>
    %cst_48 = arith.constant dense<0.000000e+00> : vector<16x32xf32>
    %148 = tpu.matmul %146, %147, %cst_48 {dimension_numbers = #tpu.dot_dimension_numbers<[1], [0], [0], [1], [0, 0, 1, 1], [], []>} : vector<16x256xf32>, vector<256x32xf32>, vector<16x32xf32> -> vector<16x32xf32>
    %c0_49 = arith.constant 0 : index
    %c0_50 = arith.constant 0 : index
    %149 = vector.load %arg4[%c0_49, %c0_50] : memref<1x32xf32, #tpu.memory_space<vmem>>, vector<1x32xf32>
    %150 = vector.broadcast %149 : vector<1x32xf32> to vector<16x32xf32>
    %151 = arith.addf %148, %150 : vector<16x32xf32>
    %152 = vector.shape_cast %151 : vector<16x32xf32> to vector<2x256xf32>
    %c0_51 = arith.constant 0 : index
    %c0_52 = arith.constant 0 : index
    %153 = vector.load %arg5[%c0_51, %c0_52] : memref<2x256xf32, #tpu.memory_space<vmem>>, vector<2x256xf32>
    tpu.vector_store %arg5[%c0_51, %c0_52], %152 {strides = array<i32>} : memref<2x256xf32, #tpu.memory_space<vmem>>, vector<2x256xf32>,
    return
  }
  func.func @transform_0(%arg0: i32) -> (i32, i32) {
    %c0_i32 = arith.constant 0 : i32
    %c0_i32_0 = arith.constant 0 : i32
    return %arg0, %c0_i32 : i32, i32
  }
  func.func @transform_1(%arg0: i32) -> (i32, i32) {
    %c0_i32 = arith.constant 0 : i32
    %c0_i32_0 = arith.constant 0 : i32
    %c0_i32_1 = arith.constant 0 : i32
    return %c0_i32, %c0_i32_0 : i32, i32
  }
  func.func @transform_2(%arg0: i32) -> (i32, i32) {
    %c0_i32 = arith.constant 0 : i32
    %c0_i32_0 = arith.constant 0 : i32
    %c0_i32_1 = arith.constant 0 : i32
    return %c0_i32, %c0_i32_0 : i32, i32
  }
  func.func @transform_3(%arg0: i32) -> (i32, i32) {
    %c0_i32 = arith.constant 0 : i32
    %c0_i32_0 = arith.constant 0 : i32
    %c0_i32_1 = arith.constant 0 : i32
    return %c0_i32, %c0_i32_0 : i32, i32
  }
  func.func @transform_4(%arg0: i32) -> (i32, i32) {
    %c0_i32 = arith.constant 0 : i32
    %c0_i32_0 = arith.constant 0 : i32
    return %arg0, %c0_i32 : i32, i32
  }
}

module attributes {stable_mosaic.version = 11 : i64} {
  func.func @_self_attn_kernel(%arg0: i32, %arg1: memref<2x8x32xf32, #tpu.memory_space<vmem>>, %arg2: memref<32x768xf32, #tpu.memory_space<vmem>>, %arg3: memref<256x32xf32, #tpu.memory_space<vmem>>, %arg4: memref<1x32xf32, #tpu.memory_space<vmem>>, %arg5: memref<2x8x32xf32, #tpu.memory_space<vmem>>, %arg6: memref<16x256xf32, #tpu.memory_space<vmem>>) attributes {dimension_semantics = [#tpu.dimension_semantics<parallel>], iteration_bounds = array<i64: 1>, scalar_prefetch = 0 : i64, scratch_operands = 1 : i64, tpu.core_type = #tpu.core_type<tc>, window_params = [{transform_indices = @transform_0, window_bounds = array<i64: 2, 8, 32>}, {pipeline_mode = #tpu.pipeline_mode<synchronous>, transform_indices = @transform_1, window_bounds = array<i64: 32, 768>}, {pipeline_mode = #tpu.pipeline_mode<synchronous>, transform_indices = @transform_2, window_bounds = array<i64: 256, 32>}, {pipeline_mode = #tpu.pipeline_mode<synchronous>, transform_indices = @transform_3, window_bounds = array<i64: 1, 32>}, {transform_indices = @transform_4, window_bounds = array<i64: 2, 8, 32>}]} {
    %c0 = arith.constant 0 : index
    %c0_0 = arith.constant 0 : index
    %c0_1 = arith.constant 0 : index
    %0 = vector.load %arg1[%c0, %c0_0, %c0_1] : memref<2x8x32xf32, #tpu.memory_space<vmem>>, vector<2x8x32xf32>
    %1 = vector.shape_cast %0 : vector<2x8x32xf32> to vector<16x32xf32>
    %c0_2 = arith.constant 0 : index
    %c0_3 = arith.constant 0 : index
    %2 = vector.load %arg2[%c0_2, %c0_3] : memref<32x768xf32, #tpu.memory_space<vmem>>, vector<32x768xf32>
    %cst = arith.constant dense<0.000000e+00> : vector<16x768xf32>
    %3 = tpu.matmul %1, %2, %cst {dimension_numbers = #tpu.dot_dimension_numbers<[1], [0], [0], [1], [0, 0, 1, 1], [], []>} : vector<16x32xf32>, vector<32x768xf32>, vector<16x768xf32> -> vector<16x768xf32>
    %4 = vector.extract_strided_slice %3 {offsets = [0, 0], sizes = [16, 256], strides = [1, 1]} : vector<16x768xf32> to vector<16x256xf32>
    %5 = vector.shape_cast %4 : vector<16x256xf32> to vector<2x8x256xf32>
    %6 = vector.extract_strided_slice %3 {offsets = [0, 256], sizes = [16, 256], strides = [1, 1]} : vector<16x768xf32> to vector<16x256xf32>
    %7 = vector.shape_cast %6 : vector<16x256xf32> to vector<2x8x256xf32>
    %8 = vector.extract_strided_slice %3 {offsets = [0, 512], sizes = [16, 256], strides = [1, 1]} : vector<16x768xf32> to vector<16x256xf32>
    %9 = vector.shape_cast %8 : vector<16x256xf32> to vector<2x8x256xf32>
    %10 = vector.extract_strided_slice %5 {offsets = [0, 0, 0], sizes = [2, 8, 32], strides = [1, 1, 1]} : vector<2x8x256xf32> to vector<2x8x32xf32>
    %11 = vector.extract_strided_slice %7 {offsets = [0, 0, 0], sizes = [2, 8, 32], strides = [1, 1, 1]} : vector<2x8x256xf32> to vector<2x8x32xf32>
    %12 = vector.extract_strided_slice %9 {offsets = [0, 0, 0], sizes = [2, 8, 32], strides = [1, 1, 1]} : vector<2x8x256xf32> to vector<2x8x32xf32>
    "tpu.trace_start"() <{level = 10 : i32, message = "bqd,bkd->bqk"}> : () -> ()
    %cst_4 = arith.constant dense<0.000000e+00> : vector<2x8x8xf32>
    %13 = tpu.matmul %10, %11, %cst_4 {dimension_numbers = #tpu.dot_dimension_numbers<[2], [2], [1], [1], [0, 0, 0, 1, 1, 1], [0], [0]>} : vector<2x8x32xf32>, vector<2x8x32xf32>, vector<2x8x8xf32> -> vector<2x8x8xf32>
    "tpu.trace_stop"() : () -> ()
    %cst_5 = arith.constant dense<0xFF800000> : vector<2x8xf32>
    %14 = vector.multi_reduction <maximumf>, %13, %cst_5 [2] : vector<2x8x8xf32> to vector<2x8xf32>
    %15 = vector.shape_cast %14 : vector<2x8xf32> to vector<2x8x1xf32>
    %16 = vector.broadcast %15 : vector<2x8x1xf32> to vector<2x8x8xf32>
    %17 = arith.subf %13, %16 : vector<2x8x8xf32>
    %18 = math.exp %17 : vector<2x8x8xf32>
    %cst_6 = arith.constant dense<0.000000e+00> : vector<2x8xf32>
    %19 = vector.multi_reduction <add>, %18, %cst_6 [2] : vector<2x8x8xf32> to vector<2x8xf32>
    %20 = vector.shape_cast %19 : vector<2x8xf32> to vector<2x8x1xf32>
    %21 = tpu.reciprocal %20 : vector<2x8x1xf32> -> vector<2x8x1xf32>
    %22 = vector.broadcast %21 : vector<2x8x1xf32> to vector<2x8x8xf32>
    %23 = arith.mulf %18, %22 : vector<2x8x8xf32>
    "tpu.trace_start"() <{level = 10 : i32, message = "bqk,bkd->bqd"}> : () -> ()
    %cst_7 = arith.constant dense<0.000000e+00> : vector<2x8x32xf32>
    %24 = tpu.matmul %23, %12, %cst_7 {dimension_numbers = #tpu.dot_dimension_numbers<[2], [1], [1], [2], [0, 0, 0, 1, 1, 2], [0], [0]>} : vector<2x8x8xf32>, vector<2x8x32xf32>, vector<2x8x32xf32> -> vector<2x8x32xf32>
    "tpu.trace_stop"() : () -> ()
    %25 = vector.shape_cast %24 : vector<2x8x32xf32> to vector<16x32xf32>
    %c0_8 = arith.constant 0 : index
    %c0_9 = arith.constant 0 : index
    %26 = vector.load %arg6[%c0_8, %c0_9] : memref<16x256xf32, #tpu.memory_space<vmem>>, vector<16x32xf32>
    tpu.vector_store %arg6[%c0_8, %c0_9], %25 {strides = array<i32>} : memref<16x256xf32, #tpu.memory_space<vmem>>, vector<16x32xf32>,
    %27 = vector.extract_strided_slice %5 {offsets = [0, 0, 32], sizes = [2, 8, 32], strides = [1, 1, 1]} : vector<2x8x256xf32> to vector<2x8x32xf32>
    %28 = vector.extract_strided_slice %7 {offsets = [0, 0, 32], sizes = [2, 8, 32], strides = [1, 1, 1]} : vector<2x8x256xf32> to vector<2x8x32xf32>
    %29 = vector.extract_strided_slice %9 {offsets = [0, 0, 32], sizes = [2, 8, 32], strides = [1, 1, 1]} : vector<2x8x256xf32> to vector<2x8x32xf32>
    "tpu.trace_start"() <{level = 10 : i32, message = "bqd,bkd->bqk"}> : () -> ()
    %cst_10 = arith.constant dense<0.000000e+00> : vector<2x8x8xf32>
    %30 = tpu.matmul %27, %28, %cst_10 {dimension_numbers = #tpu.dot_dimension_numbers<[2], [2], [1], [1], [0, 0, 0, 1, 1, 1], [0], [0]>} : vector<2x8x32xf32>, vector<2x8x32xf32>, vector<2x8x8xf32> -> vector<2x8x8xf32>
    "tpu.trace_stop"() : () -> ()
    %cst_11 = arith.constant dense<0xFF800000> : vector<2x8xf32>
    %31 = vector.multi_reduction <maximumf>, %30, %cst_11 [2] : vector<2x8x8xf32> to vector<2x8xf32>
    %32 = vector.shape_cast %31 : vector<2x8xf32> to vector<2x8x1xf32>
    %33 = vector.broadcast %32 : vector<2x8x1xf32> to vector<2x8x8xf32>
    %34 = arith.subf %30, %33 : vector<2x8x8xf32>
    %35 = math.exp %34 : vector<2x8x8xf32>
    %cst_12 = arith.constant dense<0.000000e+00> : vector<2x8xf32>
    %36 = vector.multi_reduction <add>, %35, %cst_12 [2] : vector<2x8x8xf32> to vector<2x8xf32>
    %37 = vector.shape_cast %36 : vector<2x8xf32> to vector<2x8x1xf32>
    %38 = tpu.reciprocal %37 : vector<2x8x1xf32> -> vector<2x8x1xf32>
    %39 = vector.broadcast %38 : vector<2x8x1xf32> to vector<2x8x8xf32>
    %40 = arith.mulf %35, %39 : vector<2x8x8xf32>
    "tpu.trace_start"() <{level = 10 : i32, message = "bqk,bkd->bqd"}> : () -> ()
    %cst_13 = arith.constant dense<0.000000e+00> : vector<2x8x32xf32>
    %41 = tpu.matmul %40, %29, %cst_13 {dimension_numbers = #tpu.dot_dimension_numbers<[2], [1], [1], [2], [0, 0, 0, 1, 1, 2], [0], [0]>} : vector<2x8x8xf32>, vector<2x8x32xf32>, vector<2x8x32xf32> -> vector<2x8x32xf32>
    "tpu.trace_stop"() : () -> ()
    %42 = vector.shape_cast %41 : vector<2x8x32xf32> to vector<16x32xf32>
    %c0_14 = arith.constant 0 : index
    %c32 = arith.constant 32 : index
    %43 = vector.load %arg6[%c0_14, %c32] : memref<16x256xf32, #tpu.memory_space<vmem>>, vector<16x32xf32>
    tpu.vector_store %arg6[%c0_14, %c32], %42 {strides = array<i32>} : memref<16x256xf32, #tpu.memory_space<vmem>>, vector<16x32xf32>,
    %44 = vector.extract_strided_slice %5 {offsets = [0, 0, 64], sizes = [2, 8, 32], strides = [1, 1, 1]} : vector<2x8x256xf32> to vector<2x8x32xf32>
    %45 = vector.extract_strided_slice %7 {offsets = [0, 0, 64], sizes = [2, 8, 32], strides = [1, 1, 1]} : vector<2x8x256xf32> to vector<2x8x32xf32>
    %46 = vector.extract_strided_slice %9 {offsets = [0, 0, 64], sizes = [2, 8, 32], strides = [1, 1, 1]} : vector<2x8x256xf32> to vector<2x8x32xf32>
    "tpu.trace_start"() <{level = 10 : i32, message = "bqd,bkd->bqk"}> : () -> ()
    %cst_15 = arith.constant dense<0.000000e+00> : vector<2x8x8xf32>
    %47 = tpu.matmul %44, %45, %cst_15 {dimension_numbers = #tpu.dot_dimension_numbers<[2], [2], [1], [1], [0, 0, 0, 1, 1, 1], [0], [0]>} : vector<2x8x32xf32>, vector<2x8x32xf32>, vector<2x8x8xf32> -> vector<2x8x8xf32>
    "tpu.trace_stop"() : () -> ()
    %cst_16 = arith.constant dense<0xFF800000> : vector<2x8xf32>
    %48 = vector.multi_reduction <maximumf>, %47, %cst_16 [2] : vector<2x8x8xf32> to vector<2x8xf32>
    %49 = vector.shape_cast %48 : vector<2x8xf32> to vector<2x8x1xf32>
    %50 = vector.broadcast %49 : vector<2x8x1xf32> to vector<2x8x8xf32>
    %51 = arith.subf %47, %50 : vector<2x8x8xf32>
    %52 = math.exp %51 : vector<2x8x8xf32>
    %cst_17 = arith.constant dense<0.000000e+00> : vector<2x8xf32>
    %53 = vector.multi_reduction <add>, %52, %cst_17 [2] : vector<2x8x8xf32> to vector<2x8xf32>
    %54 = vector.shape_cast %53 : vector<2x8xf32> to vector<2x8x1xf32>
    %55 = tpu.reciprocal %54 : vector<2x8x1xf32> -> vector<2x8x1xf32>
    %56 = vector.broadcast %55 : vector<2x8x1xf32> to vector<2x8x8xf32>
    %57 = arith.mulf %52, %56 : vector<2x8x8xf32>
    "tpu.trace_start"() <{level = 10 : i32, message = "bqk,bkd->bqd"}> : () -> ()
    %cst_18 = arith.constant dense<0.000000e+00> : vector<2x8x32xf32>
    %58 = tpu.matmul %57, %46, %cst_18 {dimension_numbers = #tpu.dot_dimension_numbers<[2], [1], [1], [2], [0, 0, 0, 1, 1, 2], [0], [0]>} : vector<2x8x8xf32>, vector<2x8x32xf32>, vector<2x8x32xf32> -> vector<2x8x32xf32>
    "tpu.trace_stop"() : () -> ()
    %59 = vector.shape_cast %58 : vector<2x8x32xf32> to vector<16x32xf32>
    %c0_19 = arith.constant 0 : index
    %c64 = arith.constant 64 : index
    %60 = vector.load %arg6[%c0_19, %c64] : memref<16x256xf32, #tpu.memory_space<vmem>>, vector<16x32xf32>
    tpu.vector_store %arg6[%c0_19, %c64], %59 {strides = array<i32>} : memref<16x256xf32, #tpu.memory_space<vmem>>, vector<16x32xf32>,
    %61 = vector.extract_strided_slice %5 {offsets = [0, 0, 96], sizes = [2, 8, 32], strides = [1, 1, 1]} : vector<2x8x256xf32> to vector<2x8x32xf32>
    %62 = vector.extract_strided_slice %7 {offsets = [0, 0, 96], sizes = [2, 8, 32], strides = [1, 1, 1]} : vector<2x8x256xf32> to vector<2x8x32xf32>
    %63 = vector.extract_strided_slice %9 {offsets = [0, 0, 96], sizes = [2, 8, 32], strides = [1, 1, 1]} : vector<2x8x256xf32> to vector<2x8x32xf32>
    "tpu.trace_start"() <{level = 10 : i32, message = "bqd,bkd->bqk"}> : () -> ()
    %cst_20 = arith.constant dense<0.000000e+00> : vector<2x8x8xf32>
    %64 = tpu.matmul %61, %62, %cst_20 {dimension_numbers = #tpu.dot_dimension_numbers<[2], [2], [1], [1], [0, 0, 0, 1, 1, 1], [0], [0]>} : vector<2x8x32xf32>, vector<2x8x32xf32>, vector<2x8x8xf32> -> vector<2x8x8xf32>
    "tpu.trace_stop"() : () -> ()
    %cst_21 = arith.constant dense<0xFF800000> : vector<2x8xf32>
    %65 = vector.multi_reduction <maximumf>, %64, %cst_21 [2] : vector<2x8x8xf32> to vector<2x8xf32>
    %66 = vector.shape_cast %65 : vector<2x8xf32> to vector<2x8x1xf32>
    %67 = vector.broadcast %66 : vector<2x8x1xf32> to vector<2x8x8xf32>
    %68 = arith.subf %64, %67 : vector<2x8x8xf32>
    %69 = math.exp %68 : vector<2x8x8xf32>
    %cst_22 = arith.constant dense<0.000000e+00> : vector<2x8xf32>
    %70 = vector.multi_reduction <add>, %69, %cst_22 [2] : vector<2x8x8xf32> to vector<2x8xf32>
    %71 = vector.shape_cast %70 : vector<2x8xf32> to vector<2x8x1xf32>
    %72 = tpu.reciprocal %71 : vector<2x8x1xf32> -> vector<2x8x1xf32>
    %73 = vector.broadcast %72 : vector<2x8x1xf32> to vector<2x8x8xf32>
    %74 = arith.mulf %69, %73 : vector<2x8x8xf32>
    "tpu.trace_start"() <{level = 10 : i32, message = "bqk,bkd->bqd"}> : () -> ()
    %cst_23 = arith.constant dense<0.000000e+00> : vector<2x8x32xf32>
    %75 = tpu.matmul %74, %63, %cst_23 {dimension_numbers = #tpu.dot_dimension_numbers<[2], [1], [1], [2], [0, 0, 0, 1, 1, 2], [0], [0]>} : vector<2x8x8xf32>, vector<2x8x32xf32>, vector<2x8x32xf32> -> vector<2x8x32xf32>
    "tpu.trace_stop"() : () -> ()
    %76 = vector.shape_cast %75 : vector<2x8x32xf32> to vector<16x32xf32>
    %c0_24 = arith.constant 0 : index
    %c96 = arith.constant 96 : index
    %77 = vector.load %arg6[%c0_24, %c96] : memref<16x256xf32, #tpu.memory_space<vmem>>, vector<16x32xf32>
    tpu.vector_store %arg6[%c0_24, %c96], %76 {strides = array<i32>} : memref<16x256xf32, #tpu.memory_space<vmem>>, vector<16x32xf32>,
    %78 = vector.extract_strided_slice %5 {offsets = [0, 0, 128], sizes = [2, 8, 32], strides = [1, 1, 1]} : vector<2x8x256xf32> to vector<2x8x32xf32>
    %79 = vector.extract_strided_slice %7 {offsets = [0, 0, 128], sizes = [2, 8, 32], strides = [1, 1, 1]} : vector<2x8x256xf32> to vector<2x8x32xf32>
    %80 = vector.extract_strided_slice %9 {offsets = [0, 0, 128], sizes = [2, 8, 32], strides = [1, 1, 1]} : vector<2x8x256xf32> to vector<2x8x32xf32>
    "tpu.trace_start"() <{level = 10 : i32, message = "bqd,bkd->bqk"}> : () -> ()
    %cst_25 = arith.constant dense<0.000000e+00> : vector<2x8x8xf32>
    %81 = tpu.matmul %78, %79, %cst_25 {dimension_numbers = #tpu.dot_dimension_numbers<[2], [2], [1], [1], [0, 0, 0, 1, 1, 1], [0], [0]>} : vector<2x8x32xf32>, vector<2x8x32xf32>, vector<2x8x8xf32> -> vector<2x8x8xf32>
    "tpu.trace_stop"() : () -> ()
    %cst_26 = arith.constant dense<0xFF800000> : vector<2x8xf32>
    %82 = vector.multi_reduction <maximumf>, %81, %cst_26 [2] : vector<2x8x8xf32> to vector<2x8xf32>
    %83 = vector.shape_cast %82 : vector<2x8xf32> to vector<2x8x1xf32>
    %84 = vector.broadcast %83 : vector<2x8x1xf32> to vector<2x8x8xf32>
    %85 = arith.subf %81, %84 : vector<2x8x8xf32>
    %86 = math.exp %85 : vector<2x8x8xf32>
    %cst_27 = arith.constant dense<0.000000e+00> : vector<2x8xf32>
    %87 = vector.multi_reduction <add>, %86, %cst_27 [2] : vector<2x8x8xf32> to vector<2x8xf32>
    %88 = vector.shape_cast %87 : vector<2x8xf32> to vector<2x8x1xf32>
    %89 = tpu.reciprocal %88 : vector<2x8x1xf32> -> vector<2x8x1xf32>
    %90 = vector.broadcast %89 : vector<2x8x1xf32> to vector<2x8x8xf32>
    %91 = arith.mulf %86, %90 : vector<2x8x8xf32>
    "tpu.trace_start"() <{level = 10 : i32, message = "bqk,bkd->bqd"}> : () -> ()
    %cst_28 = arith.constant dense<0.000000e+00> : vector<2x8x32xf32>
    %92 = tpu.matmul %91, %80, %cst_28 {dimension_numbers = #tpu.dot_dimension_numbers<[2], [1], [1], [2], [0, 0, 0, 1, 1, 2], [0], [0]>} : vector<2x8x8xf32>, vector<2x8x32xf32>, vector<2x8x32xf32> -> vector<2x8x32xf32>
    "tpu.trace_stop"() : () -> ()
    %93 = vector.shape_cast %92 : vector<2x8x32xf32> to vector<16x32xf32>
    %c0_29 = arith.constant 0 : index
    %c128 = arith.constant 128 : index
    %94 = vector.load %arg6[%c0_29, %c128] : memref<16x256xf32, #tpu.memory_space<vmem>>, vector<16x32xf32>
    tpu.vector_store %arg6[%c0_29, %c128], %93 {strides = array<i32>} : memref<16x256xf32, #tpu.memory_space<vmem>>, vector<16x32xf32>,
    %95 = vector.extract_strided_slice %5 {offsets = [0, 0, 160], sizes = [2, 8, 32], strides = [1, 1, 1]} : vector<2x8x256xf32> to vector<2x8x32xf32>
    %96 = vector.extract_strided_slice %7 {offsets = [0, 0, 160], sizes = [2, 8, 32], strides = [1, 1, 1]} : vector<2x8x256xf32> to vector<2x8x32xf32>
    %97 = vector.extract_strided_slice %9 {offsets = [0, 0, 160], sizes = [2, 8, 32], strides = [1, 1, 1]} : vector<2x8x256xf32> to vector<2x8x32xf32>
    "tpu.trace_start"() <{level = 10 : i32, message = "bqd,bkd->bqk"}> : () -> ()
    %cst_30 = arith.constant dense<0.000000e+00> : vector<2x8x8xf32>
    %98 = tpu.matmul %95, %96, %cst_30 {dimension_numbers = #tpu.dot_dimension_numbers<[2], [2], [1], [1], [0, 0, 0, 1, 1, 1], [0], [0]>} : vector<2x8x32xf32>, vector<2x8x32xf32>, vector<2x8x8xf32> -> vector<2x8x8xf32>
    "tpu.trace_stop"() : () -> ()
    %cst_31 = arith.constant dense<0xFF800000> : vector<2x8xf32>
    %99 = vector.multi_reduction <maximumf>, %98, %cst_31 [2] : vector<2x8x8xf32> to vector<2x8xf32>
    %100 = vector.shape_cast %99 : vector<2x8xf32> to vector<2x8x1xf32>
    %101 = vector.broadcast %100 : vector<2x8x1xf32> to vector<2x8x8xf32>
    %102 = arith.subf %98, %101 : vector<2x8x8xf32>
    %103 = math.exp %102 : vector<2x8x8xf32>
    %cst_32 = arith.constant dense<0.000000e+00> : vector<2x8xf32>
    %104 = vector.multi_reduction <add>, %103, %cst_32 [2] : vector<2x8x8xf32> to vector<2x8xf32>
    %105 = vector.shape_cast %104 : vector<2x8xf32> to vector<2x8x1xf32>
    %106 = tpu.reciprocal %105 : vector<2x8x1xf32> -> vector<2x8x1xf32>
    %107 = vector.broadcast %106 : vector<2x8x1xf32> to vector<2x8x8xf32>
    %108 = arith.mulf %103, %107 : vector<2x8x8xf32>
    "tpu.trace_start"() <{level = 10 : i32, message = "bqk,bkd->bqd"}> : () -> ()
    %cst_33 = arith.constant dense<0.000000e+00> : vector<2x8x32xf32>
    %109 = tpu.matmul %108, %97, %cst_33 {dimension_numbers = #tpu.dot_dimension_numbers<[2], [1], [1], [2], [0, 0, 0, 1, 1, 2], [0], [0]>} : vector<2x8x8xf32>, vector<2x8x32xf32>, vector<2x8x32xf32> -> vector<2x8x32xf32>
    "tpu.trace_stop"() : () -> ()
    %110 = vector.shape_cast %109 : vector<2x8x32xf32> to vector<16x32xf32>
    %c0_34 = arith.constant 0 : index
    %c160 = arith.constant 160 : index
    %111 = vector.load %arg6[%c0_34, %c160] : memref<16x256xf32, #tpu.memory_space<vmem>>, vector<16x32xf32>
    tpu.vector_store %arg6[%c0_34, %c160], %110 {strides = array<i32>} : memref<16x256xf32, #tpu.memory_space<vmem>>, vector<16x32xf32>,
    %112 = vector.extract_strided_slice %5 {offsets = [0, 0, 192], sizes = [2, 8, 32], strides = [1, 1, 1]} : vector<2x8x256xf32> to vector<2x8x32xf32>
    %113 = vector.extract_strided_slice %7 {offsets = [0, 0, 192], sizes = [2, 8, 32], strides = [1, 1, 1]} : vector<2x8x256xf32> to vector<2x8x32xf32>
    %114 = vector.extract_strided_slice %9 {offsets = [0, 0, 192], sizes = [2, 8, 32], strides = [1, 1, 1]} : vector<2x8x256xf32> to vector<2x8x32xf32>
    "tpu.trace_start"() <{level = 10 : i32, message = "bqd,bkd->bqk"}> : () -> ()
    %cst_35 = arith.constant dense<0.000000e+00> : vector<2x8x8xf32>
    %115 = tpu.matmul %112, %113, %cst_35 {dimension_numbers = #tpu.dot_dimension_numbers<[2], [2], [1], [1], [0, 0, 0, 1, 1, 1], [0], [0]>} : vector<2x8x32xf32>, vector<2x8x32xf32>, vector<2x8x8xf32> -> vector<2x8x8xf32>
    "tpu.trace_stop"() : () -> ()
    %cst_36 = arith.constant dense<0xFF800000> : vector<2x8xf32>
    %116 = vector.multi_reduction <maximumf>, %115, %cst_36 [2] : vector<2x8x8xf32> to vector<2x8xf32>
    %117 = vector.shape_cast %116 : vector<2x8xf32> to vector<2x8x1xf32>
    %118 = vector.broadcast %117 : vector<2x8x1xf32> to vector<2x8x8xf32>
    %119 = arith.subf %115, %118 : vector<2x8x8xf32>
    %120 = math.exp %119 : vector<2x8x8xf32>
    %cst_37 = arith.constant dense<0.000000e+00> : vector<2x8xf32>
    %121 = vector.multi_reduction <add>, %120, %cst_37 [2] : vector<2x8x8xf32> to vector<2x8xf32>
    %122 = vector.shape_cast %121 : vector<2x8xf32> to vector<2x8x1xf32>
    %123 = tpu.reciprocal %122 : vector<2x8x1xf32> -> vector<2x8x1xf32>
    %124 = vector.broadcast %123 : vector<2x8x1xf32> to vector<2x8x8xf32>
    %125 = arith.mulf %120, %124 : vector<2x8x8xf32>
    "tpu.trace_start"() <{level = 10 : i32, message = "bqk,bkd->bqd"}> : () -> ()
    %cst_38 = arith.constant dense<0.000000e+00> : vector<2x8x32xf32>
    %126 = tpu.matmul %125, %114, %cst_38 {dimension_numbers = #tpu.dot_dimension_numbers<[2], [1], [1], [2], [0, 0, 0, 1, 1, 2], [0], [0]>} : vector<2x8x8xf32>, vector<2x8x32xf32>, vector<2x8x32xf32> -> vector<2x8x32xf32>
    "tpu.trace_stop"() : () -> ()
    %127 = vector.shape_cast %126 : vector<2x8x32xf32> to vector<16x32xf32>
    %c0_39 = arith.constant 0 : index
    %c192 = arith.constant 192 : index
    %128 = vector.load %arg6[%c0_39, %c192] : memref<16x256xf32, #tpu.memory_space<vmem>>, vector<16x32xf32>
    tpu.vector_store %arg6[%c0_39, %c192], %127 {strides = array<i32>} : memref<16x256xf32, #tpu.memory_space<vmem>>, vector<16x32xf32>,
    %129 = vector.extract_strided_slice %5 {offsets = [0, 0, 224], sizes = [2, 8, 32], strides = [1, 1, 1]} : vector<2x8x256xf32> to vector<2x8x32xf32>
    %130 = vector.extract_strided_slice %7 {offsets = [0, 0, 224], sizes = [2, 8, 32], strides = [1, 1, 1]} : vector<2x8x256xf32> to vector<2x8x32xf32>
    %131 = vector.extract_strided_slice %9 {offsets = [0, 0, 224], sizes = [2, 8, 32], strides = [1, 1, 1]} : vector<2x8x256xf32> to vector<2x8x32xf32>
    "tpu.trace_start"() <{level = 10 : i32, message = "bqd,bkd->bqk"}> : () -> ()
    %cst_40 = arith.constant dense<0.000000e+00> : vector<2x8x8xf32>
    %132 = tpu.matmul %129, %130, %cst_40 {dimension_numbers = #tpu.dot_dimension_numbers<[2], [2], [1], [1], [0, 0, 0, 1, 1, 1], [0], [0]>} : vector<2x8x32xf32>, vector<2x8x32xf32>, vector<2x8x8xf32> -> vector<2x8x8xf32>
    "tpu.trace_stop"() : () -> ()
    %cst_41 = arith.constant dense<0xFF800000> : vector<2x8xf32>
    %133 = vector.multi_reduction <maximumf>, %132, %cst_41 [2] : vector<2x8x8xf32> to vector<2x8xf32>
    %134 = vector.shape_cast %133 : vector<2x8xf32> to vector<2x8x1xf32>
    %135 = vector.broadcast %134 : vector<2x8x1xf32> to vector<2x8x8xf32>
    %136 = arith.subf %132, %135 : vector<2x8x8xf32>
    %137 = math.exp %136 : vector<2x8x8xf32>
    %cst_42 = arith.constant dense<0.000000e+00> : vector<2x8xf32>
    %138 = vector.multi_reduction <add>, %137, %cst_42 [2] : vector<2x8x8xf32> to vector<2x8xf32>
    %139 = vector.shape_cast %138 : vector<2x8xf32> to vector<2x8x1xf32>
    %140 = tpu.reciprocal %139 : vector<2x8x1xf32> -> vector<2x8x1xf32>
    %141 = vector.broadcast %140 : vector<2x8x1xf32> to vector<2x8x8xf32>
    %142 = arith.mulf %137, %141 : vector<2x8x8xf32>
    "tpu.trace_start"() <{level = 10 : i32, message = "bqk,bkd->bqd"}> : () -> ()
    %cst_43 = arith.constant dense<0.000000e+00> : vector<2x8x32xf32>
    %143 = tpu.matmul %142, %131, %cst_43 {dimension_numbers = #tpu.dot_dimension_numbers<[2], [1], [1], [2], [0, 0, 0, 1, 1, 2], [0], [0]>} : vector<2x8x8xf32>, vector<2x8x32xf32>, vector<2x8x32xf32> -> vector<2x8x32xf32>
    "tpu.trace_stop"() : () -> ()
    %144 = vector.shape_cast %143 : vector<2x8x32xf32> to vector<16x32xf32>
    %c0_44 = arith.constant 0 : index
    %c224 = arith.constant 224 : index
    %145 = vector.load %arg6[%c0_44, %c224] : memref<16x256xf32, #tpu.memory_space<vmem>>, vector<16x32xf32>
    tpu.vector_store %arg6[%c0_44, %c224], %144 {strides = array<i32>} : memref<16x256xf32, #tpu.memory_space<vmem>>, vector<16x32xf32>,
    %c0_45 = arith.constant 0 : index
    %c0_46 = arith.constant 0 : index
    %146 = vector.load %arg6[%c0_45, %c0_46] : memref<16x256xf32, #tpu.memory_space<vmem>>, vector<16x256xf32>
    %c0_47 = arith.constant 0 : index
    %c0_48 = arith.constant 0 : index
    %147 = vector.load %arg3[%c0_47, %c0_48] : memref<256x32xf32, #tpu.memory_space<vmem>>, vector<256x32xf32>
    %cst_49 = arith.constant dense<0.000000e+00> : vector<16x32xf32>
    %148 = tpu.matmul %146, %147, %cst_49 {dimension_numbers = #tpu.dot_dimension_numbers<[1], [0], [0], [1], [0, 0, 1, 1], [], []>} : vector<16x256xf32>, vector<256x32xf32>, vector<16x32xf32> -> vector<16x32xf32>
    %c0_50 = arith.constant 0 : index
    %c0_51 = arith.constant 0 : index
    %149 = vector.load %arg4[%c0_50, %c0_51] : memref<1x32xf32, #tpu.memory_space<vmem>>, vector<1x32xf32>
    %150 = vector.broadcast %149 : vector<1x32xf32> to vector<16x32xf32>
    %151 = arith.addf %148, %150 : vector<16x32xf32>
    %152 = vector.shape_cast %151 : vector<16x32xf32> to vector<2x8x32xf32>
    %c0_52 = arith.constant 0 : index
    %c0_53 = arith.constant 0 : index
    %c0_54 = arith.constant 0 : index
    %153 = vector.load %arg5[%c0_52, %c0_53, %c0_54] : memref<2x8x32xf32, #tpu.memory_space<vmem>>, vector<2x8x32xf32>
    tpu.vector_store %arg5[%c0_52, %c0_53, %c0_54], %152 {strides = array<i32>} : memref<2x8x32xf32, #tpu.memory_space<vmem>>, vector<2x8x32xf32>,
    return
  }
  func.func @transform_0(%arg0: i32) -> (i32, i32, i32) {
    %c0_i32 = arith.constant 0 : i32
    %c0_i32_0 = arith.constant 0 : i32
    %c0_i32_1 = arith.constant 0 : i32
    return %arg0, %c0_i32, %c0_i32_0 : i32, i32, i32
  }
  func.func @transform_1(%arg0: i32) -> (i32, i32) {
    %c0_i32 = arith.constant 0 : i32
    %c0_i32_0 = arith.constant 0 : i32
    %c0_i32_1 = arith.constant 0 : i32
    return %c0_i32, %c0_i32_0 : i32, i32
  }
  func.func @transform_2(%arg0: i32) -> (i32, i32) {
    %c0_i32 = arith.constant 0 : i32
    %c0_i32_0 = arith.constant 0 : i32
    %c0_i32_1 = arith.constant 0 : i32
    return %c0_i32, %c0_i32_0 : i32, i32
  }
  func.func @transform_3(%arg0: i32) -> (i32, i32) {
    %c0_i32 = arith.constant 0 : i32
    %c0_i32_0 = arith.constant 0 : i32
    %c0_i32_1 = arith.constant 0 : i32
    return %c0_i32, %c0_i32_0 : i32, i32
  }
  func.func @transform_4(%arg0: i32) -> (i32, i32, i32) {
    %c0_i32 = arith.constant 0 : i32
    %c0_i32_0 = arith.constant 0 : i32
    %c0_i32_1 = arith.constant 0 : i32
    return %arg0, %c0_i32, %c0_i32_0 : i32, i32, i32
  }
}

module attributes {stable_mosaic.version = 11 : i64} {
  func.func @_self_attn_kernel(%arg0: i32, %arg1: memref<2x8x32xf32, #tpu.memory_space<vmem>>, %arg2: memref<32x768xf32, #tpu.memory_space<vmem>>, %arg3: memref<256x32xf32, #tpu.memory_space<vmem>>, %arg4: memref<1x32xf32, #tpu.memory_space<vmem>>, %arg5: memref<2x8x32xf32, #tpu.memory_space<vmem>>, %arg6: memref<16x256xf32, #tpu.memory_space<vmem>>) attributes {dimension_semantics = [#tpu.dimension_semantics<parallel>], iteration_bounds = array<i64: 1>, scalar_prefetch = 0 : i64, scratch_operands = 1 : i64, tpu.core_type = #tpu.core_type<tc>, window_params = [{transform_indices = @transform_0, window_bounds = array<i64: 2, 8, 32>}, {pipeline_mode = #tpu.pipeline_mode<synchronous>, transform_indices = @transform_1, window_bounds = array<i64: 32, 768>}, {pipeline_mode = #tpu.pipeline_mode<synchronous>, transform_indices = @transform_2, window_bounds = array<i64: 256, 32>}, {pipeline_mode = #tpu.pipeline_mode<synchronous>, transform_indices = @transform_3, window_bounds = array<i64: 1, 32>}, {transform_indices = @transform_4, window_bounds = array<i64: 2, 8, 32>}]} {
    %c0 = arith.constant 0 : index
    %c0_0 = arith.constant 0 : index
    %c0_1 = arith.constant 0 : index
    %0 = vector.load %arg1[%c0, %c0_0, %c0_1] : memref<2x8x32xf32, #tpu.memory_space<vmem>>, vector<2x8x32xf32>
    %1 = vector.shape_cast %0 : vector<2x8x32xf32> to vector<16x32xf32>
    %c0_2 = arith.constant 0 : index
    %c0_3 = arith.constant 0 : index
    %2 = vector.load %arg2[%c0_2, %c0_3] : memref<32x768xf32, #tpu.memory_space<vmem>>, vector<32x768xf32>
    %cst = arith.constant dense<0.000000e+00> : vector<16x768xf32>
    %3 = tpu.matmul %1, %2, %cst {dimension_numbers = #tpu.dot_dimension_numbers<[1], [0], [0], [1], [0, 0, 1, 1], [], []>} : vector<16x32xf32>, vector<32x768xf32>, vector<16x768xf32> -> vector<16x768xf32>
    %4 = vector.extract_strided_slice %3 {offsets = [0, 0], sizes = [16, 256], strides = [1, 1]} : vector<16x768xf32> to vector<16x256xf32>
    %5 = vector.shape_cast %4 : vector<16x256xf32> to vector<2x8x256xf32>
    %6 = vector.extract_strided_slice %3 {offsets = [0, 256], sizes = [16, 256], strides = [1, 1]} : vector<16x768xf32> to vector<16x256xf32>
    %7 = vector.shape_cast %6 : vector<16x256xf32> to vector<2x8x256xf32>
    %8 = vector.extract_strided_slice %3 {offsets = [0, 512], sizes = [16, 256], strides = [1, 1]} : vector<16x768xf32> to vector<16x256xf32>
    %9 = vector.shape_cast %8 : vector<16x256xf32> to vector<2x8x256xf32>
    %10 = vector.extract_strided_slice %5 {offsets = [0, 0, 0], sizes = [2, 8, 32], strides = [1, 1, 1]} : vector<2x8x256xf32> to vector<2x8x32xf32>
    %11 = vector.extract_strided_slice %7 {offsets = [0, 0, 0], sizes = [2, 8, 32], strides = [1, 1, 1]} : vector<2x8x256xf32> to vector<2x8x32xf32>
    %12 = vector.extract_strided_slice %9 {offsets = [0, 0, 0], sizes = [2, 8, 32], strides = [1, 1, 1]} : vector<2x8x256xf32> to vector<2x8x32xf32>
    "tpu.trace_start"() <{level = 10 : i32, message = "bqd,bkd->bqk"}> : () -> ()
    %cst_4 = arith.constant dense<0.000000e+00> : vector<2x8x8xf32>
    %13 = tpu.matmul %10, %11, %cst_4 {dimension_numbers = #tpu.dot_dimension_numbers<[2], [2], [1], [1], [0, 0, 0, 1, 1, 1], [0], [0]>} : vector<2x8x32xf32>, vector<2x8x32xf32>, vector<2x8x8xf32> -> vector<2x8x8xf32>
    "tpu.trace_stop"() : () -> ()
    %cst_5 = arith.constant dense<0xFF800000> : vector<2x8xf32>
    %14 = vector.multi_reduction <maximumf>, %13, %cst_5 [2] : vector<2x8x8xf32> to vector<2x8xf32>
    %15 = vector.shape_cast %14 : vector<2x8xf32> to vector<2x8x1xf32>
    %16 = vector.broadcast %15 : vector<2x8x1xf32> to vector<2x8x8xf32>
    %17 = arith.subf %13, %16 : vector<2x8x8xf32>
    %18 = math.exp %17 : vector<2x8x8xf32>
    %cst_6 = arith.constant dense<0.000000e+00> : vector<2x8xf32>
    %19 = vector.multi_reduction <add>, %18, %cst_6 [2] : vector<2x8x8xf32> to vector<2x8xf32>
    %20 = vector.shape_cast %19 : vector<2x8xf32> to vector<2x8x1xf32>
    %21 = tpu.reciprocal %20 : vector<2x8x1xf32> -> vector<2x8x1xf32>
    %22 = vector.broadcast %21 : vector<2x8x1xf32> to vector<2x8x8xf32>
    %23 = arith.mulf %18, %22 : vector<2x8x8xf32>
    "tpu.trace_start"() <{level = 10 : i32, message = "bqk,bkd->bqd"}> : () -> ()
    %cst_7 = arith.constant dense<0.000000e+00> : vector<2x8x32xf32>
    %24 = tpu.matmul %23, %12, %cst_7 {dimension_numbers = #tpu.dot_dimension_numbers<[2], [1], [1], [2], [0, 0, 0, 1, 1, 2], [0], [0]>} : vector<2x8x8xf32>, vector<2x8x32xf32>, vector<2x8x32xf32> -> vector<2x8x32xf32>
    "tpu.trace_stop"() : () -> ()
    %25 = vector.shape_cast %24 : vector<2x8x32xf32> to vector<16x32xf32>
    %c0_8 = arith.constant 0 : index
    %c0_9 = arith.constant 0 : index
    %26 = vector.load %arg6[%c0_8, %c0_9] : memref<16x256xf32, #tpu.memory_space<vmem>>, vector<16x32xf32>
    tpu.vector_store %arg6[%c0_8, %c0_9], %25 {strides = array<i32>} : memref<16x256xf32, #tpu.memory_space<vmem>>, vector<16x32xf32>,
    %27 = vector.extract_strided_slice %5 {offsets = [0, 0, 32], sizes = [2, 8, 32], strides = [1, 1, 1]} : vector<2x8x256xf32> to vector<2x8x32xf32>
    %28 = vector.extract_strided_slice %7 {offsets = [0, 0, 32], sizes = [2, 8, 32], strides = [1, 1, 1]} : vector<2x8x256xf32> to vector<2x8x32xf32>
    %29 = vector.extract_strided_slice %9 {offsets = [0, 0, 32], sizes = [2, 8, 32], strides = [1, 1, 1]} : vector<2x8x256xf32> to vector<2x8x32xf32>
    "tpu.trace_start"() <{level = 10 : i32, message = "bqd,bkd->bqk"}> : () -> ()
    %cst_10 = arith.constant dense<0.000000e+00> : vector<2x8x8xf32>
    %30 = tpu.matmul %27, %28, %cst_10 {dimension_numbers = #tpu.dot_dimension_numbers<[2], [2], [1], [1], [0, 0, 0, 1, 1, 1], [0], [0]>} : vector<2x8x32xf32>, vector<2x8x32xf32>, vector<2x8x8xf32> -> vector<2x8x8xf32>
    "tpu.trace_stop"() : () -> ()
    %cst_11 = arith.constant dense<0xFF800000> : vector<2x8xf32>
    %31 = vector.multi_reduction <maximumf>, %30, %cst_11 [2] : vector<2x8x8xf32> to vector<2x8xf32>
    %32 = vector.shape_cast %31 : vector<2x8xf32> to vector<2x8x1xf32>
    %33 = vector.broadcast %32 : vector<2x8x1xf32> to vector<2x8x8xf32>
    %34 = arith.subf %30, %33 : vector<2x8x8xf32>
    %35 = math.exp %34 : vector<2x8x8xf32>
    %cst_12 = arith.constant dense<0.000000e+00> : vector<2x8xf32>
    %36 = vector.multi_reduction <add>, %35, %cst_12 [2] : vector<2x8x8xf32> to vector<2x8xf32>
    %37 = vector.shape_cast %36 : vector<2x8xf32> to vector<2x8x1xf32>
    %38 = tpu.reciprocal %37 : vector<2x8x1xf32> -> vector<2x8x1xf32>
    %39 = vector.broadcast %38 : vector<2x8x1xf32> to vector<2x8x8xf32>
    %40 = arith.mulf %35, %39 : vector<2x8x8xf32>
    "tpu.trace_start"() <{level = 10 : i32, message = "bqk,bkd->bqd"}> : () -> ()
    %cst_13 = arith.constant dense<0.000000e+00> : vector<2x8x32xf32>
    %41 = tpu.matmul %40, %29, %cst_13 {dimension_numbers = #tpu.dot_dimension_numbers<[2], [1], [1], [2], [0, 0, 0, 1, 1, 2], [0], [0]>} : vector<2x8x8xf32>, vector<2x8x32xf32>, vector<2x8x32xf32> -> vector<2x8x32xf32>
    "tpu.trace_stop"() : () -> ()
    %42 = vector.shape_cast %41 : vector<2x8x32xf32> to vector<16x32xf32>
    %c0_14 = arith.constant 0 : index
    %c32 = arith.constant 32 : index
    %43 = vector.load %arg6[%c0_14, %c32] : memref<16x256xf32, #tpu.memory_space<vmem>>, vector<16x32xf32>
    tpu.vector_store %arg6[%c0_14, %c32], %42 {strides = array<i32>} : memref<16x256xf32, #tpu.memory_space<vmem>>, vector<16x32xf32>,
    %44 = vector.extract_strided_slice %5 {offsets = [0, 0, 64], sizes = [2, 8, 32], strides = [1, 1, 1]} : vector<2x8x256xf32> to vector<2x8x32xf32>
    %45 = vector.extract_strided_slice %7 {offsets = [0, 0, 64], sizes = [2, 8, 32], strides = [1, 1, 1]} : vector<2x8x256xf32> to vector<2x8x32xf32>
    %46 = vector.extract_strided_slice %9 {offsets = [0, 0, 64], sizes = [2, 8, 32], strides = [1, 1, 1]} : vector<2x8x256xf32> to vector<2x8x32xf32>
    "tpu.trace_start"() <{level = 10 : i32, message = "bqd,bkd->bqk"}> : () -> ()
    %cst_15 = arith.constant dense<0.000000e+00> : vector<2x8x8xf32>
    %47 = tpu.matmul %44, %45, %cst_15 {dimension_numbers = #tpu.dot_dimension_numbers<[2], [2], [1], [1], [0, 0, 0, 1, 1, 1], [0], [0]>} : vector<2x8x32xf32>, vector<2x8x32xf32>, vector<2x8x8xf32> -> vector<2x8x8xf32>
    "tpu.trace_stop"() : () -> ()
    %cst_16 = arith.constant dense<0xFF800000> : vector<2x8xf32>
    %48 = vector.multi_reduction <maximumf>, %47, %cst_16 [2] : vector<2x8x8xf32> to vector<2x8xf32>
    %49 = vector.shape_cast %48 : vector<2x8xf32> to vector<2x8x1xf32>
    %50 = vector.broadcast %49 : vector<2x8x1xf32> to vector<2x8x8xf32>
    %51 = arith.subf %47, %50 : vector<2x8x8xf32>
    %52 = math.exp %51 : vector<2x8x8xf32>
    %cst_17 = arith.constant dense<0.000000e+00> : vector<2x8xf32>
    %53 = vector.multi_reduction <add>, %52, %cst_17 [2] : vector<2x8x8xf32> to vector<2x8xf32>
    %54 = vector.shape_cast %53 : vector<2x8xf32> to vector<2x8x1xf32>
    %55 = tpu.reciprocal %54 : vector<2x8x1xf32> -> vector<2x8x1xf32>
    %56 = vector.broadcast %55 : vector<2x8x1xf32> to vector<2x8x8xf32>
    %57 = arith.mulf %52, %56 : vector<2x8x8xf32>
    "tpu.trace_start"() <{level = 10 : i32, message = "bqk,bkd->bqd"}> : () -> ()
    %cst_18 = arith.constant dense<0.000000e+00> : vector<2x8x32xf32>
    %58 = tpu.matmul %57, %46, %cst_18 {dimension_numbers = #tpu.dot_dimension_numbers<[2], [1], [1], [2], [0, 0, 0, 1, 1, 2], [0], [0]>} : vector<2x8x8xf32>, vector<2x8x32xf32>, vector<2x8x32xf32> -> vector<2x8x32xf32>
    "tpu.trace_stop"() : () -> ()
    %59 = vector.shape_cast %58 : vector<2x8x32xf32> to vector<16x32xf32>
    %c0_19 = arith.constant 0 : index
    %c64 = arith.constant 64 : index
    %60 = vector.load %arg6[%c0_19, %c64] : memref<16x256xf32, #tpu.memory_space<vmem>>, vector<16x32xf32>
    tpu.vector_store %arg6[%c0_19, %c64], %59 {strides = array<i32>} : memref<16x256xf32, #tpu.memory_space<vmem>>, vector<16x32xf32>,
    %61 = vector.extract_strided_slice %5 {offsets = [0, 0, 96], sizes = [2, 8, 32], strides = [1, 1, 1]} : vector<2x8x256xf32> to vector<2x8x32xf32>
    %62 = vector.extract_strided_slice %7 {offsets = [0, 0, 96], sizes = [2, 8, 32], strides = [1, 1, 1]} : vector<2x8x256xf32> to vector<2x8x32xf32>
    %63 = vector.extract_strided_slice %9 {offsets = [0, 0, 96], sizes = [2, 8, 32], strides = [1, 1, 1]} : vector<2x8x256xf32> to vector<2x8x32xf32>
    "tpu.trace_start"() <{level = 10 : i32, message = "bqd,bkd->bqk"}> : () -> ()
    %cst_20 = arith.constant dense<0.000000e+00> : vector<2x8x8xf32>
    %64 = tpu.matmul %61, %62, %cst_20 {dimension_numbers = #tpu.dot_dimension_numbers<[2], [2], [1], [1], [0, 0, 0, 1, 1, 1], [0], [0]>} : vector<2x8x32xf32>, vector<2x8x32xf32>, vector<2x8x8xf32> -> vector<2x8x8xf32>
    "tpu.trace_stop"() : () -> ()
    %cst_21 = arith.constant dense<0xFF800000> : vector<2x8xf32>
    %65 = vector.multi_reduction <maximumf>, %64, %cst_21 [2] : vector<2x8x8xf32> to vector<2x8xf32>
    %66 = vector.shape_cast %65 : vector<2x8xf32> to vector<2x8x1xf32>
    %67 = vector.broadcast %66 : vector<2x8x1xf32> to vector<2x8x8xf32>
    %68 = arith.subf %64, %67 : vector<2x8x8xf32>
    %69 = math.exp %68 : vector<2x8x8xf32>
    %cst_22 = arith.constant dense<0.000000e+00> : vector<2x8xf32>
    %70 = vector.multi_reduction <add>, %69, %cst_22 [2] : vector<2x8x8xf32> to vector<2x8xf32>
    %71 = vector.shape_cast %70 : vector<2x8xf32> to vector<2x8x1xf32>
    %72 = tpu.reciprocal %71 : vector<2x8x1xf32> -> vector<2x8x1xf32>
    %73 = vector.broadcast %72 : vector<2x8x1xf32> to vector<2x8x8xf32>
    %74 = arith.mulf %69, %73 : vector<2x8x8xf32>
    "tpu.trace_start"() <{level = 10 : i32, message = "bqk,bkd->bqd"}> : () -> ()
    %cst_23 = arith.constant dense<0.000000e+00> : vector<2x8x32xf32>
    %75 = tpu.matmul %74, %63, %cst_23 {dimension_numbers = #tpu.dot_dimension_numbers<[2], [1], [1], [2], [0, 0, 0, 1, 1, 2], [0], [0]>} : vector<2x8x8xf32>, vector<2x8x32xf32>, vector<2x8x32xf32> -> vector<2x8x32xf32>
    "tpu.trace_stop"() : () -> ()
    %76 = vector.shape_cast %75 : vector<2x8x32xf32> to vector<16x32xf32>
    %c0_24 = arith.constant 0 : index
    %c96 = arith.constant 96 : index
    %77 = vector.load %arg6[%c0_24, %c96] : memref<16x256xf32, #tpu.memory_space<vmem>>, vector<16x32xf32>
    tpu.vector_store %arg6[%c0_24, %c96], %76 {strides = array<i32>} : memref<16x256xf32, #tpu.memory_space<vmem>>, vector<16x32xf32>,
    %78 = vector.extract_strided_slice %5 {offsets = [0, 0, 128], sizes = [2, 8, 32], strides = [1, 1, 1]} : vector<2x8x256xf32> to vector<2x8x32xf32>
    %79 = vector.extract_strided_slice %7 {offsets = [0, 0, 128], sizes = [2, 8, 32], strides = [1, 1, 1]} : vector<2x8x256xf32> to vector<2x8x32xf32>
    %80 = vector.extract_strided_slice %9 {offsets = [0, 0, 128], sizes = [2, 8, 32], strides = [1, 1, 1]} : vector<2x8x256xf32> to vector<2x8x32xf32>
    "tpu.trace_start"() <{level = 10 : i32, message = "bqd,bkd->bqk"}> : () -> ()
    %cst_25 = arith.constant dense<0.000000e+00> : vector<2x8x8xf32>
    %81 = tpu.matmul %78, %79, %cst_25 {dimension_numbers = #tpu.dot_dimension_numbers<[2], [2], [1], [1], [0, 0, 0, 1, 1, 1], [0], [0]>} : vector<2x8x32xf32>, vector<2x8x32xf32>, vector<2x8x8xf32> -> vector<2x8x8xf32>
    "tpu.trace_stop"() : () -> ()
    %cst_26 = arith.constant dense<0xFF800000> : vector<2x8xf32>
    %82 = vector.multi_reduction <maximumf>, %81, %cst_26 [2] : vector<2x8x8xf32> to vector<2x8xf32>
    %83 = vector.shape_cast %82 : vector<2x8xf32> to vector<2x8x1xf32>
    %84 = vector.broadcast %83 : vector<2x8x1xf32> to vector<2x8x8xf32>
    %85 = arith.subf %81, %84 : vector<2x8x8xf32>
    %86 = math.exp %85 : vector<2x8x8xf32>
    %cst_27 = arith.constant dense<0.000000e+00> : vector<2x8xf32>
    %87 = vector.multi_reduction <add>, %86, %cst_27 [2] : vector<2x8x8xf32> to vector<2x8xf32>
    %88 = vector.shape_cast %87 : vector<2x8xf32> to vector<2x8x1xf32>
    %89 = tpu.reciprocal %88 : vector<2x8x1xf32> -> vector<2x8x1xf32>
    %90 = vector.broadcast %89 : vector<2x8x1xf32> to vector<2x8x8xf32>
    %91 = arith.mulf %86, %90 : vector<2x8x8xf32>
    "tpu.trace_start"() <{level = 10 : i32, message = "bqk,bkd->bqd"}> : () -> ()
    %cst_28 = arith.constant dense<0.000000e+00> : vector<2x8x32xf32>
    %92 = tpu.matmul %91, %80, %cst_28 {dimension_numbers = #tpu.dot_dimension_numbers<[2], [1], [1], [2], [0, 0, 0, 1, 1, 2], [0], [0]>} : vector<2x8x8xf32>, vector<2x8x32xf32>, vector<2x8x32xf32> -> vector<2x8x32xf32>
    "tpu.trace_stop"() : () -> ()
    %93 = vector.shape_cast %92 : vector<2x8x32xf32> to vector<16x32xf32>
    %c0_29 = arith.constant 0 : index
    %c128 = arith.constant 128 : index
    %94 = vector.load %arg6[%c0_29, %c128] : memref<16x256xf32, #tpu.memory_space<vmem>>, vector<16x32xf32>
    tpu.vector_store %arg6[%c0_29, %c128], %93 {strides = array<i32>} : memref<16x256xf32, #tpu.memory_space<vmem>>, vector<16x32xf32>,
    %95 = vector.extract_strided_slice %5 {offsets = [0, 0, 160], sizes = [2, 8, 32], strides = [1, 1, 1]} : vector<2x8x256xf32> to vector<2x8x32xf32>
    %96 = vector.extract_strided_slice %7 {offsets = [0, 0, 160], sizes = [2, 8, 32], strides = [1, 1, 1]} : vector<2x8x256xf32> to vector<2x8x32xf32>
    %97 = vector.extract_strided_slice %9 {offsets = [0, 0, 160], sizes = [2, 8, 32], strides = [1, 1, 1]} : vector<2x8x256xf32> to vector<2x8x32xf32>
    "tpu.trace_start"() <{level = 10 : i32, message = "bqd,bkd->bqk"}> : () -> ()
    %cst_30 = arith.constant dense<0.000000e+00> : vector<2x8x8xf32>
    %98 = tpu.matmul %95, %96, %cst_30 {dimension_numbers = #tpu.dot_dimension_numbers<[2], [2], [1], [1], [0, 0, 0, 1, 1, 1], [0], [0]>} : vector<2x8x32xf32>, vector<2x8x32xf32>, vector<2x8x8xf32> -> vector<2x8x8xf32>
    "tpu.trace_stop"() : () -> ()
    %cst_31 = arith.constant dense<0xFF800000> : vector<2x8xf32>
    %99 = vector.multi_reduction <maximumf>, %98, %cst_31 [2] : vector<2x8x8xf32> to vector<2x8xf32>
    %100 = vector.shape_cast %99 : vector<2x8xf32> to vector<2x8x1xf32>
    %101 = vector.broadcast %100 : vector<2x8x1xf32> to vector<2x8x8xf32>
    %102 = arith.subf %98, %101 : vector<2x8x8xf32>
    %103 = math.exp %102 : vector<2x8x8xf32>
    %cst_32 = arith.constant dense<0.000000e+00> : vector<2x8xf32>
    %104 = vector.multi_reduction <add>, %103, %cst_32 [2] : vector<2x8x8xf32> to vector<2x8xf32>
    %105 = vector.shape_cast %104 : vector<2x8xf32> to vector<2x8x1xf32>
    %106 = tpu.reciprocal %105 : vector<2x8x1xf32> -> vector<2x8x1xf32>
    %107 = vector.broadcast %106 : vector<2x8x1xf32> to vector<2x8x8xf32>
    %108 = arith.mulf %103, %107 : vector<2x8x8xf32>
    "tpu.trace_start"() <{level = 10 : i32, message = "bqk,bkd->bqd"}> : () -> ()
    %cst_33 = arith.constant dense<0.000000e+00> : vector<2x8x32xf32>
    %109 = tpu.matmul %108, %97, %cst_33 {dimension_numbers = #tpu.dot_dimension_numbers<[2], [1], [1], [2], [0, 0, 0, 1, 1, 2], [0], [0]>} : vector<2x8x8xf32>, vector<2x8x32xf32>, vector<2x8x32xf32> -> vector<2x8x32xf32>
    "tpu.trace_stop"() : () -> ()
    %110 = vector.shape_cast %109 : vector<2x8x32xf32> to vector<16x32xf32>
    %c0_34 = arith.constant 0 : index
    %c160 = arith.constant 160 : index
    %111 = vector.load %arg6[%c0_34, %c160] : memref<16x256xf32, #tpu.memory_space<vmem>>, vector<16x32xf32>
    tpu.vector_store %arg6[%c0_34, %c160], %110 {strides = array<i32>} : memref<16x256xf32, #tpu.memory_space<vmem>>, vector<16x32xf32>,
    %112 = vector.extract_strided_slice %5 {offsets = [0, 0, 192], sizes = [2, 8, 32], strides = [1, 1, 1]} : vector<2x8x256xf32> to vector<2x8x32xf32>
    %113 = vector.extract_strided_slice %7 {offsets = [0, 0, 192], sizes = [2, 8, 32], strides = [1, 1, 1]} : vector<2x8x256xf32> to vector<2x8x32xf32>
    %114 = vector.extract_strided_slice %9 {offsets = [0, 0, 192], sizes = [2, 8, 32], strides = [1, 1, 1]} : vector<2x8x256xf32> to vector<2x8x32xf32>
    "tpu.trace_start"() <{level = 10 : i32, message = "bqd,bkd->bqk"}> : () -> ()
    %cst_35 = arith.constant dense<0.000000e+00> : vector<2x8x8xf32>
    %115 = tpu.matmul %112, %113, %cst_35 {dimension_numbers = #tpu.dot_dimension_numbers<[2], [2], [1], [1], [0, 0, 0, 1, 1, 1], [0], [0]>} : vector<2x8x32xf32>, vector<2x8x32xf32>, vector<2x8x8xf32> -> vector<2x8x8xf32>
    "tpu.trace_stop"() : () -> ()
    %cst_36 = arith.constant dense<0xFF800000> : vector<2x8xf32>
    %116 = vector.multi_reduction <maximumf>, %115, %cst_36 [2] : vector<2x8x8xf32> to vector<2x8xf32>
    %117 = vector.shape_cast %116 : vector<2x8xf32> to vector<2x8x1xf32>
    %118 = vector.broadcast %117 : vector<2x8x1xf32> to vector<2x8x8xf32>
    %119 = arith.subf %115, %118 : vector<2x8x8xf32>
    %120 = math.exp %119 : vector<2x8x8xf32>
    %cst_37 = arith.constant dense<0.000000e+00> : vector<2x8xf32>
    %121 = vector.multi_reduction <add>, %120, %cst_37 [2] : vector<2x8x8xf32> to vector<2x8xf32>
    %122 = vector.shape_cast %121 : vector<2x8xf32> to vector<2x8x1xf32>
    %123 = tpu.reciprocal %122 : vector<2x8x1xf32> -> vector<2x8x1xf32>
    %124 = vector.broadcast %123 : vector<2x8x1xf32> to vector<2x8x8xf32>
    %125 = arith.mulf %120, %124 : vector<2x8x8xf32>
    "tpu.trace_start"() <{level = 10 : i32, message = "bqk,bkd->bqd"}> : () -> ()
    %cst_38 = arith.constant dense<0.000000e+00> : vector<2x8x32xf32>
    %126 = tpu.matmul %125, %114, %cst_38 {dimension_numbers = #tpu.dot_dimension_numbers<[2], [1], [1], [2], [0, 0, 0, 1, 1, 2], [0], [0]>} : vector<2x8x8xf32>, vector<2x8x32xf32>, vector<2x8x32xf32> -> vector<2x8x32xf32>
    "tpu.trace_stop"() : () -> ()
    %127 = vector.shape_cast %126 : vector<2x8x32xf32> to vector<16x32xf32>
    %c0_39 = arith.constant 0 : index
    %c192 = arith.constant 192 : index
    %128 = vector.load %arg6[%c0_39, %c192] : memref<16x256xf32, #tpu.memory_space<vmem>>, vector<16x32xf32>
    tpu.vector_store %arg6[%c0_39, %c192], %127 {strides = array<i32>} : memref<16x256xf32, #tpu.memory_space<vmem>>, vector<16x32xf32>,
    %129 = vector.extract_strided_slice %5 {offsets = [0, 0, 224], sizes = [2, 8, 32], strides = [1, 1, 1]} : vector<2x8x256xf32> to vector<2x8x32xf32>
    %130 = vector.extract_strided_slice %7 {offsets = [0, 0, 224], sizes = [2, 8, 32], strides = [1, 1, 1]} : vector<2x8x256xf32> to vector<2x8x32xf32>
    %131 = vector.extract_strided_slice %9 {offsets = [0, 0, 224], sizes = [2, 8, 32], strides = [1, 1, 1]} : vector<2x8x256xf32> to vector<2x8x32xf32>
    "tpu.trace_start"() <{level = 10 : i32, message = "bqd,bkd->bqk"}> : () -> ()
    %cst_40 = arith.constant dense<0.000000e+00> : vector<2x8x8xf32>
    %132 = tpu.matmul %129, %130, %cst_40 {dimension_numbers = #tpu.dot_dimension_numbers<[2], [2], [1], [1], [0, 0, 0, 1, 1, 1], [0], [0]>} : vector<2x8x32xf32>, vector<2x8x32xf32>, vector<2x8x8xf32> -> vector<2x8x8xf32>
    "tpu.trace_stop"() : () -> ()
    %cst_41 = arith.constant dense<0xFF800000> : vector<2x8xf32>
    %133 = vector.multi_reduction <maximumf>, %132, %cst_41 [2] : vector<2x8x8xf32> to vector<2x8xf32>
    %134 = vector.shape_cast %133 : vector<2x8xf32> to vector<2x8x1xf32>
    %135 = vector.broadcast %134 : vector<2x8x1xf32> to vector<2x8x8xf32>
    %136 = arith.subf %132, %135 : vector<2x8x8xf32>
    %137 = math.exp %136 : vector<2x8x8xf32>
    %cst_42 = arith.constant dense<0.000000e+00> : vector<2x8xf32>
    %138 = vector.multi_reduction <add>, %137, %cst_42 [2] : vector<2x8x8xf32> to vector<2x8xf32>
    %139 = vector.shape_cast %138 : vector<2x8xf32> to vector<2x8x1xf32>
    %140 = tpu.reciprocal %139 : vector<2x8x1xf32> -> vector<2x8x1xf32>
    %141 = vector.broadcast %140 : vector<2x8x1xf32> to vector<2x8x8xf32>
    %142 = arith.mulf %137, %141 : vector<2x8x8xf32>
    "tpu.trace_start"() <{level = 10 : i32, message = "bqk,bkd->bqd"}> : () -> ()
    %cst_43 = arith.constant dense<0.000000e+00> : vector<2x8x32xf32>
    %143 = tpu.matmul %142, %131, %cst_43 {dimension_numbers = #tpu.dot_dimension_numbers<[2], [1], [1], [2], [0, 0, 0, 1, 1, 2], [0], [0]>} : vector<2x8x8xf32>, vector<2x8x32xf32>, vector<2x8x32xf32> -> vector<2x8x32xf32>
    "tpu.trace_stop"() : () -> ()
    %144 = vector.shape_cast %143 : vector<2x8x32xf32> to vector<16x32xf32>
    %c0_44 = arith.constant 0 : index
    %c224 = arith.constant 224 : index
    %145 = vector.load %arg6[%c0_44, %c224] : memref<16x256xf32, #tpu.memory_space<vmem>>, vector<16x32xf32>
    tpu.vector_store %arg6[%c0_44, %c224], %144 {strides = array<i32>} : memref<16x256xf32, #tpu.memory_space<vmem>>, vector<16x32xf32>,
    %c0_45 = arith.constant 0 : index
    %c0_46 = arith.constant 0 : index
    %146 = vector.load %arg6[%c0_45, %c0_46] : memref<16x256xf32, #tpu.memory_space<vmem>>, vector<16x256xf32>
    %c0_47 = arith.constant 0 : index
    %c0_48 = arith.constant 0 : index
    %147 = vector.load %arg3[%c0_47, %c0_48] : memref<256x32xf32, #tpu.memory_space<vmem>>, vector<256x32xf32>
    %cst_49 = arith.constant dense<0.000000e+00> : vector<16x32xf32>
    %148 = tpu.matmul %146, %147, %cst_49 {dimension_numbers = #tpu.dot_dimension_numbers<[1], [0], [0], [1], [0, 0, 1, 1], [], []>} : vector<16x256xf32>, vector<256x32xf32>, vector<16x32xf32> -> vector<16x32xf32>
    %c0_50 = arith.constant 0 : index
    %c0_51 = arith.constant 0 : index
    %149 = vector.load %arg4[%c0_50, %c0_51] : memref<1x32xf32, #tpu.memory_space<vmem>>, vector<1x32xf32>
    %150 = vector.broadcast %149 : vector<1x32xf32> to vector<16x32xf32>
    %151 = arith.addf %148, %150 : vector<16x32xf32>
    %152 = vector.shape_cast %151 : vector<16x32xf32> to vector<2x8x32xf32>
    %c0_52 = arith.constant 0 : index
    %c0_53 = arith.constant 0 : index
    %c0_54 = arith.constant 0 : index
    %153 = vector.load %arg5[%c0_52, %c0_53, %c0_54] : memref<2x8x32xf32, #tpu.memory_space<vmem>>, vector<2x8x32xf32>
    tpu.vector_store %arg5[%c0_52, %c0_53, %c0_54], %152 {strides = array<i32>} : memref<2x8x32xf32, #tpu.memory_space<vmem>>, vector<2x8x32xf32>,
    return
  }
  func.func @transform_0(%arg0: i32) -> (i32, i32, i32) {
    %c0_i32 = arith.constant 0 : i32
    %c0_i32_0 = arith.constant 0 : i32
    %c0_i32_1 = arith.constant 0 : i32
    return %arg0, %c0_i32, %c0_i32_0 : i32, i32, i32
  }
  func.func @transform_1(%arg0: i32) -> (i32, i32) {
    %c0_i32 = arith.constant 0 : i32
    %c0_i32_0 = arith.constant 0 : i32
    %c0_i32_1 = arith.constant 0 : i32
    return %c0_i32, %c0_i32_0 : i32, i32
  }
  func.func @transform_2(%arg0: i32) -> (i32, i32) {
    %c0_i32 = arith.constant 0 : i32
    %c0_i32_0 = arith.constant 0 : i32
    %c0_i32_1 = arith.constant 0 : i32
    return %c0_i32, %c0_i32_0 : i32, i32
  }
  func.func @transform_3(%arg0: i32) -> (i32, i32) {
    %c0_i32 = arith.constant 0 : i32
    %c0_i32_0 = arith.constant 0 : i32
    %c0_i32_1 = arith.constant 0 : i32
    return %c0_i32, %c0_i32_0 : i32, i32
  }
  func.func @transform_4(%arg0: i32) -> (i32, i32, i32) {
    %c0_i32 = arith.constant 0 : i32
    %c0_i32_0 = arith.constant 0 : i32
    %c0_i32_1 = arith.constant 0 : i32
    return %arg0, %c0_i32, %c0_i32_0 : i32, i32, i32
  }
}

</mosaic_0001>

<bundles_post_ra>
// kernel: tpu_custom_call.1
= control target key start
LH: loop header
LB: loop body
LE: loop exit
PB: predicated region body
PF: predicated region fallthrough
CT: control target
= control target key end

     0   :  { %v3579_v7 = vmov 0.0   ;;  %vm44_vm0 = vcmask 261120   ;;  %s4151_s0 = inlined_call_operand.vmem [shape: f32[2,8,32], index: 0, kind: input, shape index: {}]   ;;  %s4152_s1 = inlined_call_operand.vmem [shape: f32[32,768], index: 1, kind: input, shape index: {}]   ;;  %s4153_s2 = inlined_call_operand.vmem [shape: f32[256,32], index: 2, kind: input, shape index: {}]   ;;  %s4154_s3 = inlined_call_operand.vmem [shape: f32[1,32], index: 3, kind: input, shape index: {}]   ;;  %s4155_s4 = inlined_call_operand.hbm [shape: f32[2,8,32], index: 4, kind: output, shape index: {}]  }
   0x1   :  { %v21_v0 = vld [vmem:[%s4152_s1 + $0x8] sm:$0xff]  ;;  %v27_v1 = vld [vmem:[%s4152_s1 + $0x38] sm:$0xff]  ;;  %v20_v2 = vld [vmem:[%s4152_s1] sm:$0xff]  ;;  %115 = vmatprep.mubr.f32.mxu1 %v3579_v7  ;;  %3277 = vmatprep.subr.mxu0 %v3579_v7 }
   0x2   :  { %v3427_v3 = vpack.c.bf16 %v27_v1, %v21_v0  ;;  %v26_v4 = vld [vmem:[%s4152_s1 + $0x30] sm:$0xff]  ;;  %v33_v5 = vld [vmem:[%s4152_s1 + $0x68] sm:$0xff]  ;;  %v39_v6 = vld [vmem:[%s4152_s1 + $0x98] sm:$0xff] }
   0x3   :  { %v3429_v8 = vpack.c.bf16 %v26_v4, %v20_v2  ;;  %v3431_v9 = vpack.c.bf16 %v39_v6, %v33_v5  ;;  %v32_v10 = vld [vmem:[%s4152_s1 + $0x60] sm:$0xff]  ;;  %v38_v11 = vld [vmem:[%s4152_s1 + $0x90] sm:$0xff]  ;;  %v23_v12 = vld [vmem:[%s4152_s1 + $0x18] sm:$0xff] }
   0x4   :  { %3428 = vmatprep.subr.bf16.mxu1 %v3427_v3  ;;  %v29_v13 = vld [vmem:[%s4152_s1 + $0x48] sm:$0xff]  ;;  %v3433_v14 = vpack.c.bf16 %v38_v11, %v32_v10  ;;  %v22_v16 = vld [vmem:[%s4152_s1 + $0x10] sm:$0xff]  ;;  %v28_v17 = vld [vmem:[%s4152_s1 + $0x40] sm:$0xff] }
   0x5   :  { %3430 = vmatpush1.bf16.msra.mxu1 %v3429_v8  ;;  %v3435_v15 = vpack.c.bf16 %v29_v13, %v23_v12  ;;  %v35_v18 = vld [vmem:[%s4152_s1 + $0x78] sm:$0xff]  ;;  %v41_v19 = vld [vmem:[%s4152_s1 + $0xa8] sm:$0xff]  ;;  %v18_v20 = vld [vmem:[%s4151_s0] sm:$0xff]  ;;  %v3437_v21 = vpack.c.bf16 %v28_v17, %v22_v16 }
   0x6   :  { %3432 = vmatprep.subr.bf16.mxu1 %v3431_v9 }
   0x9   :  { %3434 = vmatpush1.bf16.msra.mxu1 %v3433_v14 }
   0xa   :  { %9 = vsyncpa [#allocation4], 0  ;;  %3436 = vmatprep.subr.bf16.mxu1 %v3435_v15  ;;  %v3439_v22 = vpack.c.bf16 %v41_v19, %v35_v18  ;;  %v34_v23 = vld [vmem:[%s4152_s1 + $0x70] sm:$0xff]  ;;  %v40_v24 = vld [vmem:[%s4152_s1 + $0xa0] sm:$0xff]  ;;  %vm3580_vm1 = vmmov 0   ;;  %vm434_vm2 = vcmask 64512  }
   0xb   :  { %v25_v25 = vld [vmem:[%s4152_s1 + $0x28] sm:$0xff]  ;;  %v31_v26 = vld [vmem:[%s4152_s1 + $0x58] sm:$0xff]  ;;  %v3441_v28 = vpack.c.bf16 %v40_v24, %v34_v23  ;;  %v24_v30 = vld [vmem:[%s4152_s1 + $0x20] sm:$0xff]  ;;  %3279 = vmatprep.mubr.msk.f32.mxu0 %vm3580_vm1, %v3579_v7  ;;  %s3582_s14 = smov 64   ;;  %s3583_s15 = smov 32   ;;  %vm945_vm3 = vcmask 523520  }
   0xc   :  { %3110 = vmatmul.mubr.msk.f32.vlgmr.msra.gmra.mrb[0].mxu1 %vm44_vm0, %v18_v20  ;;  %v19_v27 = vld [vmem:[%s4151_s0 + $0x8] sm:$0xff]  ;;  %v3443_v29 = vpack.c.bf16 %v31_v26, %v25_v25  ;;  %v30_v31 = vld [vmem:[%s4152_s1 + $0x50] sm:$0xff]  ;;  %v43_v33 = vld [vmem:[%s4152_s1 + $0xb8] sm:$0xff]  ;;  %vm1286_vm4 = vcmask 785920   ;;  %vm1627_vm5 = vcmask 1048320  }
   0xd   :  { %3438 = vmatpush1.bf16.msra.mxu1 %v3437_v21  ;;  %121 = vmatprep.mubr.f32.mxu1 %v3579_v7  ;;  %v37_v32 = vld [vmem:[%s4152_s1 + $0x88] sm:$0xff]  ;;  %v3445_v34 = vpack.c.bf16 %v30_v31, %v24_v30  ;;  %v36_v36 = vld [vmem:[%s4152_s1 + $0x80] sm:$0xff]  ;;  %v42_v37 = vld [vmem:[%s4152_s1 + $0xb0] sm:$0xff]  ;;  %s3581_s1 = smov 96  }
   0xe   :  { %3440 = vmatprep.subr.bf16.mxu1 %v3439_v22  ;;  %v3447_v35 = vpack.c.bf16 %v43_v33, %v37_v32  ;;  %v3449_v38 = vpack.c.bf16 %v42_v37, %v36_v36 }
  0x10   :  { %3111 = vmatmul.mubr.msk.f32.gmra.mrb[2].mxu1 %vm44_vm0, %v19_v27 }
  0x11   :  { %3442 = vmatpush1.bf16.msra.mxu1 %v3441_v28  ;;  %192 = vmatprep.mubr.f32.mxu1 %v3579_v7 }
  0x12   :  { %3444 = vmatprep.subr.bf16.mxu1 %v3443_v29 }
  0x14   :  { %3112 = vmatmul.mubr.msk.f32.vlgmr.msra.gmra.mrb[4].mxu1 %vm44_vm0, %v18_v20 }
  0x15   :  { %198 = vmatprep.mubr.f32.mxu1 %v3579_v7  ;;  %3446 = vmatpush1.bf16.msra.mxu1 %v3445_v34 }
  0x16   :  { %3448 = vmatprep.subr.bf16.mxu1 %v3447_v35 }
  0x18   :  { %3113 = vmatmul.mubr.msk.f32.gmra.mrb[6].mxu1 %vm44_vm0, %v19_v27 }
  0x19   :  { %269 = vmatprep.mubr.f32.mxu1 %v3579_v7  ;;  %3450 = vmatpush1.bf16.msra.mxu1 %v3449_v38 }
  0x1a   :  { %3267 = vmatprep.subr.mxu1 %v3579_v7 }
  0x1c   :  { %3114 = vmatmul.mubr.msk.f32.vlgmr.msra.gmra.mrb[8].mxu1 %vm44_vm0, %v18_v20 }
  0x1d   :  { %275 = vmatprep.mubr.f32.mxu1 %v3579_v7 }
  0x20   :  { %3115 = vmatmul.mubr.msk.f32.gmra.mrb[10].mxu1 %vm44_vm0, %v19_v27 }
  0x21   :  { %3269 = vmatprep.mubr.msk.f32.mxu1 %vm3580_vm1, %v3579_v7 }
  0xdf   :  { %v3708_v39 = vpop.f32.mrb[0].mxu1 }
  0xe0   :  { %605 = vrot.lane.b32.xlu1 %v3708_v39, %s3581_s1  ;;  %v3712_v40 = vpop.f32.mrb[1].mxu1 }
  0xe3   :  { %v3714_v41 = vpop.f32.mrb[2].mxu1 }
  0xe4   :  { %v3716_v42 = vpop.f32.mrb[3].mxu1 }
  0xe7   :  { %v3718_v43 = vpop.f32.mrb[4].mxu1 }
  0xe8   :  { %v3720_v44 = vpop.f32.mrb[5].mxu1  ;;  %3268 = vmatpush3.xpose.msk.msra.mxu1 %vm44_vm0, %v3718_v43 }
  0xe9   :  { %3272 = vmatprep.subr.mxu1 %v3579_v7 }
  0xeb   :  { %v3725_v45 = vpop.f32.mrb[6].mxu1  ;;  %3270 = vmatmul.mubr.msk.f32.vlgmr.msra.gmra.mrb[12].mxu1 %vm44_vm0, %v3708_v39 }
  0xec   :  { %3273 = vmatpush3.xpose.msk.msra.mxu1 %vm44_vm0, %v3725_v45  ;;  %3274 = vmatprep.mubr.msk.f32.mxu1 %vm3580_vm1, %v3579_v7  ;;  %v3733_v46 = vpop.f32.mrb[7].mxu1 }
  0xed   :  { %685 = vrot.lane.b32.xlu1 %v3725_v45, %s3581_s1  ;;  %3282 = vmatprep.subr.mxu1 %v3579_v7 }
  0xef   :  { %3275 = vmatmul.mubr.msk.f32.vlgmr.msra.gmra.mrb[14].mxu1 %vm44_vm0, %v3714_v41  ;;  %v3742_v47 = vpop.f32.mrb[8].mxu1 }
  0xf0   :  { %3284 = vmatprep.mubr.msk.f32.mxu1 %vm3580_vm1, %v3579_v7  ;;  %v3744_v48 = vpop.f32.mrb[9].mxu1  ;;  %3278 = vmatpush3.msra.mxu0 %v3742_v47 }
  0xf1   :  { %3287 = vmatprep.subr.mxu0 %v3579_v7 }
  0xf3   :  { %v3748_v49 = vpop.f32.mrb[10].mxu1 }
  0xf4   :  { %v3750_v50 = vpop.f32.mrb[11].mxu1  ;;  %3283 = vmatpush3.msra.mxu1 %v3748_v49 }
  0xf5   :  { %3292 = vmatprep.subr.mxu1 %v3579_v7 }
 0x152   :  { %v606_v3 = vpop.permute.xlu1 %605 }
 0x15f   :  { %v686_v4 = vpop.permute.xlu1 %685 }
 0x1be   :  { %v354_v51 = vpop.f32.mrb[12].mxu1 }
 0x1bf   :  { %v3271_v52 = vpop.f32.mrb[13].mxu1  ;;  %v435_v53 = vsel %vm434_vm2, %v354_v51, -inf }
 0x1c0   :  { %436 = vmax.xlane.f32.xlu0 %v435_v53 }
 0x1c2   :  { %v430_v54 = vpop.f32.mrb[14].mxu1 }
 0x1c3   :  { %v3276_v55 = vpop.f32.mrb[15].mxu1  ;;  %v438_v56 = vsel %vm434_vm2, %v430_v54, -inf }
 0x1c4   :  { %439 = vmax.xlane.f32.xlu0 %v438_v56 }
 0x1da   :  { %607 = vrot.lane.b32.xlu0 %v3718_v43, %s3581_s1 }
 0x24d   :  { %v437_v57 = vpop.xlane.xlu0 %436 }
 0x24e   :  { %v441_v58 = vsub.f32 %v354_v51, %v437_v57 }
 0x250   :  { %v443_v59 = vmul.f32 1.442695, %v441_v58 }
 0x251   :  { %v440_v60 = vpop.xlane.xlu0 %439 }
 0x252   :  { %3491 = vpow2.f32 %v443_v59  ;;  %v442_v61 = vsub.f32 %v430_v54, %v440_v60 }
 0x254   :  { %v445_v62 = vmul.f32 1.442695, %v442_v61 }
 0x255   :  { %v608_v10 = vpop.permute.xlu0 %607 }
 0x256   :  { %3493 = vpow2.f32 %v445_v62 }
 0x25c   :  { %v3492_v63 = vpop.eup %3491 }
 0x25d   :  { %v447_v0 = vsel %vm434_vm2, %v3492_v63, 0.0 }
 0x25e   :  { %448 = vadd.xlane.f32.xlu1 %v447_v0 }
 0x260   :  { %v3494_v1 = vpop.eup %3493 }
 0x261   :  { %v450_v2 = vsel %vm434_vm2, %v3494_v1, 0.0 }
 0x262   :  { %451 = vadd.xlane.f32.xlu1 %v450_v2 }
 0x273   :  { %683 = vrot.lane.b32.xlu1 %v3714_v41, %s3581_s1 }
 0x2eb   :  { %v449_v5 = vpop.xlane.xlu1 %448 }
 0x2ec   :  { %3495 = vrcp.f32 %v449_v5 }
 0x2ef   :  { %v452_v6 = vpop.xlane.xlu1 %451 }
 0x2f0   :  { %3497 = vrcp.f32 %v452_v6 }
 0x2f3   :  { %v684_v13 = vpop.permute.xlu1 %683 }
 0x2f6   :  { %v3496_v8 = vpop.eup %3495 }
 0x2f7   :  { %v455_v9 = vmul.f32 %v3496_v8, %v3492_v63 }
 0x2f9   :  { %3280 = vmatmul.mubr.msk.f32.vlgmr.msra.gmra.mrb[0].mxu0 %vm434_vm2, %v455_v9 }
 0x2fa   :  { %v3498_v11 = vpop.eup %3497  ;;  %3288 = vmatpush3.xpose.msk.msra.mxu0 %vm44_vm0, %v608_v10  ;;  %3289 = vmatprep.mubr.msk.f32.mxu0 %vm3580_vm1, %v3579_v7 }
 0x2fb   :  { %v456_v12 = vmul.f32 %v3498_v11, %v3494_v1  ;;  %3297 = vmatprep.subr.mxu0 %v3579_v7 }
 0x2fd   :  { %3285 = vmatmul.mubr.msk.f32.vlgmr.msra.gmra.mrb[16].mxu1 %vm434_vm2, %v456_v12  ;;  %3290 = vmatmul.mubr.msk.f32.vlgmr.msra.gmra.mrb[2].mxu0 %vm44_vm0, %v606_v3 }
 0x2fe   :  { %3293 = vmatpush3.xpose.msk.msra.mxu1 %vm44_vm0, %v686_v4  ;;  %3294 = vmatprep.mubr.msk.f32.mxu1 %vm3580_vm1, %v3579_v7 }
 0x2ff   :  { %3302 = vmatprep.subr.mxu1 %v3579_v7  ;;  %3299 = vmatprep.mubr.msk.f32.mxu0 %vm3580_vm1, %v3579_v7 }
 0x301   :  { %3295 = vmatmul.mubr.msk.f32.vlgmr.msra.gmra.mrb[18].mxu1 %vm44_vm0, %v684_v13 }
 0x302   :  { %3304 = vmatprep.mubr.msk.f32.mxu1 %vm3580_vm1, %v3579_v7 }
 0x3cc   :  { %v526_v14 = vpop.f32.mrb[0].mxu0 }
 0x3cd   :  { %603 = vst.msk [vmem:[#allocation2] sm:$0xff] %vm44_vm0, %v526_v14  ;;  %v3281_v15 = vpop.f32.mrb[1].mxu0 }
 0x3d0   :  { %v599_v16 = vpop.f32.mrb[16].mxu1  ;;  %v679_v17 = vpop.f32.mrb[2].mxu0 }
 0x3d1   :  { %604 = vst.msk [vmem:[#allocation2 + $0x10] sm:$0xff] %vm44_vm0, %v599_v16  ;;  %v3286_v18 = vpop.f32.mrb[17].mxu1  ;;  %v3291_v19 = vpop.f32.mrb[3].mxu0  ;;  %v761_v20 = vsel %vm434_vm2, %v679_v17, -inf }
 0x3d2   :  { %762 = vmax.xlane.f32.xlu0 %v761_v20 }
 0x3d4   :  { %v757_v21 = vpop.f32.mrb[18].mxu1 }
 0x3d5   :  { %v3296_v22 = vpop.f32.mrb[19].mxu1  ;;  %v764_v23 = vsel %vm434_vm2, %v757_v21, -inf }
 0x3d6   :  { %765 = vmax.xlane.f32.xlu1 %v764_v23 }
 0x3e7   :  { %861 = vrot.lane.b32.xlu1 %v3748_v49, %s3581_s1 }
 0x3e8   :  { %784 = vrot.lane.b32.xlu0 %v3742_v47, %s3581_s1 }
 0x3eb   :  { %950 = vrot.lane.b32.xlu1 %v3718_v43, %s3582_s14 }
 0x3ef   :  { %948 = vrot.lane.b32.xlu1 %v3708_v39, %s3582_s14 }
 0x3f3   :  { %1026 = vrot.lane.b32.xlu1 %v3714_v41, %s3582_s14 }
 0x45f   :  { %v763_v24 = vpop.xlane.xlu0 %762 }
 0x460   :  { %v767_v25 = vsub.f32 %v679_v17, %v763_v24 }
 0x462   :  { %v769_v26 = vmul.f32 1.442695, %v767_v25 }
 0x463   :  { %v785_v27 = vpop.permute.xlu0 %784  ;;  %v766_v28 = vpop.xlane.xlu1 %765 }
 0x464   :  { %3499 = vpow2.f32 %v769_v26  ;;  %v768_v29 = vsub.f32 %v757_v21, %v766_v28  ;;  %3298 = vmatpush3.msra.mxu0 %v785_v27 }
 0x465   :  { %3307 = vmatprep.subr.mxu0 %v3579_v7 }
 0x466   :  { %v771_v30 = vmul.f32 1.442695, %v768_v29 }
 0x467   :  { %v862_v31 = vpop.permute.xlu1 %861 }
 0x468   :  { %3501 = vpow2.f32 %v771_v30  ;;  %3303 = vmatpush3.msra.mxu1 %v862_v31 }
 0x469   :  { %3312 = vmatprep.subr.mxu1 %v3579_v7 }
 0x46b   :  { %v951_v38 = vpop.permute.xlu1 %950 }
 0x46e   :  { %v3500_v32 = vpop.eup %3499 }
 0x46f   :  { %v773_v33 = vsel %vm434_vm2, %v3500_v32, 0.0  ;;  %v949_v54 = vpop.permute.xlu1 %948 }
 0x470   :  { %774 = vadd.xlane.f32.xlu0 %v773_v33 }
 0x472   :  { %v3502_v34 = vpop.eup %3501 }
 0x473   :  { %v776_v35 = vsel %vm434_vm2, %v3502_v34, 0.0  ;;  %v1027_v57 = vpop.permute.xlu1 %1026 }
 0x474   :  { %777 = vadd.xlane.f32.xlu0 %v776_v35 }
 0x48a   :  { %1028 = vrot.lane.b32.xlu0 %v3725_v45, %s3582_s14 }
 0x4fd   :  { %v775_v36 = vpop.xlane.xlu0 %774 }
 0x4fe   :  { %3503 = vrcp.f32 %v775_v36 }
 0x501   :  { %v778_v37 = vpop.xlane.xlu0 %777 }
 0x502   :  { %3505 = vrcp.f32 %v778_v37 }
 0x505   :  { %v1029_v56 = vpop.permute.xlu0 %1028 }
 0x508   :  { %v3504_v51 = vpop.eup %3503 }
 0x509   :  { %v781_v52 = vmul.f32 %v3504_v51, %v3500_v32 }
 0x50b   :  { %3300 = vmatmul.mubr.msk.f32.vlgmr.msra.gmra.mrb[4].mxu0 %vm434_vm2, %v781_v52 }
 0x50c   :  { %v3506_v53 = vpop.eup %3505  ;;  %3308 = vmatpush3.xpose.msk.msra.mxu0 %vm44_vm0, %v951_v38  ;;  %3309 = vmatprep.mubr.msk.f32.mxu0 %vm3580_vm1, %v3579_v7 }
 0x50d   :  { %v782_v55 = vmul.f32 %v3506_v53, %v3502_v34  ;;  %3317 = vmatprep.subr.mxu0 %v3579_v7 }
 0x50f   :  { %3305 = vmatmul.mubr.msk.f32.vlgmr.msra.gmra.mrb[20].mxu1 %vm434_vm2, %v782_v55  ;;  %3310 = vmatmul.mubr.msk.f32.vlgmr.msra.gmra.mrb[6].mxu0 %vm44_vm0, %v949_v54 }
 0x510   :  { %3313 = vmatpush3.xpose.msk.msra.mxu1 %vm44_vm0, %v1029_v56  ;;  %3314 = vmatprep.mubr.msk.f32.mxu1 %vm3580_vm1, %v3579_v7 }
 0x511   :  { %3322 = vmatprep.subr.mxu1 %v3579_v7  ;;  %3319 = vmatprep.mubr.msk.f32.mxu0 %vm3580_vm1, %v3579_v7 }
 0x513   :  { %3315 = vmatmul.mubr.msk.f32.vlgmr.msra.gmra.mrb[22].mxu1 %vm44_vm0, %v1027_v57 }
 0x514   :  { %3324 = vmatprep.mubr.msk.f32.mxu1 %vm3580_vm1, %v3579_v7 }
 0x5de   :  { %v3814_v58 = vpop.f32.mrb[4].mxu0 }
 0x5df   :  { %v3301_v59 = vpop.f32.mrb[5].mxu0 }
 0x5e2   :  { %v3816_v60 = vpop.f32.mrb[20].mxu1  ;;  %v1022_v61 = vpop.f32.mrb[6].mxu0 }
 0x5e3   :  { %v3306_v62 = vpop.f32.mrb[21].mxu1  ;;  %v3311_v63 = vpop.f32.mrb[7].mxu0  ;;  %v1104_v0 = vsel %vm434_vm2, %v1022_v61, -inf }
 0x5e4   :  { %1105 = vmax.xlane.f32.xlu0 %v1104_v0 }
 0x5e6   :  { %v1100_v1 = vpop.f32.mrb[22].mxu1 }
 0x5e7   :  { %v3316_v2 = vpop.f32.mrb[23].mxu1  ;;  %v1107_v3 = vsel %vm434_vm2, %v1100_v1, -inf }
 0x5e8   :  { %1108 = vmax.xlane.f32.xlu1 %v1107_v3 }
 0x5f9   :  { %1202 = vrot.lane.b32.xlu1 %v3748_v49, %s3582_s14 }
 0x5fa   :  { %1126 = vrot.lane.b32.xlu0 %v3742_v47, %s3582_s14 }
 0x5fd   :  { %1291 = vrot.lane.b32.xlu1 %v3718_v43, %s3583_s15 }
 0x601   :  { %1289 = vrot.lane.b32.xlu1 %v3708_v39, %s3583_s15 }
 0x605   :  { %1367 = vrot.lane.b32.xlu1 %v3714_v41, %s3583_s15 }
 0x671   :  { %v1106_v4 = vpop.xlane.xlu0 %1105 }
 0x672   :  { %v1110_v5 = vsub.f32 %v1022_v61, %v1106_v4 }
 0x674   :  { %v1112_v6 = vmul.f32 1.442695, %v1110_v5 }
 0x675   :  { %v1127_v8 = vpop.permute.xlu0 %1126  ;;  %v1109_v9 = vpop.xlane.xlu1 %1108 }
 0x676   :  { %3507 = vpow2.f32 %v1112_v6  ;;  %v1111_v10 = vsub.f32 %v1100_v1, %v1109_v9  ;;  %3318 = vmatpush3.msra.mxu0 %v1127_v8 }
 0x677   :  { %3327 = vmatprep.subr.mxu0 %v3579_v7 }
 0x678   :  { %v1114_v11 = vmul.f32 1.442695, %v1111_v10 }
 0x679   :  { %v1203_v12 = vpop.permute.xlu1 %1202 }
 0x67a   :  { %3509 = vpow2.f32 %v1114_v11  ;;  %3323 = vmatpush3.msra.mxu1 %v1203_v12 }
 0x67b   :  { %3332 = vmatprep.subr.mxu1 %v3579_v7 }
 0x67d   :  { %v1292_v16 = vpop.permute.xlu1 %1291 }
 0x680   :  { %v3508_v39 = vpop.eup %3507 }
 0x681   :  { %v1116_v43 = vsel %vm434_vm2, %v3508_v39, 0.0  ;;  %v1290_v20 = vpop.permute.xlu1 %1289 }
 0x682   :  { %1117 = vadd.xlane.f32.xlu0 %v1116_v43 }
 0x684   :  { %v3510_v41 = vpop.eup %3509 }
 0x685   :  { %v1119_v13 = vsel %vm434_vm2, %v3510_v41, 0.0  ;;  %v1368_v22 = vpop.permute.xlu1 %1367 }
 0x686   :  { %1120 = vadd.xlane.f32.xlu0 %v1119_v13 }
 0x69c   :  { %1369 = vrot.lane.b32.xlu0 %v3725_v45, %s3583_s15 }
 0x70f   :  { %v1118_v14 = vpop.xlane.xlu0 %1117 }
 0x710   :  { %3511 = vrcp.f32 %v1118_v14 }
 0x713   :  { %v1121_v15 = vpop.xlane.xlu0 %1120 }
 0x714   :  { %3513 = vrcp.f32 %v1121_v15 }
 0x717   :  { %v1370_v45 = vpop.permute.xlu0 %1369 }
 0x71a   :  { %v3512_v17 = vpop.eup %3511 }
 0x71b   :  { %v1124_v18 = vmul.f32 %v3512_v17, %v3508_v39 }
 0x71d   :  { %3320 = vmatmul.mubr.msk.f32.vlgmr.msra.gmra.mrb[8].mxu0 %vm434_vm2, %v1124_v18 }
 0x71e   :  { %v3514_v19 = vpop.eup %3513  ;;  %3328 = vmatpush3.xpose.msk.msra.mxu0 %vm44_vm0, %v1292_v16  ;;  %3329 = vmatprep.mubr.msk.f32.mxu0 %vm3580_vm1, %v3579_v7 }
 0x71f   :  { %v1125_v21 = vmul.f32 %v3514_v19, %v3510_v41  ;;  %3337 = vmatprep.subr.mxu0 %v3579_v7 }
 0x721   :  { %3325 = vmatmul.mubr.msk.f32.vlgmr.msra.gmra.mrb[24].mxu1 %vm434_vm2, %v1125_v21  ;;  %3330 = vmatmul.mubr.msk.f32.vlgmr.msra.gmra.mrb[10].mxu0 %vm44_vm0, %v1290_v20 }
 0x722   :  { %3333 = vmatpush3.xpose.msk.msra.mxu1 %vm44_vm0, %v1370_v45  ;;  %3334 = vmatprep.mubr.msk.f32.mxu1 %vm3580_vm1, %v3579_v7 }
 0x723   :  { %3342 = vmatprep.subr.mxu1 %v3579_v7  ;;  %3339 = vmatprep.mubr.msk.f32.mxu0 %vm3580_vm1, %v3579_v7 }
 0x725   :  { %3335 = vmatmul.mubr.msk.f32.vlgmr.msra.gmra.mrb[26].mxu1 %vm44_vm0, %v1368_v22 }
 0x726   :  { %3344 = vmatprep.mubr.msk.f32.mxu1 %vm3580_vm1, %v3579_v7 }
 0x7f0   :  { %v3852_v23 = vpop.f32.mrb[8].mxu0 }
 0x7f1   :  { %v3321_v24 = vpop.f32.mrb[9].mxu0 }
 0x7f4   :  { %v3854_v25 = vpop.f32.mrb[24].mxu1  ;;  %v1363_v26 = vpop.f32.mrb[10].mxu0 }
 0x7f5   :  { %v3326_v27 = vpop.f32.mrb[25].mxu1  ;;  %v3331_v28 = vpop.f32.mrb[11].mxu0  ;;  %v1445_v29 = vsel %vm434_vm2, %v1363_v26, -inf }
 0x7f6   :  { %1446 = vmax.xlane.f32.xlu0 %v1445_v29 }
 0x7f8   :  { %v1441_v30 = vpop.f32.mrb[26].mxu1 }
 0x7f9   :  { %v3336_v31 = vpop.f32.mrb[27].mxu1  ;;  %v1448_v32 = vsel %vm434_vm2, %v1441_v30, -inf }
 0x7fa   :  { %1449 = vmax.xlane.f32.xlu1 %v1448_v32 }
 0x80b   :  { %1543 = vrot.lane.b32.xlu1 %v3748_v49, %s3583_s15 }
 0x883   :  { %v1447_v33 = vpop.xlane.xlu0 %1446 }
 0x884   :  { %v1451_v34 = vsub.f32 %v1363_v26, %v1447_v33 }
 0x886   :  { %v1453_v35 = vmul.f32 1.442695, %v1451_v34 }
 0x887   :  { %v1450_v36 = vpop.xlane.xlu1 %1449 }
 0x888   :  { %3515 = vpow2.f32 %v1453_v35  ;;  %v1452_v37 = vsub.f32 %v1441_v30, %v1450_v36 }
 0x88a   :  { %v1455_v38 = vmul.f32 1.442695, %v1452_v37 }
 0x88b   :  { %v1544_v51 = vpop.permute.xlu1 %1543 }
 0x88c   :  { %3517 = vpow2.f32 %v1455_v38  ;;  %3343 = vmatpush3.msra.mxu1 %v1544_v51 }
 0x88d   :  { %3352 = vmatprep.subr.mxu1 %v3579_v7 }
 0x892   :  { %v3516_v52 = vpop.eup %3515 }
 0x893   :  { %v1457_v53 = vsel %vm434_vm2, %v3516_v52, 0.0 }
 0x894   :  { %1458 = vadd.xlane.f32.xlu0 %v1457_v53 }
 0x896   :  { %v3518_v54 = vpop.eup %3517 }
 0x897   :  { %v1460_v55 = vsel %vm434_vm2, %v3518_v54, 0.0 }
 0x898   :  { %1461 = vadd.xlane.f32.xlu0 %v1460_v55 }
 0x8ae   :  { %1467 = vrot.lane.b32.xlu0 %v3742_v47, %s3583_s15 }
 0x921   :  { %v1459_v49 = vpop.xlane.xlu0 %1458 }
 0x922   :  { %3519 = vrcp.f32 %v1459_v49 }
 0x925   :  { %v1462_v56 = vpop.xlane.xlu0 %1461 }
 0x926   :  { %3521 = vrcp.f32 %v1462_v56 }
 0x929   :  { %v1468_v57 = vpop.permute.xlu0 %1467 }
 0x92a   :  { %3338 = vmatpush3.msra.mxu0 %v1468_v57 }
 0x92b   :  { %3347 = vmatprep.subr.mxu0 %v3579_v7 }
 0x92c   :  { %v3520_v59 = vpop.eup %3519 }
 0x92d   :  { %v1465_v61 = vmul.f32 %v3520_v59, %v3516_v52 }
 0x92f   :  { %3340 = vmatmul.mubr.msk.f32.vlgmr.msra.gmra.mrb[12].mxu0 %vm434_vm2, %v1465_v61 }
 0x930   :  { %v3522_v62 = vpop.eup %3521  ;;  %3349 = vmatprep.mubr.msk.f32.mxu0 %vm3580_vm1, %v3579_v7 }
 0x931   :  { %v1466_v63 = vmul.f32 %v3522_v62, %v3518_v54  ;;  %3348 = vmatpush3.xpose.msk.msra.mxu0 %vm44_vm0, %v3720_v44 }
 0x932   :  { %3357 = vmatprep.subr.mxu0 %v3579_v7 }
 0x933   :  { %3345 = vmatmul.mubr.msk.f32.vlgmr.msra.gmra.mrb[28].mxu1 %vm434_vm2, %v1466_v63 }
 0x934   :  { %3353 = vmatpush3.xpose.msk.msra.mxu1 %vm44_vm0, %v3733_v46  ;;  %3350 = vmatmul.mubr.msk.f32.vlgmr.msra.gmra.mrb[14].mxu0 %vm44_vm0, %v3712_v40 }
 0x935   :  { %3358 = vmatpush3.msra.mxu0 %v3744_v48  ;;  %3354 = vmatprep.mubr.msk.f32.mxu1 %vm3580_vm1, %v3579_v7 }
 0x936   :  { %3362 = vmatprep.subr.mxu1 %v3579_v7  ;;  %3359 = vmatprep.mubr.msk.f32.mxu0 %vm3580_vm1, %v3579_v7 }
 0x937   :  { %3355 = vmatmul.mubr.msk.f32.vlgmr.msra.gmra.mrb[30].mxu1 %vm44_vm0, %v3716_v42  ;;  %3367 = vmatprep.subr.mxu0 %v3579_v7 }
 0x938   :  { %3363 = vmatpush3.msra.mxu1 %v3750_v50  ;;  %3364 = vmatprep.mubr.msk.f32.mxu1 %vm3580_vm1, %v3579_v7 }
 0x939   :  { %3372 = vmatprep.subr.mxu1 %v3579_v7 }
 0xa02   :  { %v3890_v47 = vpop.f32.mrb[12].mxu0 }
 0xa03   :  { %v3341_v0 = vpop.f32.mrb[13].mxu0 }
 0xa06   :  { %v3892_v1 = vpop.f32.mrb[28].mxu1 }
 0xa07   :  { %v3346_v2 = vpop.f32.mrb[29].mxu1  ;;  %v1702_v3 = vpop.f32.mrb[14].mxu0 }
 0xa08   :  { %v3351_v4 = vpop.f32.mrb[15].mxu0  ;;  %v1782_v5 = vsel %vm434_vm2, %v1702_v3, -inf }
 0xa09   :  { %1783 = vmax.xlane.f32.xlu1 %v1782_v5 }
 0xa0a   :  { %v1778_v6 = vpop.f32.mrb[30].mxu1 }
 0xa0b   :  { %v3356_v8 = vpop.f32.mrb[31].mxu1  ;;  %v1785_v9 = vsel %vm434_vm2, %v1778_v6, -inf }
 0xa0c   :  { %1786 = vmax.xlane.f32.xlu0 %v1785_v9 }
 0xa1a   :  { %1952 = vrot.lane.b32.xlu1 %v3712_v40, %s3581_s1 }
 0xa1e   :  { %2032 = vrot.lane.b32.xlu1 %v3733_v46, %s3581_s1 }
 0xa96   :  { %v1784_v10 = vpop.xlane.xlu1 %1783 }
 0xa97   :  { %v1788_v11 = vsub.f32 %v1702_v3, %v1784_v10 }
 0xa99   :  { %v1790_v12 = vmul.f32 1.442695, %v1788_v11  ;;  %v1787_v39 = vpop.xlane.xlu0 %1786 }
 0xa9a   :  { %v1789_v43 = vsub.f32 %v1778_v6, %v1787_v39  ;;  %v1953_v17 = vpop.permute.xlu1 %1952 }
 0xa9b   :  { %3523 = vpow2.f32 %v1790_v12 }
 0xa9c   :  { %v1792_v41 = vmul.f32 1.442695, %v1789_v43 }
 0xa9e   :  { %3525 = vpow2.f32 %v1792_v41  ;;  %v2033_v18 = vpop.permute.xlu1 %2032 }
 0xaa5   :  { %v3524_v13 = vpop.eup %3523 }
 0xaa6   :  { %v1794_v14 = vsel %vm434_vm2, %v3524_v13, 0.0 }
 0xaa7   :  { %1795 = vadd.xlane.f32.xlu0 %v1794_v14 }
 0xaa8   :  { %v3526_v15 = vpop.eup %3525 }
 0xaa9   :  { %v1797_v16 = vsel %vm434_vm2, %v3526_v15, 0.0 }
 0xaaa   :  { %1798 = vadd.xlane.f32.xlu1 %v1797_v16 }
 0xabb   :  { %2030 = vrot.lane.b32.xlu1 %v3716_v42, %s3581_s1 }
 0xabd   :  { %1954 = vrot.lane.b32.xlu0 %v3720_v44, %s3581_s1 }
 0xb34   :  { %v1796_v19 = vpop.xlane.xlu0 %1795 }
 0xb35   :  { %3527 = vrcp.f32 %v1796_v19 }
 0xb37   :  { %v1799_v20 = vpop.xlane.xlu1 %1798 }
 0xb38   :  { %3529 = vrcp.f32 %v1799_v20  ;;  %v1955_v24 = vpop.permute.xlu0 %1954 }
 0xb3b   :  { %v2031_v27 = vpop.permute.xlu1 %2030 }
 0xb3f   :  { %v3528_v21 = vpop.eup %3527 }
 0xb40   :  { %v1802_v45 = vmul.f32 %v3528_v21, %v3524_v13 }
 0xb42   :  { %v3530_v22 = vpop.eup %3529  ;;  %3360 = vmatmul.mubr.msk.f32.vlgmr.msra.gmra.mrb[16].mxu0 %vm434_vm2, %v1802_v45 }
 0xb43   :  { %v1803_v26 = vmul.f32 %v3530_v22, %v3526_v15  ;;  %3368 = vmatpush3.xpose.msk.msra.mxu0 %vm44_vm0, %v1955_v24  ;;  %3369 = vmatprep.mubr.msk.f32.mxu0 %vm3580_vm1, %v3579_v7 }
 0xb44   :  { %3377 = vmatprep.subr.mxu0 %v3579_v7 }
 0xb45   :  { %3365 = vmatmul.mubr.msk.f32.vlgmr.msra.gmra.mrb[32].mxu1 %vm434_vm2, %v1803_v26 }
 0xb46   :  { %3373 = vmatpush3.xpose.msk.msra.mxu1 %vm44_vm0, %v2033_v18  ;;  %3370 = vmatmul.mubr.msk.f32.vlgmr.msra.gmra.mrb[18].mxu0 %vm44_vm0, %v1953_v17 }
 0xb47   :  { %3374 = vmatprep.mubr.msk.f32.mxu1 %vm3580_vm1, %v3579_v7  ;;  %3382 = vmatprep.subr.mxu1 %v3579_v7 }
 0xb48   :  { %3379 = vmatprep.mubr.msk.f32.mxu0 %vm3580_vm1, %v3579_v7 }
 0xb49   :  { %3375 = vmatmul.mubr.msk.f32.vlgmr.msra.gmra.mrb[34].mxu1 %vm44_vm0, %v2031_v27 }
 0xb4a   :  { %3384 = vmatprep.mubr.msk.f32.mxu1 %vm3580_vm1, %v3579_v7 }
 0xc15   :  { %v1873_v28 = vpop.f32.mrb[16].mxu0 }
 0xc16   :  { %1950 = vst.msk [vmem:[#allocation2 + $0x8] sm:$0xff] %vm44_vm0, %v1873_v28  ;;  %v3361_v29 = vpop.f32.mrb[17].mxu0 }
 0xc18   :  { %v1946_v30 = vpop.f32.mrb[32].mxu1 }
 0xc19   :  { %1951 = vst.msk [vmem:[#allocation2 + $0x18] sm:$0xff] %vm44_vm0, %v1946_v30  ;;  %v3366_v31 = vpop.f32.mrb[33].mxu1  ;;  %v2026_v32 = vpop.f32.mrb[18].mxu0 }
 0xc1a   :  { %v3371_v33 = vpop.f32.mrb[19].mxu0  ;;  %v2108_v34 = vsel %vm434_vm2, %v2026_v32, -inf }
 0xc1b   :  { %2109 = vmax.xlane.f32.xlu0 %v2108_v34 }
 0xc1c   :  { %v2104_v35 = vpop.f32.mrb[34].mxu1 }
 0xc1d   :  { %v3376_v36 = vpop.f32.mrb[35].mxu1  ;;  %v2111_v37 = vsel %vm434_vm2, %v2104_v35, -inf }
 0xc1e   :  { %2112 = vmax.xlane.f32.xlu1 %v2111_v37 }
 0xc2f   :  { %2208 = vrot.lane.b32.xlu1 %v3750_v50, %s3581_s1 }
 0xc31   :  { %2131 = vrot.lane.b32.xlu0 %v3744_v48, %s3581_s1 }
 0xc33   :  { %2296 = vrot.lane.b32.xlu1 %v3720_v44, %s3582_s14 }
 0xc37   :  { %2294 = vrot.lane.b32.xlu1 %v3712_v40, %s3582_s14 }
 0xc3b   :  { %2372 = vrot.lane.b32.xlu1 %v3716_v42, %s3582_s14 }
 0xca8   :  { %v2110_v38 = vpop.xlane.xlu0 %2109 }
 0xca9   :  { %v2114_v51 = vsub.f32 %v2026_v32, %v2110_v38 }
 0xcab   :  { %v2116_v52 = vmul.f32 1.442695, %v2114_v51  ;;  %v2113_v53 = vpop.xlane.xlu1 %2112 }
 0xcac   :  { %v2115_v54 = vsub.f32 %v2104_v35, %v2113_v53  ;;  %v2132_v55 = vpop.permute.xlu0 %2131 }
 0xcad   :  { %3531 = vpow2.f32 %v2116_v52  ;;  %3378 = vmatpush3.msra.mxu0 %v2132_v55 }
 0xcae   :  { %v2118_v49 = vmul.f32 1.442695, %v2115_v54  ;;  %3387 = vmatprep.subr.mxu0 %v3579_v7 }
 0xcaf   :  { %v2209_v56 = vpop.permute.xlu1 %2208 }
 0xcb0   :  { %3533 = vpow2.f32 %v2118_v49  ;;  %3383 = vmatpush3.msra.mxu1 %v2209_v56 }
 0xcb1   :  { %3392 = vmatprep.subr.mxu1 %v3579_v7 }
 0xcb3   :  { %v2297_v2 = vpop.permute.xlu1 %2296 }
 0xcb7   :  { %v3532_v57 = vpop.eup %3531  ;;  %v2295_v6 = vpop.permute.xlu1 %2294 }
 0xcb8   :  { %v2120_v59 = vsel %vm434_vm2, %v3532_v57, 0.0 }
 0xcb9   :  { %2121 = vadd.xlane.f32.xlu0 %v2120_v59 }
 0xcba   :  { %v3534_v61 = vpop.eup %3533 }
 0xcbb   :  { %v2123_v62 = vsel %vm434_vm2, %v3534_v61, 0.0  ;;  %v2373_v10 = vpop.permute.xlu1 %2372 }
 0xcbd   :  { %2124 = vadd.xlane.f32.xlu0 %v2123_v62 }
 0xcd3   :  { %2374 = vrot.lane.b32.xlu0 %v3733_v46, %s3582_s14 }
 0xd46   :  { %v2122_v63 = vpop.xlane.xlu0 %2121 }
 0xd47   :  { %3535 = vrcp.f32 %v2122_v63 }
 0xd4a   :  { %v2125_v0 = vpop.xlane.xlu0 %2124 }
 0xd4b   :  { %3537 = vrcp.f32 %v2125_v0 }
 0xd4e   :  { %v2375_v9 = vpop.permute.xlu0 %2374 }
 0xd51   :  { %v3536_v3 = vpop.eup %3535 }
 0xd52   :  { %v2128_v4 = vmul.f32 %v3536_v3, %v3532_v57 }
 0xd54   :  { %3380 = vmatmul.mubr.msk.f32.vlgmr.msra.gmra.mrb[20].mxu0 %vm434_vm2, %v2128_v4 }
 0xd55   :  { %v3538_v5 = vpop.eup %3537  ;;  %3388 = vmatpush3.xpose.msk.msra.mxu0 %vm44_vm0, %v2297_v2  ;;  %3389 = vmatprep.mubr.msk.f32.mxu0 %vm3580_vm1, %v3579_v7 }
 0xd56   :  { %v2129_v8 = vmul.f32 %v3538_v5, %v3534_v61  ;;  %3397 = vmatprep.subr.mxu0 %v3579_v7 }
 0xd58   :  { %3385 = vmatmul.mubr.msk.f32.vlgmr.msra.gmra.mrb[36].mxu1 %vm434_vm2, %v2129_v8  ;;  %3390 = vmatmul.mubr.msk.f32.vlgmr.msra.gmra.mrb[22].mxu0 %vm44_vm0, %v2295_v6 }
 0xd59   :  { %3393 = vmatpush3.xpose.msk.msra.mxu1 %vm44_vm0, %v2375_v9  ;;  %3394 = vmatprep.mubr.msk.f32.mxu1 %vm3580_vm1, %v3579_v7 }
 0xd5a   :  { %3402 = vmatprep.subr.mxu1 %v3579_v7  ;;  %3399 = vmatprep.mubr.msk.f32.mxu0 %vm3580_vm1, %v3579_v7 }
 0xd5c   :  { %3395 = vmatmul.mubr.msk.f32.vlgmr.msra.gmra.mrb[38].mxu1 %vm44_vm0, %v2373_v10 }
 0xd5d   :  { %3404 = vmatprep.mubr.msk.f32.mxu1 %vm3580_vm1, %v3579_v7 }
 0xe27   :  { %v3958_v11 = vpop.f32.mrb[20].mxu0 }
 0xe28   :  { %v3381_v12 = vpop.f32.mrb[21].mxu0 }
 0xe2b   :  { %v3960_v39 = vpop.f32.mrb[36].mxu1  ;;  %v2368_v43 = vpop.f32.mrb[22].mxu0 }
 0xe2c   :  { %v3386_v41 = vpop.f32.mrb[37].mxu1  ;;  %v3391_v13 = vpop.f32.mrb[23].mxu0  ;;  %v2450_v14 = vsel %vm434_vm2, %v2368_v43, -inf }
 0xe2d   :  { %2451 = vmax.xlane.f32.xlu0 %v2450_v14  ;;  %v2994_v14 = vld [vmem:[%s4153_s2 + $0x80] sm:$0xff] }
 0xe2f   :  { %v2446_v15 = vpop.f32.mrb[38].mxu1 }
 0xe30   :  { %v3396_v16 = vpop.f32.mrb[39].mxu1  ;;  %v2453_v17 = vsel %vm434_vm2, %v2446_v15, -inf }
 0xe31   :  { %2454 = vmax.xlane.f32.xlu1 %v2453_v17  ;;  %v2978_v16 = vld [vmem:[%s4153_s2] sm:$0xff] }
 0xe42   :  { %2548 = vrot.lane.b32.xlu1 %v3750_v50, %s3582_s14 }
 0xe43   :  { %2472 = vrot.lane.b32.xlu0 %v3744_v48, %s3582_s14 }
 0xe46   :  { %2636 = vrot.lane.b32.xlu1 %v3720_v44, %s3583_s15 }
 0xe4a   :  { %2634 = vrot.lane.b32.xlu1 %v3712_v40, %s3583_s15 }
 0xe4e   :  { %2712 = vrot.lane.b32.xlu1 %v3716_v42, %s3583_s15 }
 0xeba   :  { %v2452_v18 = vpop.xlane.xlu0 %2451 }
 0xebb   :  { %v2456_v19 = vsub.f32 %v2368_v43, %v2452_v18  ;;  %v2979_v18 = vld [vmem:[%s4153_s2 + $0x8] sm:$0xff] }
 0xebd   :  { %v2458_v20 = vmul.f32 1.442695, %v2456_v19  ;;  %v2996_v19 = vld [vmem:[%s4153_s2 + $0x90] sm:$0xff] }
 0xebe   :  { %v2473_v21 = vpop.permute.xlu0 %2472  ;;  %v2455_v45 = vpop.xlane.xlu1 %2454 }
 0xebf   :  { %3539 = vpow2.f32 %v2458_v20  ;;  %v2457_v22 = vsub.f32 %v2446_v15, %v2455_v45  ;;  %3398 = vmatpush3.msra.mxu0 %v2473_v21  ;;  %v2995_v15 = vld [vmem:[%s4153_s2 + $0x88] sm:$0xff]  ;;  %v2997_v20 = vld [vmem:[%s4153_s2 + $0x98] sm:$0xff]  ;;  %v3453_v21 = vpack.c.bf16 %v2979_v18, %v2978_v16 }
 0xec0   :  { %3407 = vmatprep.subr.mxu0 %v3579_v7  ;;  %v3451_v17 = vpack.c.bf16 %v2995_v15, %v2994_v14  ;;  %v3455_v45 = vpack.c.bf16 %v2997_v20, %v2996_v19 }
 0xec1   :  { %v2460_v24 = vmul.f32 1.442695, %v2457_v22  ;;  %v2980_v22 = vld [vmem:[%s4153_s2 + $0x10] sm:$0xff] }
 0xec2   :  { %v2549_v26 = vpop.permute.xlu1 %2548 }
 0xec3   :  { %3541 = vpow2.f32 %v2460_v24  ;;  %3403 = vmatpush3.msra.mxu1 %v2549_v26  ;;  %v2981_v24 = vld [vmem:[%s4153_s2 + $0x18] sm:$0xff]  ;;  %v2998_v26 = vld [vmem:[%s4153_s2 + $0xa0] sm:$0xff] }
 0xec4   :  { %3412 = vmatprep.subr.mxu1 %v3579_v7 }
 0xec6   :  { %v2637_v30 = vpop.permute.xlu1 %2636 }
 0xec9   :  { %v3540_v40 = vpop.eup %3539 }
 0xeca   :  { %v2462_v44 = vsel %vm434_vm2, %v3540_v40, 0.0  ;;  %v2635_v34 = vpop.permute.xlu1 %2634 }
 0xecb   :  { %2463 = vadd.xlane.f32.xlu0 %v2462_v44  ;;  %v3457_v44 = vpack.c.bf16 %v2981_v24, %v2980_v22 }
 0xecd   :  { %v3542_v42 = vpop.eup %3541 }
 0xece   :  { %v2465_v27 = vsel %vm434_vm2, %v3542_v42, 0.0  ;;  %v2713_v36 = vpop.permute.xlu1 %2712 }
 0xecf   :  { %2466 = vadd.xlane.f32.xlu0 %v2465_v27  ;;  %v2982_v27 = vld [vmem:[%s4153_s2 + $0x20] sm:$0xff] }
 0xee5   :  { %2714 = vrot.lane.b32.xlu0 %v3733_v46, %s3583_s15 }
 0xf58   :  { %v2464_v28 = vpop.xlane.xlu0 %2463 }
 0xf59   :  { %3543 = vrcp.f32 %v2464_v28  ;;  %v2983_v28 = vld [vmem:[%s4153_s2 + $0x28] sm:$0xff] }
 0xf5c   :  { %v2467_v29 = vpop.xlane.xlu0 %2466 }
 0xf5d   :  { %3545 = vrcp.f32 %v2467_v29  ;;  %v3000_v29 = vld [vmem:[%s4153_s2 + $0xb0] sm:$0xff] }
 0xf60   :  { %v2715_v46 = vpop.permute.xlu0 %2714 }
 0xf63   :  { %v3544_v31 = vpop.eup %3543 }
 0xf64   :  { %v2470_v32 = vmul.f32 %v3544_v31, %v3540_v40  ;;  %v2999_v40 = vld [vmem:[%s4153_s2 + $0xa8] sm:$0xff]  ;;  %v3461_v31 = vpack.c.bf16 %v2983_v28, %v2982_v27 }
 0xf66   :  { %3400 = vmatmul.mubr.msk.f32.vlgmr.msra.gmra.mrb[24].mxu0 %vm434_vm2, %v2470_v32 }
 0xf67   :  { %v3546_v33 = vpop.eup %3545  ;;  %3408 = vmatpush3.xpose.msk.msra.mxu0 %vm44_vm0, %v2637_v30  ;;  %3409 = vmatprep.mubr.msk.f32.mxu0 %vm3580_vm1, %v3579_v7  ;;  %v3001_v30 = vld [vmem:[%s4153_s2 + $0xb8] sm:$0xff] }
 0xf68   :  { %v2471_v35 = vmul.f32 %v3546_v33, %v3542_v42  ;;  %3417 = vmatprep.subr.mxu0 %v3579_v7  ;;  %v3459_v42 = vpack.c.bf16 %v2999_v40, %v2998_v26  ;;  %v3463_v32 = vpack.c.bf16 %v3001_v30, %v3000_v29  ;;  %v2984_v33 = vld [vmem:[%s4153_s2 + $0x30] sm:$0xff] }
 0xf6a   :  { %3405 = vmatmul.mubr.msk.f32.vlgmr.msra.gmra.mrb[40].mxu1 %vm434_vm2, %v2471_v35  ;;  %3410 = vmatmul.mubr.msk.f32.vlgmr.msra.gmra.mrb[26].mxu0 %vm44_vm0, %v2635_v34  ;;  %v2985_v34 = vld [vmem:[%s4153_s2 + $0x38] sm:$0xff]  ;;  %v3002_v35 = vld [vmem:[%s4153_s2 + $0xc0] sm:$0xff] }
 0xf6b   :  { %3413 = vmatpush3.xpose.msk.msra.mxu1 %vm44_vm0, %v2715_v46  ;;  %3414 = vmatprep.mubr.msk.f32.mxu1 %vm3580_vm1, %v3579_v7  ;;  %v3003_v46 = vld [vmem:[%s4153_s2 + $0xc8] sm:$0xff] }
 0xf6c   :  { %3422 = vmatprep.subr.mxu1 %v3579_v7  ;;  %3419 = vmatprep.mubr.msk.f32.mxu0 %vm3580_vm1, %v3579_v7 }
 0xf6e   :  { %3415 = vmatmul.mubr.msk.f32.vlgmr.msra.gmra.mrb[42].mxu1 %vm44_vm0, %v2713_v36  ;;  %v3465_v36 = vpack.c.bf16 %v2985_v34, %v2984_v33 }
 0xf6f   :  { %3424 = vmatprep.mubr.msk.f32.mxu1 %vm3580_vm1, %v3579_v7 }
0x1039   :  { %v2544_v37 = vpop.f32.mrb[24].mxu0 }
0x103a   :  { %v3401_v38 = vpop.f32.mrb[25].mxu0 }
0x103b   :  { %v2986_v38 = vld [vmem:[%s4153_s2 + $0x40] sm:$0xff] }
0x103d   :  { %v2620_v51 = vpop.f32.mrb[40].mxu1  ;;  %v2708_v52 = vpop.f32.mrb[26].mxu0 }
0x103e   :  { %v3406_v53 = vpop.f32.mrb[41].mxu1  ;;  %v3411_v54 = vpop.f32.mrb[27].mxu0  ;;  %v2790_v55 = vsel %vm434_vm2, %v2708_v52, -inf }
0x103f   :  { %2791 = vmax.xlane.f32.xlu0 %v2790_v55  ;;  %v3005_v53 = vld [vmem:[%s4153_s2 + $0xd8] sm:$0xff] }
0x1041   :  { %v2786_v49 = vpop.f32.mrb[42].mxu1 }
0x1042   :  { %v3416_v56 = vpop.f32.mrb[43].mxu1  ;;  %v2793_v57 = vsel %vm434_vm2, %v2786_v49, -inf }
0x1043   :  { %2794 = vmax.xlane.f32.xlu1 %v2793_v57  ;;  %v2989_v56 = vld [vmem:[%s4153_s2 + $0x58] sm:$0xff] }
0x1054   :  { %2888 = vrot.lane.b32.xlu1 %v3750_v50, %s3583_s15 }
0x1058   :  { %2286 = vrot.lane.b32.xlu1 %v3958_v11, %s3583_s15 }
0x105c   :  { %939 = vrot.lane.b32.xlu1 %v3814_v58, %s3583_s15 }
0x1060   :  { %1280 = vrot.lane.b32.xlu1 %v3852_v23, %s3582_s14 }
0x1064   :  { %1621 = vrot.lane.b32.xlu1 %v3890_v47, %s3581_s1 }
0x1068   :  { %941 = vrot.lane.b32.xlu1 %v3816_v60, %s3583_s15 }
0x106c   :  { %1282 = vrot.lane.b32.xlu1 %v3854_v25, %s3582_s14 }
0x1070   :  { %1623 = vrot.lane.b32.xlu1 %v3892_v1, %s3581_s1 }
0x10cc   :  { %v2792_v7 = vpop.xlane.xlu0 %2791 }
0x10cd   :  { %v2796_v50 = vsub.f32 %v2708_v52, %v2792_v7  ;;  %v3004_v52 = vld [vmem:[%s4153_s2 + $0xd0] sm:$0xff]  ;;  %v3006_v7 = vld [vmem:[%s4153_s2 + $0xe0] sm:$0xff] }
0x10ce   :  { %v3471_v55 = vpack.c.bf16 %v3005_v53, %v3004_v52 }
0x10cf   :  { %v2798_v59 = vmul.f32 1.442695, %v2796_v50  ;;  %v3007_v50 = vld [vmem:[%s4153_s2 + $0xe8] sm:$0xff] }
0x10d0   :  { %v2795_v61 = vpop.xlane.xlu1 %2794 }
0x10d1   :  { %3547 = vpow2.f32 %v2798_v59  ;;  %v2797_v58 = vsub.f32 %v2786_v49, %v2795_v61  ;;  %v2988_v49 = vld [vmem:[%s4153_s2 + $0x50] sm:$0xff]  ;;  %v3475_v59 = vpack.c.bf16 %v3007_v50, %v3006_v7  ;;  %v2990_v61 = vld [vmem:[%s4153_s2 + $0x60] sm:$0xff] }
0x10d2   :  { %v3473_v57 = vpack.c.bf16 %v2989_v56, %v2988_v49 }
0x10d3   :  { %v2800_v62 = vmul.f32 1.442695, %v2797_v58  ;;  %v2991_v58 = vld [vmem:[%s4153_s2 + $0x68] sm:$0xff] }
0x10d4   :  { %v2889_v23 = vpop.permute.xlu1 %2888 }
0x10d5   :  { %3549 = vpow2.f32 %v2800_v62  ;;  %3423 = vmatpush3.msra.mxu1 %v2889_v23  ;;  %v3477_v62 = vpack.c.bf16 %v2991_v58, %v2990_v61  ;;  %v3008_v23 = vld [vmem:[%s4153_s2 + $0xf0] sm:$0xff] }
0x10d8   :  { %v2287_v47 = vpop.permute.xlu1 %2286 }
0x10d9   :  { %2292 = vst.msk [vmem:[#allocation2 + $0x8] sm:$0xff] %vm945_vm3, %v2287_v47  ;;  %v3009_v47 = vld [vmem:[%s4153_s2 + $0xf8] sm:$0xff] }
0x10db   :  { %v3548_v60 = vpop.eup %3547 }
0x10dc   :  { %v940_v63 = vpop.permute.xlu1 %939  ;;  %v2802_v25 = vsel %vm434_vm2, %v3548_v60, 0.0 }
0x10dd   :  { %946 = vst.msk [vmem:[#allocation2] sm:$0xff] %vm945_vm3, %v940_v63  ;;  %2803 = vadd.xlane.f32.xlu0 %v2802_v25  ;;  %v2992_v63 = vld [vmem:[%s4153_s2 + $0x70] sm:$0xff]  ;;  %v2993_v25 = vld [vmem:[%s4153_s2 + $0x78] sm:$0xff] }
0x10df   :  { %v3550_v1 = vpop.eup %3549 }
0x10e0   :  { %v1281_v0 = vpop.permute.xlu1 %1280  ;;  %v2805_v2 = vsel %vm434_vm2, %v3550_v1, 0.0 }
0x10e1   :  { %1287 = vst.msk [vmem:[#allocation2] sm:$0xff] %vm1286_vm4, %v1281_v0  ;;  %2806 = vadd.xlane.f32.xlu0 %v2805_v2 }
0x10e4   :  { %v1622_v3 = vpop.permute.xlu1 %1621 }
0x10e5   :  { %1628 = vst.msk [vmem:[#allocation2] sm:$0xff] %vm1627_vm5, %v1622_v3 }
0x10e8   :  { %v942_v4 = vpop.permute.xlu1 %941 }
0x10e9   :  { %947 = vst.msk [vmem:[#allocation2 + $0x10] sm:$0xff] %vm945_vm3, %v942_v4 }
0x10ec   :  { %v1283_v5 = vpop.permute.xlu1 %1282 }
0x10ed   :  { %1288 = vst.msk [vmem:[#allocation2 + $0x10] sm:$0xff] %vm1286_vm4, %v1283_v5 }
0x10f0   :  { %v1624_v6 = vpop.permute.xlu1 %1623 }
0x10f1   :  { %1629 = vst.msk [vmem:[#allocation2 + $0x10] sm:$0xff] %vm1627_vm5, %v1624_v6 }
0x10f7   :  { %2812 = vrot.lane.b32.xlu0 %v3744_v48, %s3583_s15 }
0x10fb   :  { %2626 = vrot.lane.b32.xlu0 %v2544_v37, %s3582_s14  ;;  %v3467_v37 = vpack.c.bf16 %v3003_v46, %v3002_v35 }
0x10ff   :  { %2288 = vrot.lane.b32.xlu0 %v3960_v39, %s3583_s15 }
0x1103   :  { %2628 = vrot.lane.b32.xlu0 %v2620_v51, %s3582_s14  ;;  %v2987_v51 = vld [vmem:[%s4153_s2 + $0x48] sm:$0xff] }
0x1104   :  { %v3469_v54 = vpack.c.bf16 %v2987_v51, %v2986_v38 }
0x116a   :  { %v2804_v8 = vpop.xlane.xlu0 %2803 }
0x116b   :  { %3551 = vrcp.f32 %v2804_v8 }
0x116e   :  { %v2807_v9 = vpop.xlane.xlu0 %2806 }
0x116f   :  { %3553 = vrcp.f32 %v2807_v9  ;;  %v2974_v9 = vld [vmem:[#allocation2] sm:$0xff] }
0x1172   :  { %v2813_v10 = vpop.permute.xlu0 %2812 }
0x1173   :  { %3418 = vmatpush3.msra.mxu0 %v2813_v10 }
0x1174   :  { %3452 = vmatprep.subr.bf16.mxu0 %v3451_v17 }
0x1175   :  { %v3552_v11 = vpop.eup %3551 }
0x1176   :  { %v2810_v12 = vmul.f32 %v3552_v11, %v3548_v60  ;;  %v2627_v43 = vpop.permute.xlu0 %2626  ;;  %v3479_v60 = vpack.c.bf16 %v3009_v47, %v3008_v23  ;;  %v2976_v11 = vld [vmem:[#allocation2 + $0x10] sm:$0xff] }
0x1177   :  { %2632 = vst.msk [vmem:[#allocation2 + $0x8] sm:$0xff] %vm1286_vm4, %v2627_v43  ;;  %v3164_v43 = vld [vmem:[%s4154_s3] ss:$0 sm:$0xff] }
0x1178   :  { %3420 = vmatmul.mubr.msk.f32.vlgmr.msra.gmra.mrb[28].mxu0 %vm434_vm2, %v2810_v12 }
0x1179   :  { %v3554_v48 = vpop.eup %3553  ;;  %3454 = vmatpush3.bf16.msra.mxu0 %v3453_v21 }
0x117a   :  { %v2811_v41 = vmul.f32 %v3554_v48, %v3550_v1  ;;  %v2289_v13 = vpop.permute.xlu0 %2288  ;;  %3456 = vmatprep.subr.bf16.mxu0 %v3455_v45  ;;  %v3481_v1 = vpack.c.bf16 %v2993_v25, %v2992_v63 }
0x117b   :  { %2293 = vst.msk [vmem:[#allocation2 + $0x18] sm:$0xff] %vm945_vm3, %v2289_v13 }
0x117c   :  { %3425 = vmatmul.mubr.msk.f32.vlgmr.msra.gmra.mrb[44].mxu1 %vm434_vm2, %v2811_v41 }
0x117d   :  { %3458 = vmatpush3.bf16.msra.mxu0 %v3457_v44 }
0x117e   :  { %v2629_v39 = vpop.permute.xlu0 %2628  ;;  %3460 = vmatprep.subr.bf16.mxu0 %v3459_v42 }
0x117f   :  { %2633 = vst.msk [vmem:[#allocation2 + $0x18] sm:$0xff] %vm1286_vm4, %v2629_v39 }
0x1181   :  { %3462 = vmatpush3.bf16.msra.mxu0 %v3461_v31 }
0x1182   :  { %3464 = vmatprep.subr.bf16.mxu0 %v3463_v32 }
0x1185   :  { %3466 = vmatpush3.bf16.msra.mxu0 %v3465_v36 }
0x1186   :  { %3468 = vmatprep.subr.bf16.mxu0 %v3467_v37 }
0x1189   :  { %3470 = vmatpush3.bf16.msra.mxu0 %v3469_v54 }
0x118a   :  { %3472 = vmatprep.subr.bf16.mxu0 %v3471_v55 }
0x118d   :  { %3474 = vmatpush3.bf16.msra.mxu0 %v3473_v57 }
0x118e   :  { %3476 = vmatprep.subr.bf16.mxu0 %v3475_v59 }
0x1191   :  { %3478 = vmatpush3.bf16.msra.mxu0 %v3477_v62 }
0x1192   :  { %3480 = vmatprep.subr.bf16.mxu0 %v3479_v60 }
0x1195   :  { %3482 = vmatpush3.bf16.msra.mxu0 %v3481_v1 }
0x124b   :  { %v2884_v0 = vpop.f32.mrb[28].mxu0 }
0x124c   :  { %2966 = vrot.lane.b32.xlu0 %v2884_v0, %s3581_s1  ;;  %v3421_v2 = vpop.f32.mrb[29].mxu0 }
0x124f   :  { %v2960_v3 = vpop.f32.mrb[44].mxu1 }
0x1250   :  { %2968 = vrot.lane.b32.xlu0 %v2960_v3, %s3581_s1  ;;  %v3426_v4 = vpop.f32.mrb[45].mxu1  ;;  %s3584_s1 = smov [#allocation3]  }
0x1251   :  { %s3099_s27 = sshll.u32 %s3584_s1, 4  ;;  %s3100_s27 = int_to_ptr.vmem [resolvable:$true] %s3099_s27 }
0x1252   :  { %s3555_s28 = scalar_lea.vmem %s3100_s27, 256  ;;  %p3560_p1 = scmp.lt.s32.totalorder %s3100_s27, %s3100_s27 }
0x1253   :  { %p3556_p0 = scmp.ne.s32.totalorder %s3100_s27, %s3555_s28  ;;  %p3561_p2 = scmp.lt.s32.totalorder %s3555_s28, %s3555_s28 }
0x1255   :  { %p3562_p3 = por %p3561_p2, %p3560_p1 }
0x1257   :  { %p3563_p4 = pnand %p3562_p3, %p3556_p0 }
0x12be   :  { %v2967_v5 = vpop.permute.xlu0 %2966 }
0x12bf   :  { %2972 = vst.msk [vmem:[#allocation2 + $0x8] sm:$0xff] %vm1627_vm5, %v2967_v5 }
0x12c2   :  { %v2969_v6 = vpop.permute.xlu0 %2968 }
0x12c3   :  { %2973 = vst.msk [vmem:[#allocation2 + $0x18] sm:$0xff] %vm1627_vm5, %v2969_v6 }
0x12c6   :  { %v2975_v8 = vld [vmem:[#allocation2 + $0x8] sm:$0xff] }
0x12c7   :  { %3081 = vmatprep.mubr.f32.mxu0 %v2975_v8 }
0x12c8   :  { %3082 = vmatmul.mubr.f32.vlgmr.msra.gmra.mrb[30].mxu0 %v2974_v9 }
0x12ca   :  { %v2977_v10 = vld [vmem:[#allocation2 + $0x18] sm:$0xff] }
0x12cb   :  { %3086 = vmatprep.mubr.f32.mxu0 %v2977_v10 }
0x12cc   :  { %3087 = vmatmul.mubr.f32.gmra.mrb[32].mxu0 %v2976_v11 }
0x139b   :  { %v3261_v12 = vpop.f32.mrb[30].mxu0 }
0x139c   :  { %v3262_v48 = vpop.f32.mrb[31].mxu0 }
0x139d   :  { %v3263_v41 = vadd.f32 %v3262_v48, %v3261_v12 }
0x139f   :  { %v3084_v13 = vadd.f32 %v3263_v41, %v3164_v43  ;;  %v3264_v39 = vpop.f32.mrb[32].mxu0 }
0x13a0   :  { %v3265_v14 = vpop.f32.mrb[33].mxu0 }
0x13a1   :  { %3092 = vst.msk [vmem:[#allocation3] sm:$0xff] %vm44_vm0, %v3084_v13  ;;  %v3266_v15 = vadd.f32 %v3265_v14, %v3264_v39 }
0x13a3   :  { %v3089_v16 = vadd.f32 %v3266_v15, %v3164_v43 }
0x13a5   :  { %3093 = vst.msk [vmem:[#allocation3 + $0x8] sm:$0xff] %vm44_vm0, %v3089_v16 }
0x13a6   :  { %3566 = shalt.err (!%p3563_p4)
}
0x13a7   :  { %s3567_s30 = scalar_lea.hbm %s4155_s4, 256 }
0x13a8   :  { %p3568_p5 = scmp.ne.s32.totalorder %s4155_s4, %s3567_s30  ;;  %p3571_p6 = scmp.lt.u32.totalorder %s3567_s30, %s4155_s4 }
0x13aa   :  { %p3573_p7 = pnand %p3571_p6, %p3568_p5 }
0x13ac   :  { %3576 = shalt.err (!%p3573_p7)
}
0x13ad   :  { %s3585_s9 = smov 128   ;;  %s3586_s10 = smov 8  }
0x13ae   :  { %3105 = dma.vmem_to_hbm [thread:$0]  %s3100_s27, 256, %s4155_s4, [#allocation4], %s3585_s9, %s3585_s9, %s3586_s10  }
0x13af   :  { %3577 = dma.done.wait [#allocation4], 256  }
0x13b0   :  { %3578 = vsyncadd [#allocation4], 4294967040 }
0x13b1   :  { %3109 = vsyncpa [#allocation4], 1 }

// kernel: tpu_custom_call.1
= control target key start
LH: loop header
LB: loop body
LE: loop exit
PB: predicated region body
PF: predicated region fallthrough
CT: control target
= control target key end

     0   :  { %v3579_v7 = vmov 0.0   ;;  %vm44_vm0 = vcmask 261120   ;;  %s4151_s0 = inlined_call_operand.vmem [shape: f32[2,8,32], index: 0, kind: input, shape index: {}]   ;;  %s4152_s1 = inlined_call_operand.vmem [shape: f32[32,768], index: 1, kind: input, shape index: {}]   ;;  %s4153_s2 = inlined_call_operand.vmem [shape: f32[256,32], index: 2, kind: input, shape index: {}]   ;;  %s4154_s3 = inlined_call_operand.vmem [shape: f32[1,32], index: 3, kind: input, shape index: {}]   ;;  %s4155_s4 = inlined_call_operand.hbm [shape: f32[2,8,32], index: 4, kind: output, shape index: {}]  }
   0x1   :  { %v21_v0 = vld [vmem:[%s4152_s1 + $0x8] sm:$0xff]  ;;  %v27_v1 = vld [vmem:[%s4152_s1 + $0x38] sm:$0xff]  ;;  %v20_v2 = vld [vmem:[%s4152_s1] sm:$0xff]  ;;  %115 = vmatprep.mubr.f32.mxu1 %v3579_v7  ;;  %3277 = vmatprep.subr.mxu0 %v3579_v7 }
   0x2   :  { %v3427_v3 = vpack.c.bf16 %v27_v1, %v21_v0  ;;  %v26_v4 = vld [vmem:[%s4152_s1 + $0x30] sm:$0xff]  ;;  %v33_v5 = vld [vmem:[%s4152_s1 + $0x68] sm:$0xff]  ;;  %v39_v6 = vld [vmem:[%s4152_s1 + $0x98] sm:$0xff] }
   0x3   :  { %v3429_v8 = vpack.c.bf16 %v26_v4, %v20_v2  ;;  %v3431_v9 = vpack.c.bf16 %v39_v6, %v33_v5  ;;  %v32_v10 = vld [vmem:[%s4152_s1 + $0x60] sm:$0xff]  ;;  %v38_v11 = vld [vmem:[%s4152_s1 + $0x90] sm:$0xff]  ;;  %v23_v12 = vld [vmem:[%s4152_s1 + $0x18] sm:$0xff] }
   0x4   :  { %3428 = vmatprep.subr.bf16.mxu1 %v3427_v3  ;;  %v29_v13 = vld [vmem:[%s4152_s1 + $0x48] sm:$0xff]  ;;  %v3433_v14 = vpack.c.bf16 %v38_v11, %v32_v10  ;;  %v22_v16 = vld [vmem:[%s4152_s1 + $0x10] sm:$0xff]  ;;  %v28_v17 = vld [vmem:[%s4152_s1 + $0x40] sm:$0xff] }
   0x5   :  { %3430 = vmatpush1.bf16.msra.mxu1 %v3429_v8  ;;  %v3435_v15 = vpack.c.bf16 %v29_v13, %v23_v12  ;;  %v35_v18 = vld [vmem:[%s4152_s1 + $0x78] sm:$0xff]  ;;  %v41_v19 = vld [vmem:[%s4152_s1 + $0xa8] sm:$0xff]  ;;  %v18_v20 = vld [vmem:[%s4151_s0] sm:$0xff]  ;;  %v3437_v21 = vpack.c.bf16 %v28_v17, %v22_v16 }
   0x6   :  { %3432 = vmatprep.subr.bf16.mxu1 %v3431_v9 }
   0x9   :  { %3434 = vmatpush1.bf16.msra.mxu1 %v3433_v14 }
   0xa   :  { %9 = vsyncpa [#allocation4], 0  ;;  %3436 = vmatprep.subr.bf16.mxu1 %v3435_v15  ;;  %v3439_v22 = vpack.c.bf16 %v41_v19, %v35_v18  ;;  %v34_v23 = vld [vmem:[%s4152_s1 + $0x70] sm:$0xff]  ;;  %v40_v24 = vld [vmem:[%s4152_s1 + $0xa0] sm:$0xff]  ;;  %vm3580_vm1 = vmmov 0   ;;  %vm434_vm2 = vcmask 64512  }
   0xb   :  { %v25_v25 = vld [vmem:[%s4152_s1 + $0x28] sm:$0xff]  ;;  %v31_v26 = vld [vmem:[%s4152_s1 + $0x58] sm:$0xff]  ;;  %v3441_v28 = vpack.c.bf16 %v40_v24, %v34_v23  ;;  %v24_v30 = vld [vmem:[%s4152_s1 + $0x20] sm:$0xff]  ;;  %3279 = vmatprep.mubr.msk.f32.mxu0 %vm3580_vm1, %v3579_v7  ;;  %s3582_s14 = smov 64   ;;  %s3583_s15 = smov 32   ;;  %vm945_vm3 = vcmask 523520  }
   0xc   :  { %3110 = vmatmul.mubr.msk.f32.vlgmr.msra.gmra.mrb[0].mxu1 %vm44_vm0, %v18_v20  ;;  %v19_v27 = vld [vmem:[%s4151_s0 + $0x8] sm:$0xff]  ;;  %v3443_v29 = vpack.c.bf16 %v31_v26, %v25_v25  ;;  %v30_v31 = vld [vmem:[%s4152_s1 + $0x50] sm:$0xff]  ;;  %v43_v33 = vld [vmem:[%s4152_s1 + $0xb8] sm:$0xff]  ;;  %vm1286_vm4 = vcmask 785920   ;;  %vm1627_vm5 = vcmask 1048320  }
   0xd   :  { %3438 = vmatpush1.bf16.msra.mxu1 %v3437_v21  ;;  %121 = vmatprep.mubr.f32.mxu1 %v3579_v7  ;;  %v37_v32 = vld [vmem:[%s4152_s1 + $0x88] sm:$0xff]  ;;  %v3445_v34 = vpack.c.bf16 %v30_v31, %v24_v30  ;;  %v36_v36 = vld [vmem:[%s4152_s1 + $0x80] sm:$0xff]  ;;  %v42_v37 = vld [vmem:[%s4152_s1 + $0xb0] sm:$0xff]  ;;  %s3581_s1 = smov 96  }
   0xe   :  { %3440 = vmatprep.subr.bf16.mxu1 %v3439_v22  ;;  %v3447_v35 = vpack.c.bf16 %v43_v33, %v37_v32  ;;  %v3449_v38 = vpack.c.bf16 %v42_v37, %v36_v36 }
  0x10   :  { %3111 = vmatmul.mubr.msk.f32.gmra.mrb[2].mxu1 %vm44_vm0, %v19_v27 }
  0x11   :  { %3442 = vmatpush1.bf16.msra.mxu1 %v3441_v28  ;;  %192 = vmatprep.mubr.f32.mxu1 %v3579_v7 }
  0x12   :  { %3444 = vmatprep.subr.bf16.mxu1 %v3443_v29 }
  0x14   :  { %3112 = vmatmul.mubr.msk.f32.vlgmr.msra.gmra.mrb[4].mxu1 %vm44_vm0, %v18_v20 }
  0x15   :  { %198 = vmatprep.mubr.f32.mxu1 %v3579_v7  ;;  %3446 = vmatpush1.bf16.msra.mxu1 %v3445_v34 }
  0x16   :  { %3448 = vmatprep.subr.bf16.mxu1 %v3447_v35 }
  0x18   :  { %3113 = vmatmul.mubr.msk.f32.gmra.mrb[6].mxu1 %vm44_vm0, %v19_v27 }
  0x19   :  { %269 = vmatprep.mubr.f32.mxu1 %v3579_v7  ;;  %3450 = vmatpush1.bf16.msra.mxu1 %v3449_v38 }
  0x1a   :  { %3267 = vmatprep.subr.mxu1 %v3579_v7 }
  0x1c   :  { %3114 = vmatmul.mubr.msk.f32.vlgmr.msra.gmra.mrb[8].mxu1 %vm44_vm0, %v18_v20 }
  0x1d   :  { %275 = vmatprep.mubr.f32.mxu1 %v3579_v7 }
  0x20   :  { %3115 = vmatmul.mubr.msk.f32.gmra.mrb[10].mxu1 %vm44_vm0, %v19_v27 }
  0x21   :  { %3269 = vmatprep.mubr.msk.f32.mxu1 %vm3580_vm1, %v3579_v7 }
  0xdf   :  { %v3708_v39 = vpop.f32.mrb[0].mxu1 }
  0xe0   :  { %605 = vrot.lane.b32.xlu1 %v3708_v39, %s3581_s1  ;;  %v3712_v40 = vpop.f32.mrb[1].mxu1 }
  0xe3   :  { %v3714_v41 = vpop.f32.mrb[2].mxu1 }
  0xe4   :  { %v3716_v42 = vpop.f32.mrb[3].mxu1 }
  0xe7   :  { %v3718_v43 = vpop.f32.mrb[4].mxu1 }
  0xe8   :  { %v3720_v44 = vpop.f32.mrb[5].mxu1  ;;  %3268 = vmatpush3.xpose.msk.msra.mxu1 %vm44_vm0, %v3718_v43 }
  0xe9   :  { %3272 = vmatprep.subr.mxu1 %v3579_v7 }
  0xeb   :  { %v3725_v45 = vpop.f32.mrb[6].mxu1  ;;  %3270 = vmatmul.mubr.msk.f32.vlgmr.msra.gmra.mrb[12].mxu1 %vm44_vm0, %v3708_v39 }
  0xec   :  { %3273 = vmatpush3.xpose.msk.msra.mxu1 %vm44_vm0, %v3725_v45  ;;  %3274 = vmatprep.mubr.msk.f32.mxu1 %vm3580_vm1, %v3579_v7  ;;  %v3733_v46 = vpop.f32.mrb[7].mxu1 }
  0xed   :  { %685 = vrot.lane.b32.xlu1 %v3725_v45, %s3581_s1  ;;  %3282 = vmatprep.subr.mxu1 %v3579_v7 }
  0xef   :  { %3275 = vmatmul.mubr.msk.f32.vlgmr.msra.gmra.mrb[14].mxu1 %vm44_vm0, %v3714_v41  ;;  %v3742_v47 = vpop.f32.mrb[8].mxu1 }
  0xf0   :  { %3284 = vmatprep.mubr.msk.f32.mxu1 %vm3580_vm1, %v3579_v7  ;;  %v3744_v48 = vpop.f32.mrb[9].mxu1  ;;  %3278 = vmatpush3.msra.mxu0 %v3742_v47 }
  0xf1   :  { %3287 = vmatprep.subr.mxu0 %v3579_v7 }
  0xf3   :  { %v3748_v49 = vpop.f32.mrb[10].mxu1 }
  0xf4   :  { %v3750_v50 = vpop.f32.mrb[11].mxu1  ;;  %3283 = vmatpush3.msra.mxu1 %v3748_v49 }
  0xf5   :  { %3292 = vmatprep.subr.mxu1 %v3579_v7 }
 0x152   :  { %v606_v3 = vpop.permute.xlu1 %605 }
 0x15f   :  { %v686_v4 = vpop.permute.xlu1 %685 }
 0x1be   :  { %v354_v51 = vpop.f32.mrb[12].mxu1 }
 0x1bf   :  { %v3271_v52 = vpop.f32.mrb[13].mxu1  ;;  %v435_v53 = vsel %vm434_vm2, %v354_v51, -inf }
 0x1c0   :  { %436 = vmax.xlane.f32.xlu0 %v435_v53 }
 0x1c2   :  { %v430_v54 = vpop.f32.mrb[14].mxu1 }
 0x1c3   :  { %v3276_v55 = vpop.f32.mrb[15].mxu1  ;;  %v438_v56 = vsel %vm434_vm2, %v430_v54, -inf }
 0x1c4   :  { %439 = vmax.xlane.f32.xlu0 %v438_v56 }
 0x1da   :  { %607 = vrot.lane.b32.xlu0 %v3718_v43, %s3581_s1 }
 0x24d   :  { %v437_v57 = vpop.xlane.xlu0 %436 }
 0x24e   :  { %v441_v58 = vsub.f32 %v354_v51, %v437_v57 }
 0x250   :  { %v443_v59 = vmul.f32 1.442695, %v441_v58 }
 0x251   :  { %v440_v60 = vpop.xlane.xlu0 %439 }
 0x252   :  { %3491 = vpow2.f32 %v443_v59  ;;  %v442_v61 = vsub.f32 %v430_v54, %v440_v60 }
 0x254   :  { %v445_v62 = vmul.f32 1.442695, %v442_v61 }
 0x255   :  { %v608_v10 = vpop.permute.xlu0 %607 }
 0x256   :  { %3493 = vpow2.f32 %v445_v62 }
 0x25c   :  { %v3492_v63 = vpop.eup %3491 }
 0x25d   :  { %v447_v0 = vsel %vm434_vm2, %v3492_v63, 0.0 }
 0x25e   :  { %448 = vadd.xlane.f32.xlu1 %v447_v0 }
 0x260   :  { %v3494_v1 = vpop.eup %3493 }
 0x261   :  { %v450_v2 = vsel %vm434_vm2, %v3494_v1, 0.0 }
 0x262   :  { %451 = vadd.xlane.f32.xlu1 %v450_v2 }
 0x273   :  { %683 = vrot.lane.b32.xlu1 %v3714_v41, %s3581_s1 }
 0x2eb   :  { %v449_v5 = vpop.xlane.xlu1 %448 }
 0x2ec   :  { %3495 = vrcp.f32 %v449_v5 }
 0x2ef   :  { %v452_v6 = vpop.xlane.xlu1 %451 }
 0x2f0   :  { %3497 = vrcp.f32 %v452_v6 }
 0x2f3   :  { %v684_v13 = vpop.permute.xlu1 %683 }
 0x2f6   :  { %v3496_v8 = vpop.eup %3495 }
 0x2f7   :  { %v455_v9 = vmul.f32 %v3496_v8, %v3492_v63 }
 0x2f9   :  { %3280 = vmatmul.mubr.msk.f32.vlgmr.msra.gmra.mrb[0].mxu0 %vm434_vm2, %v455_v9 }
 0x2fa   :  { %v3498_v11 = vpop.eup %3497  ;;  %3288 = vmatpush3.xpose.msk.msra.mxu0 %vm44_vm0, %v608_v10  ;;  %3289 = vmatprep.mubr.msk.f32.mxu0 %vm3580_vm1, %v3579_v7 }
 0x2fb   :  { %v456_v12 = vmul.f32 %v3498_v11, %v3494_v1  ;;  %3297 = vmatprep.subr.mxu0 %v3579_v7 }
 0x2fd   :  { %3285 = vmatmul.mubr.msk.f32.vlgmr.msra.gmra.mrb[16].mxu1 %vm434_vm2, %v456_v12  ;;  %3290 = vmatmul.mubr.msk.f32.vlgmr.msra.gmra.mrb[2].mxu0 %vm44_vm0, %v606_v3 }
 0x2fe   :  { %3293 = vmatpush3.xpose.msk.msra.mxu1 %vm44_vm0, %v686_v4  ;;  %3294 = vmatprep.mubr.msk.f32.mxu1 %vm3580_vm1, %v3579_v7 }
 0x2ff   :  { %3302 = vmatprep.subr.mxu1 %v3579_v7  ;;  %3299 = vmatprep.mubr.msk.f32.mxu0 %vm3580_vm1, %v3579_v7 }
 0x301   :  { %3295 = vmatmul.mubr.msk.f32.vlgmr.msra.gmra.mrb[18].mxu1 %vm44_vm0, %v684_v13 }
 0x302   :  { %3304 = vmatprep.mubr.msk.f32.mxu1 %vm3580_vm1, %v3579_v7 }
 0x3cc   :  { %v526_v14 = vpop.f32.mrb[0].mxu0 }
 0x3cd   :  { %603 = vst.msk [vmem:[#allocation2] sm:$0xff] %vm44_vm0, %v526_v14  ;;  %v3281_v15 = vpop.f32.mrb[1].mxu0 }
 0x3d0   :  { %v599_v16 = vpop.f32.mrb[16].mxu1  ;;  %v679_v17 = vpop.f32.mrb[2].mxu0 }
 0x3d1   :  { %604 = vst.msk [vmem:[#allocation2 + $0x10] sm:$0xff] %vm44_vm0, %v599_v16  ;;  %v3286_v18 = vpop.f32.mrb[17].mxu1  ;;  %v3291_v19 = vpop.f32.mrb[3].mxu0  ;;  %v761_v20 = vsel %vm434_vm2, %v679_v17, -inf }
 0x3d2   :  { %762 = vmax.xlane.f32.xlu0 %v761_v20 }
 0x3d4   :  { %v757_v21 = vpop.f32.mrb[18].mxu1 }
 0x3d5   :  { %v3296_v22 = vpop.f32.mrb[19].mxu1  ;;  %v764_v23 = vsel %vm434_vm2, %v757_v21, -inf }
 0x3d6   :  { %765 = vmax.xlane.f32.xlu1 %v764_v23 }
 0x3e7   :  { %861 = vrot.lane.b32.xlu1 %v3748_v49, %s3581_s1 }
 0x3e8   :  { %784 = vrot.lane.b32.xlu0 %v3742_v47, %s3581_s1 }
 0x3eb   :  { %950 = vrot.lane.b32.xlu1 %v3718_v43, %s3582_s14 }
 0x3ef   :  { %948 = vrot.lane.b32.xlu1 %v3708_v39, %s3582_s14 }
 0x3f3   :  { %1026 = vrot.lane.b32.xlu1 %v3714_v41, %s3582_s14 }
 0x45f   :  { %v763_v24 = vpop.xlane.xlu0 %762 }
 0x460   :  { %v767_v25 = vsub.f32 %v679_v17, %v763_v24 }
 0x462   :  { %v769_v26 = vmul.f32 1.442695, %v767_v25 }
 0x463   :  { %v785_v27 = vpop.permute.xlu0 %784  ;;  %v766_v28 = vpop.xlane.xlu1 %765 }
 0x464   :  { %3499 = vpow2.f32 %v769_v26  ;;  %v768_v29 = vsub.f32 %v757_v21, %v766_v28  ;;  %3298 = vmatpush3.msra.mxu0 %v785_v27 }
 0x465   :  { %3307 = vmatprep.subr.mxu0 %v3579_v7 }
 0x466   :  { %v771_v30 = vmul.f32 1.442695, %v768_v29 }
 0x467   :  { %v862_v31 = vpop.permute.xlu1 %861 }
 0x468   :  { %3501 = vpow2.f32 %v771_v30  ;;  %3303 = vmatpush3.msra.mxu1 %v862_v31 }
 0x469   :  { %3312 = vmatprep.subr.mxu1 %v3579_v7 }
 0x46b   :  { %v951_v38 = vpop.permute.xlu1 %950 }
 0x46e   :  { %v3500_v32 = vpop.eup %3499 }
 0x46f   :  { %v773_v33 = vsel %vm434_vm2, %v3500_v32, 0.0  ;;  %v949_v54 = vpop.permute.xlu1 %948 }
 0x470   :  { %774 = vadd.xlane.f32.xlu0 %v773_v33 }
 0x472   :  { %v3502_v34 = vpop.eup %3501 }
 0x473   :  { %v776_v35 = vsel %vm434_vm2, %v3502_v34, 0.0  ;;  %v1027_v57 = vpop.permute.xlu1 %1026 }
 0x474   :  { %777 = vadd.xlane.f32.xlu0 %v776_v35 }
 0x48a   :  { %1028 = vrot.lane.b32.xlu0 %v3725_v45, %s3582_s14 }
 0x4fd   :  { %v775_v36 = vpop.xlane.xlu0 %774 }
 0x4fe   :  { %3503 = vrcp.f32 %v775_v36 }
 0x501   :  { %v778_v37 = vpop.xlane.xlu0 %777 }
 0x502   :  { %3505 = vrcp.f32 %v778_v37 }
 0x505   :  { %v1029_v56 = vpop.permute.xlu0 %1028 }
 0x508   :  { %v3504_v51 = vpop.eup %3503 }
 0x509   :  { %v781_v52 = vmul.f32 %v3504_v51, %v3500_v32 }
 0x50b   :  { %3300 = vmatmul.mubr.msk.f32.vlgmr.msra.gmra.mrb[4].mxu0 %vm434_vm2, %v781_v52 }
 0x50c   :  { %v3506_v53 = vpop.eup %3505  ;;  %3308 = vmatpush3.xpose.msk.msra.mxu0 %vm44_vm0, %v951_v38  ;;  %3309 = vmatprep.mubr.msk.f32.mxu0 %vm3580_vm1, %v3579_v7 }
 0x50d   :  { %v782_v55 = vmul.f32 %v3506_v53, %v3502_v34  ;;  %3317 = vmatprep.subr.mxu0 %v3579_v7 }
 0x50f   :  { %3305 = vmatmul.mubr.msk.f32.vlgmr.msra.gmra.mrb[20].mxu1 %vm434_vm2, %v782_v55  ;;  %3310 = vmatmul.mubr.msk.f32.vlgmr.msra.gmra.mrb[6].mxu0 %vm44_vm0, %v949_v54 }
 0x510   :  { %3313 = vmatpush3.xpose.msk.msra.mxu1 %vm44_vm0, %v1029_v56  ;;  %3314 = vmatprep.mubr.msk.f32.mxu1 %vm3580_vm1, %v3579_v7 }
 0x511   :  { %3322 = vmatprep.subr.mxu1 %v3579_v7  ;;  %3319 = vmatprep.mubr.msk.f32.mxu0 %vm3580_vm1, %v3579_v7 }
 0x513   :  { %3315 = vmatmul.mubr.msk.f32.vlgmr.msra.gmra.mrb[22].mxu1 %vm44_vm0, %v1027_v57 }
 0x514   :  { %3324 = vmatprep.mubr.msk.f32.mxu1 %vm3580_vm1, %v3579_v7 }
 0x5de   :  { %v3814_v58 = vpop.f32.mrb[4].mxu0 }
 0x5df   :  { %v3301_v59 = vpop.f32.mrb[5].mxu0 }
 0x5e2   :  { %v3816_v60 = vpop.f32.mrb[20].mxu1  ;;  %v1022_v61 = vpop.f32.mrb[6].mxu0 }
 0x5e3   :  { %v3306_v62 = vpop.f32.mrb[21].mxu1  ;;  %v3311_v63 = vpop.f32.mrb[7].mxu0  ;;  %v1104_v0 = vsel %vm434_vm2, %v1022_v61, -inf }
 0x5e4   :  { %1105 = vmax.xlane.f32.xlu0 %v1104_v0 }
 0x5e6   :  { %v1100_v1 = vpop.f32.mrb[22].mxu1 }
 0x5e7   :  { %v3316_v2 = vpop.f32.mrb[23].mxu1  ;;  %v1107_v3 = vsel %vm434_vm2, %v1100_v1, -inf }
 0x5e8   :  { %1108 = vmax.xlane.f32.xlu1 %v1107_v3 }
 0x5f9   :  { %1202 = vrot.lane.b32.xlu1 %v3748_v49, %s3582_s14 }
 0x5fa   :  { %1126 = vrot.lane.b32.xlu0 %v3742_v47, %s3582_s14 }
 0x5fd   :  { %1291 = vrot.lane.b32.xlu1 %v3718_v43, %s3583_s15 }
 0x601   :  { %1289 = vrot.lane.b32.xlu1 %v3708_v39, %s3583_s15 }
 0x605   :  { %1367 = vrot.lane.b32.xlu1 %v3714_v41, %s3583_s15 }
 0x671   :  { %v1106_v4 = vpop.xlane.xlu0 %1105 }
 0x672   :  { %v1110_v5 = vsub.f32 %v1022_v61, %v1106_v4 }
 0x674   :  { %v1112_v6 = vmul.f32 1.442695, %v1110_v5 }
 0x675   :  { %v1127_v8 = vpop.permute.xlu0 %1126  ;;  %v1109_v9 = vpop.xlane.xlu1 %1108 }
 0x676   :  { %3507 = vpow2.f32 %v1112_v6  ;;  %v1111_v10 = vsub.f32 %v1100_v1, %v1109_v9  ;;  %3318 = vmatpush3.msra.mxu0 %v1127_v8 }
 0x677   :  { %3327 = vmatprep.subr.mxu0 %v3579_v7 }
 0x678   :  { %v1114_v11 = vmul.f32 1.442695, %v1111_v10 }
 0x679   :  { %v1203_v12 = vpop.permute.xlu1 %1202 }
 0x67a   :  { %3509 = vpow2.f32 %v1114_v11  ;;  %3323 = vmatpush3.msra.mxu1 %v1203_v12 }
 0x67b   :  { %3332 = vmatprep.subr.mxu1 %v3579_v7 }
 0x67d   :  { %v1292_v16 = vpop.permute.xlu1 %1291 }
 0x680   :  { %v3508_v39 = vpop.eup %3507 }
 0x681   :  { %v1116_v43 = vsel %vm434_vm2, %v3508_v39, 0.0  ;;  %v1290_v20 = vpop.permute.xlu1 %1289 }
 0x682   :  { %1117 = vadd.xlane.f32.xlu0 %v1116_v43 }
 0x684   :  { %v3510_v41 = vpop.eup %3509 }
 0x685   :  { %v1119_v13 = vsel %vm434_vm2, %v3510_v41, 0.0  ;;  %v1368_v22 = vpop.permute.xlu1 %1367 }
 0x686   :  { %1120 = vadd.xlane.f32.xlu0 %v1119_v13 }
 0x69c   :  { %1369 = vrot.lane.b32.xlu0 %v3725_v45, %s3583_s15 }
 0x70f   :  { %v1118_v14 = vpop.xlane.xlu0 %1117 }
 0x710   :  { %3511 = vrcp.f32 %v1118_v14 }
 0x713   :  { %v1121_v15 = vpop.xlane.xlu0 %1120 }
 0x714   :  { %3513 = vrcp.f32 %v1121_v15 }
 0x717   :  { %v1370_v45 = vpop.permute.xlu0 %1369 }
 0x71a   :  { %v3512_v17 = vpop.eup %3511 }
 0x71b   :  { %v1124_v18 = vmul.f32 %v3512_v17, %v3508_v39 }
 0x71d   :  { %3320 = vmatmul.mubr.msk.f32.vlgmr.msra.gmra.mrb[8].mxu0 %vm434_vm2, %v1124_v18 }
 0x71e   :  { %v3514_v19 = vpop.eup %3513  ;;  %3328 = vmatpush3.xpose.msk.msra.mxu0 %vm44_vm0, %v1292_v16  ;;  %3329 = vmatprep.mubr.msk.f32.mxu0 %vm3580_vm1, %v3579_v7 }
 0x71f   :  { %v1125_v21 = vmul.f32 %v3514_v19, %v3510_v41  ;;  %3337 = vmatprep.subr.mxu0 %v3579_v7 }
 0x721   :  { %3325 = vmatmul.mubr.msk.f32.vlgmr.msra.gmra.mrb[24].mxu1 %vm434_vm2, %v1125_v21  ;;  %3330 = vmatmul.mubr.msk.f32.vlgmr.msra.gmra.mrb[10].mxu0 %vm44_vm0, %v1290_v20 }
 0x722   :  { %3333 = vmatpush3.xpose.msk.msra.mxu1 %vm44_vm0, %v1370_v45  ;;  %3334 = vmatprep.mubr.msk.f32.mxu1 %vm3580_vm1, %v3579_v7 }
 0x723   :  { %3342 = vmatprep.subr.mxu1 %v3579_v7  ;;  %3339 = vmatprep.mubr.msk.f32.mxu0 %vm3580_vm1, %v3579_v7 }
 0x725   :  { %3335 = vmatmul.mubr.msk.f32.vlgmr.msra.gmra.mrb[26].mxu1 %vm44_vm0, %v1368_v22 }
 0x726   :  { %3344 = vmatprep.mubr.msk.f32.mxu1 %vm3580_vm1, %v3579_v7 }
 0x7f0   :  { %v3852_v23 = vpop.f32.mrb[8].mxu0 }
 0x7f1   :  { %v3321_v24 = vpop.f32.mrb[9].mxu0 }
 0x7f4   :  { %v3854_v25 = vpop.f32.mrb[24].mxu1  ;;  %v1363_v26 = vpop.f32.mrb[10].mxu0 }
 0x7f5   :  { %v3326_v27 = vpop.f32.mrb[25].mxu1  ;;  %v3331_v28 = vpop.f32.mrb[11].mxu0  ;;  %v1445_v29 = vsel %vm434_vm2, %v1363_v26, -inf }
 0x7f6   :  { %1446 = vmax.xlane.f32.xlu0 %v1445_v29 }
 0x7f8   :  { %v1441_v30 = vpop.f32.mrb[26].mxu1 }
 0x7f9   :  { %v3336_v31 = vpop.f32.mrb[27].mxu1  ;;  %v1448_v32 = vsel %vm434_vm2, %v1441_v30, -inf }
 0x7fa   :  { %1449 = vmax.xlane.f32.xlu1 %v1448_v32 }
 0x80b   :  { %1543 = vrot.lane.b32.xlu1 %v3748_v49, %s3583_s15 }
 0x883   :  { %v1447_v33 = vpop.xlane.xlu0 %1446 }
 0x884   :  { %v1451_v34 = vsub.f32 %v1363_v26, %v1447_v33 }
 0x886   :  { %v1453_v35 = vmul.f32 1.442695, %v1451_v34 }
 0x887   :  { %v1450_v36 = vpop.xlane.xlu1 %1449 }
 0x888   :  { %3515 = vpow2.f32 %v1453_v35  ;;  %v1452_v37 = vsub.f32 %v1441_v30, %v1450_v36 }
 0x88a   :  { %v1455_v38 = vmul.f32 1.442695, %v1452_v37 }
 0x88b   :  { %v1544_v51 = vpop.permute.xlu1 %1543 }
 0x88c   :  { %3517 = vpow2.f32 %v1455_v38  ;;  %3343 = vmatpush3.msra.mxu1 %v1544_v51 }
 0x88d   :  { %3352 = vmatprep.subr.mxu1 %v3579_v7 }
 0x892   :  { %v3516_v52 = vpop.eup %3515 }
 0x893   :  { %v1457_v53 = vsel %vm434_vm2, %v3516_v52, 0.0 }
 0x894   :  { %1458 = vadd.xlane.f32.xlu0 %v1457_v53 }
 0x896   :  { %v3518_v54 = vpop.eup %3517 }
 0x897   :  { %v1460_v55 = vsel %vm434_vm2, %v3518_v54, 0.0 }
 0x898   :  { %1461 = vadd.xlane.f32.xlu0 %v1460_v55 }
 0x8ae   :  { %1467 = vrot.lane.b32.xlu0 %v3742_v47, %s3583_s15 }
 0x921   :  { %v1459_v49 = vpop.xlane.xlu0 %1458 }
 0x922   :  { %3519 = vrcp.f32 %v1459_v49 }
 0x925   :  { %v1462_v56 = vpop.xlane.xlu0 %1461 }
 0x926   :  { %3521 = vrcp.f32 %v1462_v56 }
 0x929   :  { %v1468_v57 = vpop.permute.xlu0 %1467 }
 0x92a   :  { %3338 = vmatpush3.msra.mxu0 %v1468_v57 }
 0x92b   :  { %3347 = vmatprep.subr.mxu0 %v3579_v7 }
 0x92c   :  { %v3520_v59 = vpop.eup %3519 }
 0x92d   :  { %v1465_v61 = vmul.f32 %v3520_v59, %v3516_v52 }
 0x92f   :  { %3340 = vmatmul.mubr.msk.f32.vlgmr.msra.gmra.mrb[12].mxu0 %vm434_vm2, %v1465_v61 }
 0x930   :  { %v3522_v62 = vpop.eup %3521  ;;  %3349 = vmatprep.mubr.msk.f32.mxu0 %vm3580_vm1, %v3579_v7 }
 0x931   :  { %v1466_v63 = vmul.f32 %v3522_v62, %v3518_v54  ;;  %3348 = vmatpush3.xpose.msk.msra.mxu0 %vm44_vm0, %v3720_v44 }
 0x932   :  { %3357 = vmatprep.subr.mxu0 %v3579_v7 }
 0x933   :  { %3345 = vmatmul.mubr.msk.f32.vlgmr.msra.gmra.mrb[28].mxu1 %vm434_vm2, %v1466_v63 }
 0x934   :  { %3353 = vmatpush3.xpose.msk.msra.mxu1 %vm44_vm0, %v3733_v46  ;;  %3350 = vmatmul.mubr.msk.f32.vlgmr.msra.gmra.mrb[14].mxu0 %vm44_vm0, %v3712_v40 }
 0x935   :  { %3358 = vmatpush3.msra.mxu0 %v3744_v48  ;;  %3354 = vmatprep.mubr.msk.f32.mxu1 %vm3580_vm1, %v3579_v7 }
 0x936   :  { %3362 = vmatprep.subr.mxu1 %v3579_v7  ;;  %3359 = vmatprep.mubr.msk.f32.mxu0 %vm3580_vm1, %v3579_v7 }
 0x937   :  { %3355 = vmatmul.mubr.msk.f32.vlgmr.msra.gmra.mrb[30].mxu1 %vm44_vm0, %v3716_v42  ;;  %3367 = vmatprep.subr.mxu0 %v3579_v7 }
 0x938   :  { %3363 = vmatpush3.msra.mxu1 %v3750_v50  ;;  %3364 = vmatprep.mubr.msk.f32.mxu1 %vm3580_vm1, %v3579_v7 }
 0x939   :  { %3372 = vmatprep.subr.mxu1 %v3579_v7 }
 0xa02   :  { %v3890_v47 = vpop.f32.mrb[12].mxu0 }
 0xa03   :  { %v3341_v0 = vpop.f32.mrb[13].mxu0 }
 0xa06   :  { %v3892_v1 = vpop.f32.mrb[28].mxu1 }
 0xa07   :  { %v3346_v2 = vpop.f32.mrb[29].mxu1  ;;  %v1702_v3 = vpop.f32.mrb[14].mxu0 }
 0xa08   :  { %v3351_v4 = vpop.f32.mrb[15].mxu0  ;;  %v1782_v5 = vsel %vm434_vm2, %v1702_v3, -inf }
 0xa09   :  { %1783 = vmax.xlane.f32.xlu1 %v1782_v5 }
 0xa0a   :  { %v1778_v6 = vpop.f32.mrb[30].mxu1 }
 0xa0b   :  { %v3356_v8 = vpop.f32.mrb[31].mxu1  ;;  %v1785_v9 = vsel %vm434_vm2, %v1778_v6, -inf }
 0xa0c   :  { %1786 = vmax.xlane.f32.xlu0 %v1785_v9 }
 0xa1a   :  { %1952 = vrot.lane.b32.xlu1 %v3712_v40, %s3581_s1 }
 0xa1e   :  { %2032 = vrot.lane.b32.xlu1 %v3733_v46, %s3581_s1 }
 0xa96   :  { %v1784_v10 = vpop.xlane.xlu1 %1783 }
 0xa97   :  { %v1788_v11 = vsub.f32 %v1702_v3, %v1784_v10 }
 0xa99   :  { %v1790_v12 = vmul.f32 1.442695, %v1788_v11  ;;  %v1787_v39 = vpop.xlane.xlu0 %1786 }
 0xa9a   :  { %v1789_v43 = vsub.f32 %v1778_v6, %v1787_v39  ;;  %v1953_v17 = vpop.permute.xlu1 %1952 }
 0xa9b   :  { %3523 = vpow2.f32 %v1790_v12 }
 0xa9c   :  { %v1792_v41 = vmul.f32 1.442695, %v1789_v43 }
 0xa9e   :  { %3525 = vpow2.f32 %v1792_v41  ;;  %v2033_v18 = vpop.permute.xlu1 %2032 }
 0xaa5   :  { %v3524_v13 = vpop.eup %3523 }
 0xaa6   :  { %v1794_v14 = vsel %vm434_vm2, %v3524_v13, 0.0 }
 0xaa7   :  { %1795 = vadd.xlane.f32.xlu0 %v1794_v14 }
 0xaa8   :  { %v3526_v15 = vpop.eup %3525 }
 0xaa9   :  { %v1797_v16 = vsel %vm434_vm2, %v3526_v15, 0.0 }
 0xaaa   :  { %1798 = vadd.xlane.f32.xlu1 %v1797_v16 }
 0xabb   :  { %2030 = vrot.lane.b32.xlu1 %v3716_v42, %s3581_s1 }
 0xabd   :  { %1954 = vrot.lane.b32.xlu0 %v3720_v44, %s3581_s1 }
 0xb34   :  { %v1796_v19 = vpop.xlane.xlu0 %1795 }
 0xb35   :  { %3527 = vrcp.f32 %v1796_v19 }
 0xb37   :  { %v1799_v20 = vpop.xlane.xlu1 %1798 }
 0xb38   :  { %3529 = vrcp.f32 %v1799_v20  ;;  %v1955_v24 = vpop.permute.xlu0 %1954 }
 0xb3b   :  { %v2031_v27 = vpop.permute.xlu1 %2030 }
 0xb3f   :  { %v3528_v21 = vpop.eup %3527 }
 0xb40   :  { %v1802_v45 = vmul.f32 %v3528_v21, %v3524_v13 }
 0xb42   :  { %v3530_v22 = vpop.eup %3529  ;;  %3360 = vmatmul.mubr.msk.f32.vlgmr.msra.gmra.mrb[16].mxu0 %vm434_vm2, %v1802_v45 }
 0xb43   :  { %v1803_v26 = vmul.f32 %v3530_v22, %v3526_v15  ;;  %3368 = vmatpush3.xpose.msk.msra.mxu0 %vm44_vm0, %v1955_v24  ;;  %3369 = vmatprep.mubr.msk.f32.mxu0 %vm3580_vm1, %v3579_v7 }
 0xb44   :  { %3377 = vmatprep.subr.mxu0 %v3579_v7 }
 0xb45   :  { %3365 = vmatmul.mubr.msk.f32.vlgmr.msra.gmra.mrb[32].mxu1 %vm434_vm2, %v1803_v26 }
 0xb46   :  { %3373 = vmatpush3.xpose.msk.msra.mxu1 %vm44_vm0, %v2033_v18  ;;  %3370 = vmatmul.mubr.msk.f32.vlgmr.msra.gmra.mrb[18].mxu0 %vm44_vm0, %v1953_v17 }
 0xb47   :  { %3374 = vmatprep.mubr.msk.f32.mxu1 %vm3580_vm1, %v3579_v7  ;;  %3382 = vmatprep.subr.mxu1 %v3579_v7 }
 0xb48   :  { %3379 = vmatprep.mubr.msk.f32.mxu0 %vm3580_vm1, %v3579_v7 }
 0xb49   :  { %3375 = vmatmul.mubr.msk.f32.vlgmr.msra.gmra.mrb[34].mxu1 %vm44_vm0, %v2031_v27 }
 0xb4a   :  { %3384 = vmatprep.mubr.msk.f32.mxu1 %vm3580_vm1, %v3579_v7 }
 0xc15   :  { %v1873_v28 = vpop.f32.mrb[16].mxu0 }
 0xc16   :  { %1950 = vst.msk [vmem:[#allocation2 + $0x8] sm:$0xff] %vm44_vm0, %v1873_v28  ;;  %v3361_v29 = vpop.f32.mrb[17].mxu0 }
 0xc18   :  { %v1946_v30 = vpop.f32.mrb[32].mxu1 }
 0xc19   :  { %1951 = vst.msk [vmem:[#allocation2 + $0x18] sm:$0xff] %vm44_vm0, %v1946_v30  ;;  %v3366_v31 = vpop.f32.mrb[33].mxu1  ;;  %v2026_v32 = vpop.f32.mrb[18].mxu0 }
 0xc1a   :  { %v3371_v33 = vpop.f32.mrb[19].mxu0  ;;  %v2108_v34 = vsel %vm434_vm2, %v2026_v32, -inf }
 0xc1b   :  { %2109 = vmax.xlane.f32.xlu0 %v2108_v34 }
 0xc1c   :  { %v2104_v35 = vpop.f32.mrb[34].mxu1 }
 0xc1d   :  { %v3376_v36 = vpop.f32.mrb[35].mxu1  ;;  %v2111_v37 = vsel %vm434_vm2, %v2104_v35, -inf }
 0xc1e   :  { %2112 = vmax.xlane.f32.xlu1 %v2111_v37 }
 0xc2f   :  { %2208 = vrot.lane.b32.xlu1 %v3750_v50, %s3581_s1 }
 0xc31   :  { %2131 = vrot.lane.b32.xlu0 %v3744_v48, %s3581_s1 }
 0xc33   :  { %2296 = vrot.lane.b32.xlu1 %v3720_v44, %s3582_s14 }
 0xc37   :  { %2294 = vrot.lane.b32.xlu1 %v3712_v40, %s3582_s14 }
 0xc3b   :  { %2372 = vrot.lane.b32.xlu1 %v3716_v42, %s3582_s14 }
 0xca8   :  { %v2110_v38 = vpop.xlane.xlu0 %2109 }
 0xca9   :  { %v2114_v51 = vsub.f32 %v2026_v32, %v2110_v38 }
 0xcab   :  { %v2116_v52 = vmul.f32 1.442695, %v2114_v51  ;;  %v2113_v53 = vpop.xlane.xlu1 %2112 }
 0xcac   :  { %v2115_v54 = vsub.f32 %v2104_v35, %v2113_v53  ;;  %v2132_v55 = vpop.permute.xlu0 %2131 }
 0xcad   :  { %3531 = vpow2.f32 %v2116_v52  ;;  %3378 = vmatpush3.msra.mxu0 %v2132_v55 }
 0xcae   :  { %v2118_v49 = vmul.f32 1.442695, %v2115_v54  ;;  %3387 = vmatprep.subr.mxu0 %v3579_v7 }
 0xcaf   :  { %v2209_v56 = vpop.permute.xlu1 %2208 }
 0xcb0   :  { %3533 = vpow2.f32 %v2118_v49  ;;  %3383 = vmatpush3.msra.mxu1 %v2209_v56 }
 0xcb1   :  { %3392 = vmatprep.subr.mxu1 %v3579_v7 }
 0xcb3   :  { %v2297_v2 = vpop.permute.xlu1 %2296 }
 0xcb7   :  { %v3532_v57 = vpop.eup %3531  ;;  %v2295_v6 = vpop.permute.xlu1 %2294 }
 0xcb8   :  { %v2120_v59 = vsel %vm434_vm2, %v3532_v57, 0.0 }
 0xcb9   :  { %2121 = vadd.xlane.f32.xlu0 %v2120_v59 }
 0xcba   :  { %v3534_v61 = vpop.eup %3533 }
 0xcbb   :  { %v2123_v62 = vsel %vm434_vm2, %v3534_v61, 0.0  ;;  %v2373_v10 = vpop.permute.xlu1 %2372 }
 0xcbd   :  { %2124 = vadd.xlane.f32.xlu0 %v2123_v62 }
 0xcd3   :  { %2374 = vrot.lane.b32.xlu0 %v3733_v46, %s3582_s14 }
 0xd46   :  { %v2122_v63 = vpop.xlane.xlu0 %2121 }
 0xd47   :  { %3535 = vrcp.f32 %v2122_v63 }
 0xd4a   :  { %v2125_v0 = vpop.xlane.xlu0 %2124 }
 0xd4b   :  { %3537 = vrcp.f32 %v2125_v0 }
 0xd4e   :  { %v2375_v9 = vpop.permute.xlu0 %2374 }
 0xd51   :  { %v3536_v3 = vpop.eup %3535 }
 0xd52   :  { %v2128_v4 = vmul.f32 %v3536_v3, %v3532_v57 }
 0xd54   :  { %3380 = vmatmul.mubr.msk.f32.vlgmr.msra.gmra.mrb[20].mxu0 %vm434_vm2, %v2128_v4 }
 0xd55   :  { %v3538_v5 = vpop.eup %3537  ;;  %3388 = vmatpush3.xpose.msk.msra.mxu0 %vm44_vm0, %v2297_v2  ;;  %3389 = vmatprep.mubr.msk.f32.mxu0 %vm3580_vm1, %v3579_v7 }
 0xd56   :  { %v2129_v8 = vmul.f32 %v3538_v5, %v3534_v61  ;;  %3397 = vmatprep.subr.mxu0 %v3579_v7 }
 0xd58   :  { %3385 = vmatmul.mubr.msk.f32.vlgmr.msra.gmra.mrb[36].mxu1 %vm434_vm2, %v2129_v8  ;;  %3390 = vmatmul.mubr.msk.f32.vlgmr.msra.gmra.mrb[22].mxu0 %vm44_vm0, %v2295_v6 }
 0xd59   :  { %3393 = vmatpush3.xpose.msk.msra.mxu1 %vm44_vm0, %v2375_v9  ;;  %3394 = vmatprep.mubr.msk.f32.mxu1 %vm3580_vm1, %v3579_v7 }
 0xd5a   :  { %3402 = vmatprep.subr.mxu1 %v3579_v7  ;;  %3399 = vmatprep.mubr.msk.f32.mxu0 %vm3580_vm1, %v3579_v7 }
 0xd5c   :  { %3395 = vmatmul.mubr.msk.f32.vlgmr.msra.gmra.mrb[38].mxu1 %vm44_vm0, %v2373_v10 }
 0xd5d   :  { %3404 = vmatprep.mubr.msk.f32.mxu1 %vm3580_vm1, %v3579_v7 }
 0xe27   :  { %v3958_v11 = vpop.f32.mrb[20].mxu0 }
 0xe28   :  { %v3381_v12 = vpop.f32.mrb[21].mxu0 }
 0xe2b   :  { %v3960_v39 = vpop.f32.mrb[36].mxu1  ;;  %v2368_v43 = vpop.f32.mrb[22].mxu0 }
 0xe2c   :  { %v3386_v41 = vpop.f32.mrb[37].mxu1  ;;  %v3391_v13 = vpop.f32.mrb[23].mxu0  ;;  %v2450_v14 = vsel %vm434_vm2, %v2368_v43, -inf }
 0xe2d   :  { %2451 = vmax.xlane.f32.xlu0 %v2450_v14  ;;  %v2994_v14 = vld [vmem:[%s4153_s2 + $0x80] sm:$0xff] }
 0xe2f   :  { %v2446_v15 = vpop.f32.mrb[38].mxu1 }
 0xe30   :  { %v3396_v16 = vpop.f32.mrb[39].mxu1  ;;  %v2453_v17 = vsel %vm434_vm2, %v2446_v15, -inf }
 0xe31   :  { %2454 = vmax.xlane.f32.xlu1 %v2453_v17  ;;  %v2978_v16 = vld [vmem:[%s4153_s2] sm:$0xff] }
 0xe42   :  { %2548 = vrot.lane.b32.xlu1 %v3750_v50, %s3582_s14 }
 0xe43   :  { %2472 = vrot.lane.b32.xlu0 %v3744_v48, %s3582_s14 }
 0xe46   :  { %2636 = vrot.lane.b32.xlu1 %v3720_v44, %s3583_s15 }
 0xe4a   :  { %2634 = vrot.lane.b32.xlu1 %v3712_v40, %s3583_s15 }
 0xe4e   :  { %2712 = vrot.lane.b32.xlu1 %v3716_v42, %s3583_s15 }
 0xeba   :  { %v2452_v18 = vpop.xlane.xlu0 %2451 }
 0xebb   :  { %v2456_v19 = vsub.f32 %v2368_v43, %v2452_v18  ;;  %v2979_v18 = vld [vmem:[%s4153_s2 + $0x8] sm:$0xff] }
 0xebd   :  { %v2458_v20 = vmul.f32 1.442695, %v2456_v19  ;;  %v2996_v19 = vld [vmem:[%s4153_s2 + $0x90] sm:$0xff] }
 0xebe   :  { %v2473_v21 = vpop.permute.xlu0 %2472  ;;  %v2455_v45 = vpop.xlane.xlu1 %2454 }
 0xebf   :  { %3539 = vpow2.f32 %v2458_v20  ;;  %v2457_v22 = vsub.f32 %v2446_v15, %v2455_v45  ;;  %3398 = vmatpush3.msra.mxu0 %v2473_v21  ;;  %v2995_v15 = vld [vmem:[%s4153_s2 + $0x88] sm:$0xff]  ;;  %v2997_v20 = vld [vmem:[%s4153_s2 + $0x98] sm:$0xff]  ;;  %v3453_v21 = vpack.c.bf16 %v2979_v18, %v2978_v16 }
 0xec0   :  { %3407 = vmatprep.subr.mxu0 %v3579_v7  ;;  %v3451_v17 = vpack.c.bf16 %v2995_v15, %v2994_v14  ;;  %v3455_v45 = vpack.c.bf16 %v2997_v20, %v2996_v19 }
 0xec1   :  { %v2460_v24 = vmul.f32 1.442695, %v2457_v22  ;;  %v2980_v22 = vld [vmem:[%s4153_s2 + $0x10] sm:$0xff] }
 0xec2   :  { %v2549_v26 = vpop.permute.xlu1 %2548 }
 0xec3   :  { %3541 = vpow2.f32 %v2460_v24  ;;  %3403 = vmatpush3.msra.mxu1 %v2549_v26  ;;  %v2981_v24 = vld [vmem:[%s4153_s2 + $0x18] sm:$0xff]  ;;  %v2998_v26 = vld [vmem:[%s4153_s2 + $0xa0] sm:$0xff] }
 0xec4   :  { %3412 = vmatprep.subr.mxu1 %v3579_v7 }
 0xec6   :  { %v2637_v30 = vpop.permute.xlu1 %2636 }
 0xec9   :  { %v3540_v40 = vpop.eup %3539 }
 0xeca   :  { %v2462_v44 = vsel %vm434_vm2, %v3540_v40, 0.0  ;;  %v2635_v34 = vpop.permute.xlu1 %2634 }
 0xecb   :  { %2463 = vadd.xlane.f32.xlu0 %v2462_v44  ;;  %v3457_v44 = vpack.c.bf16 %v2981_v24, %v2980_v22 }
 0xecd   :  { %v3542_v42 = vpop.eup %3541 }
 0xece   :  { %v2465_v27 = vsel %vm434_vm2, %v3542_v42, 0.0  ;;  %v2713_v36 = vpop.permute.xlu1 %2712 }
 0xecf   :  { %2466 = vadd.xlane.f32.xlu0 %v2465_v27  ;;  %v2982_v27 = vld [vmem:[%s4153_s2 + $0x20] sm:$0xff] }
 0xee5   :  { %2714 = vrot.lane.b32.xlu0 %v3733_v46, %s3583_s15 }
 0xf58   :  { %v2464_v28 = vpop.xlane.xlu0 %2463 }
 0xf59   :  { %3543 = vrcp.f32 %v2464_v28  ;;  %v2983_v28 = vld [vmem:[%s4153_s2 + $0x28] sm:$0xff] }
 0xf5c   :  { %v2467_v29 = vpop.xlane.xlu0 %2466 }
 0xf5d   :  { %3545 = vrcp.f32 %v2467_v29  ;;  %v3000_v29 = vld [vmem:[%s4153_s2 + $0xb0] sm:$0xff] }
 0xf60   :  { %v2715_v46 = vpop.permute.xlu0 %2714 }
 0xf63   :  { %v3544_v31 = vpop.eup %3543 }
 0xf64   :  { %v2470_v32 = vmul.f32 %v3544_v31, %v3540_v40  ;;  %v2999_v40 = vld [vmem:[%s4153_s2 + $0xa8] sm:$0xff]  ;;  %v3461_v31 = vpack.c.bf16 %v2983_v28, %v2982_v27 }
 0xf66   :  { %3400 = vmatmul.mubr.msk.f32.vlgmr.msra.gmra.mrb[24].mxu0 %vm434_vm2, %v2470_v32 }
 0xf67   :  { %v3546_v33 = vpop.eup %3545  ;;  %3408 = vmatpush3.xpose.msk.msra.mxu0 %vm44_vm0, %v2637_v30  ;;  %3409 = vmatprep.mubr.msk.f32.mxu0 %vm3580_vm1, %v3579_v7  ;;  %v3001_v30 = vld [vmem:[%s4153_s2 + $0xb8] sm:$0xff] }
 0xf68   :  { %v2471_v35 = vmul.f32 %v3546_v33, %v3542_v42  ;;  %3417 = vmatprep.subr.mxu0 %v3579_v7  ;;  %v3459_v42 = vpack.c.bf16 %v2999_v40, %v2998_v26  ;;  %v3463_v32 = vpack.c.bf16 %v3001_v30, %v3000_v29  ;;  %v2984_v33 = vld [vmem:[%s4153_s2 + $0x30] sm:$0xff] }
 0xf6a   :  { %3405 = vmatmul.mubr.msk.f32.vlgmr.msra.gmra.mrb[40].mxu1 %vm434_vm2, %v2471_v35  ;;  %3410 = vmatmul.mubr.msk.f32.vlgmr.msra.gmra.mrb[26].mxu0 %vm44_vm0, %v2635_v34  ;;  %v2985_v34 = vld [vmem:[%s4153_s2 + $0x38] sm:$0xff]  ;;  %v3002_v35 = vld [vmem:[%s4153_s2 + $0xc0] sm:$0xff] }
 0xf6b   :  { %3413 = vmatpush3.xpose.msk.msra.mxu1 %vm44_vm0, %v2715_v46  ;;  %3414 = vmatprep.mubr.msk.f32.mxu1 %vm3580_vm1, %v3579_v7  ;;  %v3003_v46 = vld [vmem:[%s4153_s2 + $0xc8] sm:$0xff] }
 0xf6c   :  { %3422 = vmatprep.subr.mxu1 %v3579_v7  ;;  %3419 = vmatprep.mubr.msk.f32.mxu0 %vm3580_vm1, %v3579_v7 }
 0xf6e   :  { %3415 = vmatmul.mubr.msk.f32.vlgmr.msra.gmra.mrb[42].mxu1 %vm44_vm0, %v2713_v36  ;;  %v3465_v36 = vpack.c.bf16 %v2985_v34, %v2984_v33 }
 0xf6f   :  { %3424 = vmatprep.mubr.msk.f32.mxu1 %vm3580_vm1, %v3579_v7 }
0x1039   :  { %v2544_v37 = vpop.f32.mrb[24].mxu0 }
0x103a   :  { %v3401_v38 = vpop.f32.mrb[25].mxu0 }
0x103b   :  { %v2986_v38 = vld [vmem:[%s4153_s2 + $0x40] sm:$0xff] }
0x103d   :  { %v2620_v51 = vpop.f32.mrb[40].mxu1  ;;  %v2708_v52 = vpop.f32.mrb[26].mxu0 }
0x103e   :  { %v3406_v53 = vpop.f32.mrb[41].mxu1  ;;  %v3411_v54 = vpop.f32.mrb[27].mxu0  ;;  %v2790_v55 = vsel %vm434_vm2, %v2708_v52, -inf }
0x103f   :  { %2791 = vmax.xlane.f32.xlu0 %v2790_v55  ;;  %v3005_v53 = vld [vmem:[%s4153_s2 + $0xd8] sm:$0xff] }
0x1041   :  { %v2786_v49 = vpop.f32.mrb[42].mxu1 }
0x1042   :  { %v3416_v56 = vpop.f32.mrb[43].mxu1  ;;  %v2793_v57 = vsel %vm434_vm2, %v2786_v49, -inf }
0x1043   :  { %2794 = vmax.xlane.f32.xlu1 %v2793_v57  ;;  %v2989_v56 = vld [vmem:[%s4153_s2 + $0x58] sm:$0xff] }
0x1054   :  { %2888 = vrot.lane.b32.xlu1 %v3750_v50, %s3583_s15 }
0x1058   :  { %2286 = vrot.lane.b32.xlu1 %v3958_v11, %s3583_s15 }
0x105c   :  { %939 = vrot.lane.b32.xlu1 %v3814_v58, %s3583_s15 }
0x1060   :  { %1280 = vrot.lane.b32.xlu1 %v3852_v23, %s3582_s14 }
0x1064   :  { %1621 = vrot.lane.b32.xlu1 %v3890_v47, %s3581_s1 }
0x1068   :  { %941 = vrot.lane.b32.xlu1 %v3816_v60, %s3583_s15 }
0x106c   :  { %1282 = vrot.lane.b32.xlu1 %v3854_v25, %s3582_s14 }
0x1070   :  { %1623 = vrot.lane.b32.xlu1 %v3892_v1, %s3581_s1 }
0x10cc   :  { %v2792_v7 = vpop.xlane.xlu0 %2791 }
0x10cd   :  { %v2796_v50 = vsub.f32 %v2708_v52, %v2792_v7  ;;  %v3004_v52 = vld [vmem:[%s4153_s2 + $0xd0] sm:$0xff]  ;;  %v3006_v7 = vld [vmem:[%s4153_s2 + $0xe0] sm:$0xff] }
0x10ce   :  { %v3471_v55 = vpack.c.bf16 %v3005_v53, %v3004_v52 }
0x10cf   :  { %v2798_v59 = vmul.f32 1.442695, %v2796_v50  ;;  %v3007_v50 = vld [vmem:[%s4153_s2 + $0xe8] sm:$0xff] }
0x10d0   :  { %v2795_v61 = vpop.xlane.xlu1 %2794 }
0x10d1   :  { %3547 = vpow2.f32 %v2798_v59  ;;  %v2797_v58 = vsub.f32 %v2786_v49, %v2795_v61  ;;  %v2988_v49 = vld [vmem:[%s4153_s2 + $0x50] sm:$0xff]  ;;  %v3475_v59 = vpack.c.bf16 %v3007_v50, %v3006_v7  ;;  %v2990_v61 = vld [vmem:[%s4153_s2 + $0x60] sm:$0xff] }
0x10d2   :  { %v3473_v57 = vpack.c.bf16 %v2989_v56, %v2988_v49 }
0x10d3   :  { %v2800_v62 = vmul.f32 1.442695, %v2797_v58  ;;  %v2991_v58 = vld [vmem:[%s4153_s2 + $0x68] sm:$0xff] }
0x10d4   :  { %v2889_v23 = vpop.permute.xlu1 %2888 }
0x10d5   :  { %3549 = vpow2.f32 %v2800_v62  ;;  %3423 = vmatpush3.msra.mxu1 %v2889_v23  ;;  %v3477_v62 = vpack.c.bf16 %v2991_v58, %v2990_v61  ;;  %v3008_v23 = vld [vmem:[%s4153_s2 + $0xf0] sm:$0xff] }
0x10d8   :  { %v2287_v47 = vpop.permute.xlu1 %2286 }
0x10d9   :  { %2292 = vst.msk [vmem:[#allocation2 + $0x8] sm:$0xff] %vm945_vm3, %v2287_v47  ;;  %v3009_v47 = vld [vmem:[%s4153_s2 + $0xf8] sm:$0xff] }
0x10db   :  { %v3548_v60 = vpop.eup %3547 }
0x10dc   :  { %v940_v63 = vpop.permute.xlu1 %939  ;;  %v2802_v25 = vsel %vm434_vm2, %v3548_v60, 0.0 }
0x10dd   :  { %946 = vst.msk [vmem:[#allocation2] sm:$0xff] %vm945_vm3, %v940_v63  ;;  %2803 = vadd.xlane.f32.xlu0 %v2802_v25  ;;  %v2992_v63 = vld [vmem:[%s4153_s2 + $0x70] sm:$0xff]  ;;  %v2993_v25 = vld [vmem:[%s4153_s2 + $0x78] sm:$0xff] }
0x10df   :  { %v3550_v1 = vpop.eup %3549 }
0x10e0   :  { %v1281_v0 = vpop.permute.xlu1 %1280  ;;  %v2805_v2 = vsel %vm434_vm2, %v3550_v1, 0.0 }
0x10e1   :  { %1287 = vst.msk [vmem:[#allocation2] sm:$0xff] %vm1286_vm4, %v1281_v0  ;;  %2806 = vadd.xlane.f32.xlu0 %v2805_v2 }
0x10e4   :  { %v1622_v3 = vpop.permute.xlu1 %1621 }
0x10e5   :  { %1628 = vst.msk [vmem:[#allocation2] sm:$0xff] %vm1627_vm5, %v1622_v3 }
0x10e8   :  { %v942_v4 = vpop.permute.xlu1 %941 }
0x10e9   :  { %947 = vst.msk [vmem:[#allocation2 + $0x10] sm:$0xff] %vm945_vm3, %v942_v4 }
0x10ec   :  { %v1283_v5 = vpop.permute.xlu1 %1282 }
0x10ed   :  { %1288 = vst.msk [vmem:[#allocation2 + $0x10] sm:$0xff] %vm1286_vm4, %v1283_v5 }
0x10f0   :  { %v1624_v6 = vpop.permute.xlu1 %1623 }
0x10f1   :  { %1629 = vst.msk [vmem:[#allocation2 + $0x10] sm:$0xff] %vm1627_vm5, %v1624_v6 }
0x10f7   :  { %2812 = vrot.lane.b32.xlu0 %v3744_v48, %s3583_s15 }
0x10fb   :  { %2626 = vrot.lane.b32.xlu0 %v2544_v37, %s3582_s14  ;;  %v3467_v37 = vpack.c.bf16 %v3003_v46, %v3002_v35 }
0x10ff   :  { %2288 = vrot.lane.b32.xlu0 %v3960_v39, %s3583_s15 }
0x1103   :  { %2628 = vrot.lane.b32.xlu0 %v2620_v51, %s3582_s14  ;;  %v2987_v51 = vld [vmem:[%s4153_s2 + $0x48] sm:$0xff] }
0x1104   :  { %v3469_v54 = vpack.c.bf16 %v2987_v51, %v2986_v38 }
0x116a   :  { %v2804_v8 = vpop.xlane.xlu0 %2803 }
0x116b   :  { %3551 = vrcp.f32 %v2804_v8 }
0x116e   :  { %v2807_v9 = vpop.xlane.xlu0 %2806 }
0x116f   :  { %3553 = vrcp.f32 %v2807_v9  ;;  %v2974_v9 = vld [vmem:[#allocation2] sm:$0xff] }
0x1172   :  { %v2813_v10 = vpop.permute.xlu0 %2812 }
0x1173   :  { %3418 = vmatpush3.msra.mxu0 %v2813_v10 }
0x1174   :  { %3452 = vmatprep.subr.bf16.mxu0 %v3451_v17 }
0x1175   :  { %v3552_v11 = vpop.eup %3551 }
0x1176   :  { %v2810_v12 = vmul.f32 %v3552_v11, %v3548_v60  ;;  %v2627_v43 = vpop.permute.xlu0 %2626  ;;  %v3479_v60 = vpack.c.bf16 %v3009_v47, %v3008_v23  ;;  %v2976_v11 = vld [vmem:[#allocation2 + $0x10] sm:$0xff] }
0x1177   :  { %2632 = vst.msk [vmem:[#allocation2 + $0x8] sm:$0xff] %vm1286_vm4, %v2627_v43  ;;  %v3164_v43 = vld [vmem:[%s4154_s3] ss:$0 sm:$0xff] }
0x1178   :  { %3420 = vmatmul.mubr.msk.f32.vlgmr.msra.gmra.mrb[28].mxu0 %vm434_vm2, %v2810_v12 }
0x1179   :  { %v3554_v48 = vpop.eup %3553  ;;  %3454 = vmatpush3.bf16.msra.mxu0 %v3453_v21 }
0x117a   :  { %v2811_v41 = vmul.f32 %v3554_v48, %v3550_v1  ;;  %v2289_v13 = vpop.permute.xlu0 %2288  ;;  %3456 = vmatprep.subr.bf16.mxu0 %v3455_v45  ;;  %v3481_v1 = vpack.c.bf16 %v2993_v25, %v2992_v63 }
0x117b   :  { %2293 = vst.msk [vmem:[#allocation2 + $0x18] sm:$0xff] %vm945_vm3, %v2289_v13 }
0x117c   :  { %3425 = vmatmul.mubr.msk.f32.vlgmr.msra.gmra.mrb[44].mxu1 %vm434_vm2, %v2811_v41 }
0x117d   :  { %3458 = vmatpush3.bf16.msra.mxu0 %v3457_v44 }
0x117e   :  { %v2629_v39 = vpop.permute.xlu0 %2628  ;;  %3460 = vmatprep.subr.bf16.mxu0 %v3459_v42 }
0x117f   :  { %2633 = vst.msk [vmem:[#allocation2 + $0x18] sm:$0xff] %vm1286_vm4, %v2629_v39 }
0x1181   :  { %3462 = vmatpush3.bf16.msra.mxu0 %v3461_v31 }
0x1182   :  { %3464 = vmatprep.subr.bf16.mxu0 %v3463_v32 }
0x1185   :  { %3466 = vmatpush3.bf16.msra.mxu0 %v3465_v36 }
0x1186   :  { %3468 = vmatprep.subr.bf16.mxu0 %v3467_v37 }
0x1189   :  { %3470 = vmatpush3.bf16.msra.mxu0 %v3469_v54 }
0x118a   :  { %3472 = vmatprep.subr.bf16.mxu0 %v3471_v55 }
0x118d   :  { %3474 = vmatpush3.bf16.msra.mxu0 %v3473_v57 }
0x118e   :  { %3476 = vmatprep.subr.bf16.mxu0 %v3475_v59 }
0x1191   :  { %3478 = vmatpush3.bf16.msra.mxu0 %v3477_v62 }
0x1192   :  { %3480 = vmatprep.subr.bf16.mxu0 %v3479_v60 }
0x1195   :  { %3482 = vmatpush3.bf16.msra.mxu0 %v3481_v1 }
0x124b   :  { %v2884_v0 = vpop.f32.mrb[28].mxu0 }
0x124c   :  { %2966 = vrot.lane.b32.xlu0 %v2884_v0, %s3581_s1  ;;  %v3421_v2 = vpop.f32.mrb[29].mxu0 }
0x124f   :  { %v2960_v3 = vpop.f32.mrb[44].mxu1 }
0x1250   :  { %2968 = vrot.lane.b32.xlu0 %v2960_v3, %s3581_s1  ;;  %v3426_v4 = vpop.f32.mrb[45].mxu1  ;;  %s3584_s1 = smov [#allocation3]  }
0x1251   :  { %s3099_s27 = sshll.u32 %s3584_s1, 4  ;;  %s3100_s27 = int_to_ptr.vmem [resolvable:$true] %s3099_s27 }
0x1252   :  { %s3555_s28 = scalar_lea.vmem %s3100_s27, 256  ;;  %p3560_p1 = scmp.lt.s32.totalorder %s3100_s27, %s3100_s27 }
0x1253   :  { %p3556_p0 = scmp.ne.s32.totalorder %s3100_s27, %s3555_s28  ;;  %p3561_p2 = scmp.lt.s32.totalorder %s3555_s28, %s3555_s28 }
0x1255   :  { %p3562_p3 = por %p3561_p2, %p3560_p1 }
0x1257   :  { %p3563_p4 = pnand %p3562_p3, %p3556_p0 }
0x12be   :  { %v2967_v5 = vpop.permute.xlu0 %2966 }
0x12bf   :  { %2972 = vst.msk [vmem:[#allocation2 + $0x8] sm:$0xff] %vm1627_vm5, %v2967_v5 }
0x12c2   :  { %v2969_v6 = vpop.permute.xlu0 %2968 }
0x12c3   :  { %2973 = vst.msk [vmem:[#allocation2 + $0x18] sm:$0xff] %vm1627_vm5, %v2969_v6 }
0x12c6   :  { %v2975_v8 = vld [vmem:[#allocation2 + $0x8] sm:$0xff] }
0x12c7   :  { %3081 = vmatprep.mubr.f32.mxu0 %v2975_v8 }
0x12c8   :  { %3082 = vmatmul.mubr.f32.vlgmr.msra.gmra.mrb[30].mxu0 %v2974_v9 }
0x12ca   :  { %v2977_v10 = vld [vmem:[#allocation2 + $0x18] sm:$0xff] }
0x12cb   :  { %3086 = vmatprep.mubr.f32.mxu0 %v2977_v10 }
0x12cc   :  { %3087 = vmatmul.mubr.f32.gmra.mrb[32].mxu0 %v2976_v11 }
0x139b   :  { %v3261_v12 = vpop.f32.mrb[30].mxu0 }
0x139c   :  { %v3262_v48 = vpop.f32.mrb[31].mxu0 }
0x139d   :  { %v3263_v41 = vadd.f32 %v3262_v48, %v3261_v12 }
0x139f   :  { %v3084_v13 = vadd.f32 %v3263_v41, %v3164_v43  ;;  %v3264_v39 = vpop.f32.mrb[32].mxu0 }
0x13a0   :  { %v3265_v14 = vpop.f32.mrb[33].mxu0 }
0x13a1   :  { %3092 = vst.msk [vmem:[#allocation3] sm:$0xff] %vm44_vm0, %v3084_v13  ;;  %v3266_v15 = vadd.f32 %v3265_v14, %v3264_v39 }
0x13a3   :  { %v3089_v16 = vadd.f32 %v3266_v15, %v3164_v43 }
0x13a5   :  { %3093 = vst.msk [vmem:[#allocation3 + $0x8] sm:$0xff] %vm44_vm0, %v3089_v16 }
0x13a6   :  { %3566 = shalt.err (!%p3563_p4)
}
0x13a7   :  { %s3567_s30 = scalar_lea.hbm %s4155_s4, 256 }
0x13a8   :  { %p3568_p5 = scmp.ne.s32.totalorder %s4155_s4, %s3567_s30  ;;  %p3571_p6 = scmp.lt.u32.totalorder %s3567_s30, %s4155_s4 }
0x13aa   :  { %p3573_p7 = pnand %p3571_p6, %p3568_p5 }
0x13ac   :  { %3576 = shalt.err (!%p3573_p7)
}
0x13ad   :  { %s3585_s9 = smov 128   ;;  %s3586_s10 = smov 8  }
0x13ae   :  { %3105 = dma.vmem_to_hbm [thread:$0]  %s3100_s27, 256, %s4155_s4, [#allocation4], %s3585_s9, %s3585_s9, %s3586_s10  }
0x13af   :  { %3577 = dma.done.wait [#allocation4], 256  }
0x13b0   :  { %3578 = vsyncadd [#allocation4], 4294967040 }
0x13b1   :  { %3109 = vsyncpa [#allocation4], 1 }

</bundles_post_ra>
